<compile_context>
chip_gen: v5e
topology: v5e:2x2
jax: 0.10.0
libtpu: 0.0.40
codegen_flags: <defaults>
</compile_context>

<pallas_src>
import jax
import jax.numpy as jnp
import numpy as np
from jax.experimental import pallas as pl
from jax.experimental.pallas import tpu as pltpu

KSIZE = 5
PAD = 2


# --------------------------------------------------------------------------
# Fused Pallas kernel
# --------------------------------------------------------------------------
def _fused_tiny_ecg_kernel(xe_ref, xo_ref, wc_ref, bc_ref, w1t_ref, b1_ref,
                           w2t_ref, b2_ref, o_ref):
    """Conv1d(k=5,p=2) + ReLU + MaxPool1d(2) + flatten + Linear/ReLU/Linear.

    xe_ref, xo_ref : (BT, L2 + PAD)  VMEM, even/odd phases of the padded input
    wc_ref         : (F, KSIZE)      SMEM, conv weight (C_in == 1), scalar reads
    bc_ref         : (F,)            SMEM, conv bias, scalar reads
    w1t_ref        : (F*L2, H)       VMEM, fc1 weight, pre-transposed, bf16
    b1_ref         : (1, H)          VMEM, fc1 bias
    w2t_ref        : (H, C)          VMEM, fc2 weight, pre-transposed
    b2_ref         : (1, C)          VMEM, fc2 bias
    o_ref          : (BT, C)         VMEM, logits for this batch tile
    """
    bt = xe_ref.shape[0]
    L2 = xe_ref.shape[1] - PAD          # pooled length == L // 2
    F, K = wc_ref.shape
    H = w1t_ref.shape[1]
    assert K == KSIZE and w1t_ref.shape[0] == F * L2

    # 5-tap windows of the even / odd conv-output positions as contiguous
    # static slices of the de-interleaved padded input (loaded once, reused by
    # every filter):
    #   x_pad[2j + k]     -> (xe if k even else xo)[j + k // 2]
    #   x_pad[2j + 1 + k] -> (xo if k even else xe)[j + (k + 1) // 2]
    # NOTE: the m = 1, 2 slices cross the 128-lane tile boundary of the
    # (BT, L2+2) buffer; Mosaic lowers those to XLU rotates/selects (XLU is
    # otherwise idle here).  Switch to pltpu.roll if the dump shows VMEM copies.
    ev = [xe_ref[:, m:m + L2] for m in range(PAD + 1)]        # 3 x (BT, L2)
    od = [xo_ref[:, m:m + L2] for m in range(PAD + 1)]
    taps_even = (ev[0], od[0], ev[1], od[1], ev[2])           # conv output t = 2j
    taps_odd = (od[0], ev[1], od[1], ev[2], od[2])            # conv output t = 2j+1

    # Filters per FC1 partial dot: 256-deep contraction (2 filters) when the
    # pooled length is lane-aligned -> one MXU pass per dot on v6e/v7x.
    fpd = 2 if (L2 % 128 == 0 and 2 * L2 <= 256) else 1
    while F % fpd:
        fpd -= 1

    h_acc = jnp.zeros((bt, H), jnp.float32)
    for f0 in range(0, F, fpd):
        pooled = []
        for f in range(f0, f0 + fpd):
            # Per-filter conv accumulators: 2 live vregs, scalar taps from SMEM.
            ye = taps_even[0] * wc_ref[f, 0]
            yo = taps_odd[0] * wc_ref[f, 0]
            for k in range(1, KSIZE):
                wk = wc_ref[f, k]
                ye = ye + taps_even[k] * wk
                yo = yo + taps_odd[k] * wk
            # MaxPool1d(2) o ReLU == ReLU o max(even, odd); bias commutes w/ max.
            pooled.append(jnp.maximum(jnp.maximum(ye, yo) + bc_ref[f], 0.0))
        # Flatten (PyTorch (channel, length) row-major order) directly into the
        # FC1 contraction: no scratch, no (B, F, L2) materialization.
        a_chunk = pooled[0] if fpd == 1 else jnp.concatenate(pooled, axis=-1)
        w_chunk = w1t_ref[f0 * L2:(f0 + fpd) * L2, :]          # (fpd*L2, H) bf16
        h_acc = h_acc + jnp.dot(a_chunk.astype(w_chunk.dtype), w_chunk,
                                preferred_element_type=jnp.float32)

    h = jnp.maximum(h_acc + b1_ref[...], 0.0)                  # (BT, H)
    logits = jnp.dot(h, w2t_ref[...],
                     preferred_element_type=jnp.float32) + b2_ref[...]
    o_ref[...] = logits.astype(o_ref.dtype)


# --------------------------------------------------------------------------
# Wrapper
# --------------------------------------------------------------------------
def tiny_ecg_cnn_forward(x, prepared_params, *, batch_tile=None):
    """x: (B, 1, L) float32 -> (B, num_classes) float32 logits."""
    wc, bc, w1t, b1r, w2t, b2r = prepared_params
    B, cin, L = x.shape
    assert cin == 1 and L % 2 == 0
    F = bc.shape[0]
    L2 = L // 2
    D, H = w1t.shape
    C = w2t.shape[1]
    assert D == F * L2

    # Zero-pad (padding=2) and de-interleave into even/odd phases so the kernel
    # only needs contiguous slices (no im2col, no strided lane access in-kernel).
    # These three tiny ops fuse into a single XLA fusion around the pallas_call.
    x_pad = jnp.pad(x[:, 0, :], ((0, 0), (PAD, PAD)))          # (B, L + 4)
    xe = x_pad[:, 0::2]                                        # (B, L2 + 2)
    xo = x_pad[:, 1::2]                                        # (B, L2 + 2)

    # Batch tiling keeps the VMEM footprint fixed as B grows and lets the
    # "parallel" axis shard across TensorCores (v7x megacore).
    bt = batch_tile if batch_tile is not None else min(B, 128)
    assert B % bt == 0 and (bt % 8 == 0 or bt == B)
    grid = (B // bt,)

    flops = B * (2 * F * L * KSIZE + 2 * D * H + 2 * H * C)
    bytes_accessed = (
        2 * B * (L2 + PAD) * 4                                 # xe, xo
        + wc.size * 4 + bc.size * 4                            # conv params (SMEM)
        + w1t.size * w1t.dtype.itemsize + b1r.size * 4         # fc1 (bf16 weight)
        + w2t.size * 4 + b2r.size * 4                          # fc2
        + B * C * 4)                                           # logits
    cost = pl.CostEstimate(flops=flops, transcendentals=0,
                           bytes_accessed=bytes_accessed)

    smem = pltpu.MemorySpace.SMEM
    vmem = pltpu.MemorySpace.VMEM
    return pl.pallas_call(
        _fused_tiny_ecg_kernel,
        out_shape=jax.ShapeDtypeStruct((B, C), jnp.float32),
        grid=grid,
        in_specs=[
            pl.BlockSpec((bt, L2 + PAD), lambda i: (i, 0)),    # xe (batch-tiled)
            pl.BlockSpec((bt, L2 + PAD), lambda i: (i, 0)),    # xo (batch-tiled)
            pl.BlockSpec(memory_space=smem),                   # wc  (scalar taps)
            pl.BlockSpec(memory_space=smem),                   # bc  (scalar bias)
            pl.BlockSpec(memory_space=vmem),                   # w1t (VMEM-resident)
            pl.BlockSpec(memory_space=vmem),                   # b1
            pl.BlockSpec(memory_space=vmem),                   # w2t
            pl.BlockSpec(memory_space=vmem),                   # b2
        ],
        out_specs=pl.BlockSpec((bt, C), lambda i: (i, 0)),
        compiler_params=pltpu.CompilerParams(
            dimension_semantics=("parallel",)),
        cost_estimate=cost,
    )(xe, xo, wc, bc, w1t, b1r, w2t, b2r)


def prepare_params(params):
    """One-time (outside jit) reshape/transpose/cast into kernel-ready layout."""
    wconv, bconv, fw1, fb1, fw2, fb2 = params
    F = wconv.shape[0]
    wc = wconv.reshape(F, KSIZE).astype(jnp.float32)   # (F, K), C_in == 1 -> SMEM
    bc = bconv.astype(jnp.float32)                     # (F,)              -> SMEM
    w1t = fw1.T.astype(jnp.bfloat16)                   # (D, H) bf16: halves HBM DMA
    b1r = fb1.reshape(1, -1).astype(jnp.float32)       # (1, H)
    w2t = fw2.T.astype(jnp.float32)                    # (H, C)
    b2r = fb2.reshape(1, -1).astype(jnp.float32)       # (1, C)
    return (wc, bc, w1t, b1r, w2t, b2r)


# --------------------------------------------------------------------------
# Deterministic parameter init (same shapes as the PyTorch module __init__)
# --------------------------------------------------------------------------
def init_params(key, num_classes=5, filters=16, hidden_units=64, input_size=256):
    D = filters * (input_size // 2)
    ks = jax.random.split(key, 6)

    def nrm(k, shape, s):
        return s * jax.random.normal(k, shape, jnp.float32)

    wconv = nrm(ks[0], (filters, 1, KSIZE), 0.3)
    bconv = nrm(ks[1], (filters,), 0.1)
    fw1 = nrm(ks[2], (hidden_units, D), 0.02)
    fb1 = nrm(ks[3], (hidden_units,), 0.05)
    fw2 = nrm(ks[4], (num_classes, hidden_units), 0.1)
    fb2 = nrm(ks[5], (num_classes,), 0.05)
    return (wconv, bconv, fw1, fb1, fw2, fb2)


# --------------------------------------------------------------------------
# Pure-JAX reference (PyTorch forward semantics) for verification
# --------------------------------------------------------------------------
def reference_forward(x, params):
    wconv, bconv, fw1, fb1, fw2, fb2 = params
    B, _, L = x.shape
    x_pad = jnp.pad(x[:, 0, :], ((0, 0), (PAD, PAD)))
    y = bconv[None, :, None] + sum(
        wconv[None, :, 0, k, None] * x_pad[:, None, k:k + L]
        for k in range(KSIZE))                            # Conv1d(1->F, k=5, p=2)
    y = jnp.maximum(y, 0.0)                               # ReLU
    p = jnp.maximum(y[:, :, 0::2], y[:, :, 1::2])         # MaxPool1d(2)
    a = p.reshape(B, -1)                                  # flatten (C, L) order
    h = jnp.maximum(a @ fw1.T + fb1[None, :], 0.0)        # Linear + ReLU
    return h @ fw2.T + fb2[None, :]                       # Linear


if __name__ == "__main__":
    # Small config consistent with the module (input_size chosen so the pooled
    # length L2 = 128 is lane-aligned; the kernel is generic in L).
    num_classes, filters, hidden_units, input_size = 5, 16, 64, 256
    B = 8
    key = jax.random.PRNGKey(0)
    kx, kp = jax.random.split(key)
    x = jax.random.normal(kx, (B, 1, input_size), jnp.float32)
    params = init_params(kp, num_classes, filters, hidden_units, input_size)
    prepared = prepare_params(params)   # one-time layout/dtype prep, outside jit

    fwd = jax.jit(tiny_ecg_cnn_forward)
    out = jax.block_until_ready(fwd(x, prepared))
    ref = jax.block_until_ready(jax.jit(reference_forward)(x, params))

    assert out.shape == (B, num_classes)
    np.testing.assert_allclose(np.asarray(out), np.asarray(ref),
                               rtol=1e-2, atol=1e-2)
    print("KERNEL_OK")
</pallas_src>

<mosaic_0001>
module attributes {stable_mosaic.version = 11 : i64} {
  func.func @_fused_tiny_ecg_kernel(%arg0: i32, %arg1: memref<8x130xf32, #tpu.memory_space<vmem>>, %arg2: memref<8x130xf32, #tpu.memory_space<vmem>>, %arg3: memref<16x5xf32, #tpu.memory_space<smem>>, %arg4: memref<16xf32, #tpu.memory_space<smem>>, %arg5: memref<2048x64xbf16, #tpu.memory_space<vmem>>, %arg6: memref<1x64xf32, #tpu.memory_space<vmem>>, %arg7: memref<64x5xf32, #tpu.memory_space<vmem>>, %arg8: memref<1x5xf32, #tpu.memory_space<vmem>>, %arg9: memref<8x5xf32, #tpu.memory_space<vmem>>) attributes {dimension_semantics = [#tpu.dimension_semantics<parallel>], iteration_bounds = array<i64: 1>, scalar_prefetch = 0 : i64, scratch_operands = 0 : i64, tpu.core_type = #tpu.core_type<tc>, window_params = [{transform_indices = @transform_0, window_bounds = array<i64: 8, 130>}, {transform_indices = @transform_1, window_bounds = array<i64: 8, 130>}, {transform_indices = @transform_2, window_bounds = array<i64: 16, 5>}, {transform_indices = @transform_3, window_bounds = array<i64: 16>}, {pipeline_mode = #tpu.pipeline_mode<synchronous>, transform_indices = @transform_4, window_bounds = array<i64: 2048, 64>}, {pipeline_mode = #tpu.pipeline_mode<synchronous>, transform_indices = @transform_5, window_bounds = array<i64: 1, 64>}, {pipeline_mode = #tpu.pipeline_mode<synchronous>, transform_indices = @transform_6, window_bounds = array<i64: 64, 5>}, {pipeline_mode = #tpu.pipeline_mode<synchronous>, transform_indices = @transform_7, window_bounds = array<i64: 1, 5>}, {transform_indices = @transform_8, window_bounds = array<i64: 8, 5>}]} {
    %c0 = arith.constant 0 : index
    %c0_0 = arith.constant 0 : index
    %0 = vector.load %arg1[%c0, %c0_0] : memref<8x130xf32, #tpu.memory_space<vmem>>, vector<8x128xf32>
    %c0_1 = arith.constant 0 : index
    %c1 = arith.constant 1 : index
    %1 = vector.load %arg1[%c0_1, %c1] : memref<8x130xf32, #tpu.memory_space<vmem>>, vector<8x128xf32>
    %c0_2 = arith.constant 0 : index
    %c2 = arith.constant 2 : index
    %2 = vector.load %arg1[%c0_2, %c2] : memref<8x130xf32, #tpu.memory_space<vmem>>, vector<8x128xf32>
    %c0_3 = arith.constant 0 : index
    %c0_4 = arith.constant 0 : index
    %3 = vector.load %arg2[%c0_3, %c0_4] : memref<8x130xf32, #tpu.memory_space<vmem>>, vector<8x128xf32>
    %c0_5 = arith.constant 0 : index
    %c1_6 = arith.constant 1 : index
    %4 = vector.load %arg2[%c0_5, %c1_6] : memref<8x130xf32, #tpu.memory_space<vmem>>, vector<8x128xf32>
    %c0_7 = arith.constant 0 : index
    %c2_8 = arith.constant 2 : index
    %5 = vector.load %arg2[%c0_7, %c2_8] : memref<8x130xf32, #tpu.memory_space<vmem>>, vector<8x128xf32>
    %cst = arith.constant 0.000000e+00 : f32
    %6 = vector.broadcast %cst : f32 to vector<8x64xf32>
    %c0_9 = arith.constant 0 : index
    %c0_10 = arith.constant 0 : index
    %7 = memref.load %arg3[%c0_9, %c0_10] : memref<16x5xf32, #tpu.memory_space<smem>>
    %8 = vector.broadcast %7 : f32 to vector<8x128xf32>
    %9 = arith.mulf %0, %8 : vector<8x128xf32>
    %c0_11 = arith.constant 0 : index
    %c0_12 = arith.constant 0 : index
    %10 = memref.load %arg3[%c0_11, %c0_12] : memref<16x5xf32, #tpu.memory_space<smem>>
    %11 = vector.broadcast %10 : f32 to vector<8x128xf32>
    %12 = arith.mulf %3, %11 : vector<8x128xf32>
    %c0_13 = arith.constant 0 : index
    %c1_14 = arith.constant 1 : index
    %13 = memref.load %arg3[%c0_13, %c1_14] : memref<16x5xf32, #tpu.memory_space<smem>>
    %14 = vector.broadcast %13 : f32 to vector<8x128xf32>
    %15 = arith.mulf %3, %14 : vector<8x128xf32>
    %16 = arith.addf %9, %15 : vector<8x128xf32>
    %17 = vector.broadcast %13 : f32 to vector<8x128xf32>
    %18 = arith.mulf %1, %17 : vector<8x128xf32>
    %19 = arith.addf %12, %18 : vector<8x128xf32>
    %c0_15 = arith.constant 0 : index
    %c2_16 = arith.constant 2 : index
    %20 = memref.load %arg3[%c0_15, %c2_16] : memref<16x5xf32, #tpu.memory_space<smem>>
    %21 = vector.broadcast %20 : f32 to vector<8x128xf32>
    %22 = arith.mulf %1, %21 : vector<8x128xf32>
    %23 = arith.addf %16, %22 : vector<8x128xf32>
    %24 = vector.broadcast %20 : f32 to vector<8x128xf32>
    %25 = arith.mulf %4, %24 : vector<8x128xf32>
    %26 = arith.addf %19, %25 : vector<8x128xf32>
    %c0_17 = arith.constant 0 : index
    %c3 = arith.constant 3 : index
    %27 = memref.load %arg3[%c0_17, %c3] : memref<16x5xf32, #tpu.memory_space<smem>>
    %28 = vector.broadcast %27 : f32 to vector<8x128xf32>
    %29 = arith.mulf %4, %28 : vector<8x128xf32>
    %30 = arith.addf %23, %29 : vector<8x128xf32>
    %31 = vector.broadcast %27 : f32 to vector<8x128xf32>
    %32 = arith.mulf %2, %31 : vector<8x128xf32>
    %33 = arith.addf %26, %32 : vector<8x128xf32>
    %c0_18 = arith.constant 0 : index
    %c4 = arith.constant 4 : index
    %34 = memref.load %arg3[%c0_18, %c4] : memref<16x5xf32, #tpu.memory_space<smem>>
    %35 = vector.broadcast %34 : f32 to vector<8x128xf32>
    %36 = arith.mulf %2, %35 : vector<8x128xf32>
    %37 = arith.addf %30, %36 : vector<8x128xf32>
    %38 = vector.broadcast %34 : f32 to vector<8x128xf32>
    %39 = arith.mulf %5, %38 : vector<8x128xf32>
    %40 = arith.addf %33, %39 : vector<8x128xf32>
    %41 = arith.maximumf %37, %40 : vector<8x128xf32>
    %c0_19 = arith.constant 0 : index
    %42 = memref.load %arg4[%c0_19] : memref<16xf32, #tpu.memory_space<smem>>
    %43 = vector.broadcast %42 : f32 to vector<8x128xf32>
    %44 = arith.addf %41, %43 : vector<8x128xf32>
    %cst_20 = arith.constant 0.000000e+00 : f32
    %45 = vector.broadcast %cst_20 : f32 to vector<8x128xf32>
    %46 = arith.maximumf %44, %45 : vector<8x128xf32>
    %c1_21 = arith.constant 1 : index
    %c0_22 = arith.constant 0 : index
    %47 = memref.load %arg3[%c1_21, %c0_22] : memref<16x5xf32, #tpu.memory_space<smem>>
    %48 = vector.broadcast %47 : f32 to vector<8x128xf32>
    %49 = arith.mulf %0, %48 : vector<8x128xf32>
    %c1_23 = arith.constant 1 : index
    %c0_24 = arith.constant 0 : index
    %50 = memref.load %arg3[%c1_23, %c0_24] : memref<16x5xf32, #tpu.memory_space<smem>>
    %51 = vector.broadcast %50 : f32 to vector<8x128xf32>
    %52 = arith.mulf %3, %51 : vector<8x128xf32>
    %c1_25 = arith.constant 1 : index
    %c1_26 = arith.constant 1 : index
    %53 = memref.load %arg3[%c1_25, %c1_26] : memref<16x5xf32, #tpu.memory_space<smem>>
    %54 = vector.broadcast %53 : f32 to vector<8x128xf32>
    %55 = arith.mulf %3, %54 : vector<8x128xf32>
    %56 = arith.addf %49, %55 : vector<8x128xf32>
    %57 = vector.broadcast %53 : f32 to vector<8x128xf32>
    %58 = arith.mulf %1, %57 : vector<8x128xf32>
    %59 = arith.addf %52, %58 : vector<8x128xf32>
    %c1_27 = arith.constant 1 : index
    %c2_28 = arith.constant 2 : index
    %60 = memref.load %arg3[%c1_27, %c2_28] : memref<16x5xf32, #tpu.memory_space<smem>>
    %61 = vector.broadcast %60 : f32 to vector<8x128xf32>
    %62 = arith.mulf %1, %61 : vector<8x128xf32>
    %63 = arith.addf %56, %62 : vector<8x128xf32>
    %64 = vector.broadcast %60 : f32 to vector<8x128xf32>
    %65 = arith.mulf %4, %64 : vector<8x128xf32>
    %66 = arith.addf %59, %65 : vector<8x128xf32>
    %c1_29 = arith.constant 1 : index
    %c3_30 = arith.constant 3 : index
    %67 = memref.load %arg3[%c1_29, %c3_30] : memref<16x5xf32, #tpu.memory_space<smem>>
    %68 = vector.broadcast %67 : f32 to vector<8x128xf32>
    %69 = arith.mulf %4, %68 : vector<8x128xf32>
    %70 = arith.addf %63, %69 : vector<8x128xf32>
    %71 = vector.broadcast %67 : f32 to vector<8x128xf32>
    %72 = arith.mulf %2, %71 : vector<8x128xf32>
    %73 = arith.addf %66, %72 : vector<8x128xf32>
    %c1_31 = arith.constant 1 : index
    %c4_32 = arith.constant 4 : index
    %74 = memref.load %arg3[%c1_31, %c4_32] : memref<16x5xf32, #tpu.memory_space<smem>>
    %75 = vector.broadcast %74 : f32 to vector<8x128xf32>
    %76 = arith.mulf %2, %75 : vector<8x128xf32>
    %77 = arith.addf %70, %76 : vector<8x128xf32>
    %78 = vector.broadcast %74 : f32 to vector<8x128xf32>
    %79 = arith.mulf %5, %78 : vector<8x128xf32>
    %80 = arith.addf %73, %79 : vector<8x128xf32>
    %81 = arith.maximumf %77, %80 : vector<8x128xf32>
    %c1_33 = arith.constant 1 : index
    %82 = memref.load %arg4[%c1_33] : memref<16xf32, #tpu.memory_space<smem>>
    %83 = vector.broadcast %82 : f32 to vector<8x128xf32>
    %84 = arith.addf %81, %83 : vector<8x128xf32>
    %cst_34 = arith.constant 0.000000e+00 : f32
    %85 = vector.broadcast %cst_34 : f32 to vector<8x128xf32>
    %86 = arith.maximumf %84, %85 : vector<8x128xf32>
    %87 = tpu.concatenate %46, %86 in 1 : vector<8x128xf32>, vector<8x128xf32> -> vector<8x256xf32>
    %c0_35 = arith.constant 0 : index
    %c0_36 = arith.constant 0 : index
    %88 = vector.load %arg5[%c0_35, %c0_36] : memref<2048x64xbf16, #tpu.memory_space<vmem>>, vector<256x64xbf16>
    %89 = arith.truncf %87 : vector<8x256xf32> to vector<8x256xbf16>
    %cst_37 = arith.constant dense<0.000000e+00> : vector<8x64xf32>
    %90 = tpu.matmul %89, %88, %cst_37 {dimension_numbers = #tpu.dot_dimension_numbers<[1], [0], [0], [1], [0, 0, 1, 1], [], []>} : vector<8x256xbf16>, vector<256x64xbf16>, vector<8x64xf32> -> vector<8x64xf32>
    %91 = arith.addf %6, %90 : vector<8x64xf32>
    %c2_38 = arith.constant 2 : index
    %c0_39 = arith.constant 0 : index
    %92 = memref.load %arg3[%c2_38, %c0_39] : memref<16x5xf32, #tpu.memory_space<smem>>
    %93 = vector.broadcast %92 : f32 to vector<8x128xf32>
    %94 = arith.mulf %0, %93 : vector<8x128xf32>
    %c2_40 = arith.constant 2 : index
    %c0_41 = arith.constant 0 : index
    %95 = memref.load %arg3[%c2_40, %c0_41] : memref<16x5xf32, #tpu.memory_space<smem>>
    %96 = vector.broadcast %95 : f32 to vector<8x128xf32>
    %97 = arith.mulf %3, %96 : vector<8x128xf32>
    %c2_42 = arith.constant 2 : index
    %c1_43 = arith.constant 1 : index
    %98 = memref.load %arg3[%c2_42, %c1_43] : memref<16x5xf32, #tpu.memory_space<smem>>
    %99 = vector.broadcast %98 : f32 to vector<8x128xf32>
    %100 = arith.mulf %3, %99 : vector<8x128xf32>
    %101 = arith.addf %94, %100 : vector<8x128xf32>
    %102 = vector.broadcast %98 : f32 to vector<8x128xf32>
    %103 = arith.mulf %1, %102 : vector<8x128xf32>
    %104 = arith.addf %97, %103 : vector<8x128xf32>
    %c2_44 = arith.constant 2 : index
    %c2_45 = arith.constant 2 : index
    %105 = memref.load %arg3[%c2_44, %c2_45] : memref<16x5xf32, #tpu.memory_space<smem>>
    %106 = vector.broadcast %105 : f32 to vector<8x128xf32>
    %107 = arith.mulf %1, %106 : vector<8x128xf32>
    %108 = arith.addf %101, %107 : vector<8x128xf32>
    %109 = vector.broadcast %105 : f32 to vector<8x128xf32>
    %110 = arith.mulf %4, %109 : vector<8x128xf32>
    %111 = arith.addf %104, %110 : vector<8x128xf32>
    %c2_46 = arith.constant 2 : index
    %c3_47 = arith.constant 3 : index
    %112 = memref.load %arg3[%c2_46, %c3_47] : memref<16x5xf32, #tpu.memory_space<smem>>
    %113 = vector.broadcast %112 : f32 to vector<8x128xf32>
    %114 = arith.mulf %4, %113 : vector<8x128xf32>
    %115 = arith.addf %108, %114 : vector<8x128xf32>
    %116 = vector.broadcast %112 : f32 to vector<8x128xf32>
    %117 = arith.mulf %2, %116 : vector<8x128xf32>
    %118 = arith.addf %111, %117 : vector<8x128xf32>
    %c2_48 = arith.constant 2 : index
    %c4_49 = arith.constant 4 : index
    %119 = memref.load %arg3[%c2_48, %c4_49] : memref<16x5xf32, #tpu.memory_space<smem>>
    %120 = vector.broadcast %119 : f32 to vector<8x128xf32>
    %121 = arith.mulf %2, %120 : vector<8x128xf32>
    %122 = arith.addf %115, %121 : vector<8x128xf32>
    %123 = vector.broadcast %119 : f32 to vector<8x128xf32>
    %124 = arith.mulf %5, %123 : vector<8x128xf32>
    %125 = arith.addf %118, %124 : vector<8x128xf32>
    %126 = arith.maximumf %122, %125 : vector<8x128xf32>
    %c2_50 = arith.constant 2 : index
    %127 = memref.load %arg4[%c2_50] : memref<16xf32, #tpu.memory_space<smem>>
    %128 = vector.broadcast %127 : f32 to vector<8x128xf32>
    %129 = arith.addf %126, %128 : vector<8x128xf32>
    %cst_51 = arith.constant 0.000000e+00 : f32
    %130 = vector.broadcast %cst_51 : f32 to vector<8x128xf32>
    %131 = arith.maximumf %129, %130 : vector<8x128xf32>
    %c3_52 = arith.constant 3 : index
    %c0_53 = arith.constant 0 : index
    %132 = memref.load %arg3[%c3_52, %c0_53] : memref<16x5xf32, #tpu.memory_space<smem>>
    %133 = vector.broadcast %132 : f32 to vector<8x128xf32>
    %134 = arith.mulf %0, %133 : vector<8x128xf32>
    %c3_54 = arith.constant 3 : index
    %c0_55 = arith.constant 0 : index
    %135 = memref.load %arg3[%c3_54, %c0_55] : memref<16x5xf32, #tpu.memory_space<smem>>
    %136 = vector.broadcast %135 : f32 to vector<8x128xf32>
    %137 = arith.mulf %3, %136 : vector<8x128xf32>
    %c3_56 = arith.constant 3 : index
    %c1_57 = arith.constant 1 : index
    %138 = memref.load %arg3[%c3_56, %c1_57] : memref<16x5xf32, #tpu.memory_space<smem>>
    %139 = vector.broadcast %138 : f32 to vector<8x128xf32>
    %140 = arith.mulf %3, %139 : vector<8x128xf32>
    %141 = arith.addf %134, %140 : vector<8x128xf32>
    %142 = vector.broadcast %138 : f32 to vector<8x128xf32>
    %143 = arith.mulf %1, %142 : vector<8x128xf32>
    %144 = arith.addf %137, %143 : vector<8x128xf32>
    %c3_58 = arith.constant 3 : index
    %c2_59 = arith.constant 2 : index
    %145 = memref.load %arg3[%c3_58, %c2_59] : memref<16x5xf32, #tpu.memory_space<smem>>
    %146 = vector.broadcast %145 : f32 to vector<8x128xf32>
    %147 = arith.mulf %1, %146 : vector<8x128xf32>
    %148 = arith.addf %141, %147 : vector<8x128xf32>
    %149 = vector.broadcast %145 : f32 to vector<8x128xf32>
    %150 = arith.mulf %4, %149 : vector<8x128xf32>
    %151 = arith.addf %144, %150 : vector<8x128xf32>
    %c3_60 = arith.constant 3 : index
    %c3_61 = arith.constant 3 : index
    %152 = memref.load %arg3[%c3_60, %c3_61] : memref<16x5xf32, #tpu.memory_space<smem>>
    %153 = vector.broadcast %152 : f32 to vector<8x128xf32>
    %154 = arith.mulf %4, %153 : vector<8x128xf32>
    %155 = arith.addf %148, %154 : vector<8x128xf32>
    %156 = vector.broadcast %152 : f32 to vector<8x128xf32>
    %157 = arith.mulf %2, %156 : vector<8x128xf32>
    %158 = arith.addf %151, %157 : vector<8x128xf32>
    %c3_62 = arith.constant 3 : index
    %c4_63 = arith.constant 4 : index
    %159 = memref.load %arg3[%c3_62, %c4_63] : memref<16x5xf32, #tpu.memory_space<smem>>
    %160 = vector.broadcast %159 : f32 to vector<8x128xf32>
    %161 = arith.mulf %2, %160 : vector<8x128xf32>
    %162 = arith.addf %155, %161 : vector<8x128xf32>
    %163 = vector.broadcast %159 : f32 to vector<8x128xf32>
    %164 = arith.mulf %5, %163 : vector<8x128xf32>
    %165 = arith.addf %158, %164 : vector<8x128xf32>
    %166 = arith.maximumf %162, %165 : vector<8x128xf32>
    %c3_64 = arith.constant 3 : index
    %167 = memref.load %arg4[%c3_64] : memref<16xf32, #tpu.memory_space<smem>>
    %168 = vector.broadcast %167 : f32 to vector<8x128xf32>
    %169 = arith.addf %166, %168 : vector<8x128xf32>
    %cst_65 = arith.constant 0.000000e+00 : f32
    %170 = vector.broadcast %cst_65 : f32 to vector<8x128xf32>
    %171 = arith.maximumf %169, %170 : vector<8x128xf32>
    %172 = tpu.concatenate %131, %171 in 1 : vector<8x128xf32>, vector<8x128xf32> -> vector<8x256xf32>
    %c256 = arith.constant 256 : index
    %c0_66 = arith.constant 0 : index
    %173 = vector.load %arg5[%c256, %c0_66] : memref<2048x64xbf16, #tpu.memory_space<vmem>>, vector<256x64xbf16>
    %174 = arith.truncf %172 : vector<8x256xf32> to vector<8x256xbf16>
    %cst_67 = arith.constant dense<0.000000e+00> : vector<8x64xf32>
    %175 = tpu.matmul %174, %173, %cst_67 {dimension_numbers = #tpu.dot_dimension_numbers<[1], [0], [0], [1], [0, 0, 1, 1], [], []>} : vector<8x256xbf16>, vector<256x64xbf16>, vector<8x64xf32> -> vector<8x64xf32>
    %176 = arith.addf %91, %175 : vector<8x64xf32>
    %c4_68 = arith.constant 4 : index
    %c0_69 = arith.constant 0 : index
    %177 = memref.load %arg3[%c4_68, %c0_69] : memref<16x5xf32, #tpu.memory_space<smem>>
    %178 = vector.broadcast %177 : f32 to vector<8x128xf32>
    %179 = arith.mulf %0, %178 : vector<8x128xf32>
    %c4_70 = arith.constant 4 : index
    %c0_71 = arith.constant 0 : index
    %180 = memref.load %arg3[%c4_70, %c0_71] : memref<16x5xf32, #tpu.memory_space<smem>>
    %181 = vector.broadcast %180 : f32 to vector<8x128xf32>
    %182 = arith.mulf %3, %181 : vector<8x128xf32>
    %c4_72 = arith.constant 4 : index
    %c1_73 = arith.constant 1 : index
    %183 = memref.load %arg3[%c4_72, %c1_73] : memref<16x5xf32, #tpu.memory_space<smem>>
    %184 = vector.broadcast %183 : f32 to vector<8x128xf32>
    %185 = arith.mulf %3, %184 : vector<8x128xf32>
    %186 = arith.addf %179, %185 : vector<8x128xf32>
    %187 = vector.broadcast %183 : f32 to vector<8x128xf32>
    %188 = arith.mulf %1, %187 : vector<8x128xf32>
    %189 = arith.addf %182, %188 : vector<8x128xf32>
    %c4_74 = arith.constant 4 : index
    %c2_75 = arith.constant 2 : index
    %190 = memref.load %arg3[%c4_74, %c2_75] : memref<16x5xf32, #tpu.memory_space<smem>>
    %191 = vector.broadcast %190 : f32 to vector<8x128xf32>
    %192 = arith.mulf %1, %191 : vector<8x128xf32>
    %193 = arith.addf %186, %192 : vector<8x128xf32>
    %194 = vector.broadcast %190 : f32 to vector<8x128xf32>
    %195 = arith.mulf %4, %194 : vector<8x128xf32>
    %196 = arith.addf %189, %195 : vector<8x128xf32>
    %c4_76 = arith.constant 4 : index
    %c3_77 = arith.constant 3 : index
    %197 = memref.load %arg3[%c4_76, %c3_77] : memref<16x5xf32, #tpu.memory_space<smem>>
    %198 = vector.broadcast %197 : f32 to vector<8x128xf32>
    %199 = arith.mulf %4, %198 : vector<8x128xf32>
    %200 = arith.addf %193, %199 : vector<8x128xf32>
    %201 = vector.broadcast %197 : f32 to vector<8x128xf32>
    %202 = arith.mulf %2, %201 : vector<8x128xf32>
    %203 = arith.addf %196, %202 : vector<8x128xf32>
    %c4_78 = arith.constant 4 : index
    %c4_79 = arith.constant 4 : index
    %204 = memref.load %arg3[%c4_78, %c4_79] : memref<16x5xf32, #tpu.memory_space<smem>>
    %205 = vector.broadcast %204 : f32 to vector<8x128xf32>
    %206 = arith.mulf %2, %205 : vector<8x128xf32>
    %207 = arith.addf %200, %206 : vector<8x128xf32>
    %208 = vector.broadcast %204 : f32 to vector<8x128xf32>
    %209 = arith.mulf %5, %208 : vector<8x128xf32>
    %210 = arith.addf %203, %209 : vector<8x128xf32>
    %211 = arith.maximumf %207, %210 : vector<8x128xf32>
    %c4_80 = arith.constant 4 : index
    %212 = memref.load %arg4[%c4_80] : memref<16xf32, #tpu.memory_space<smem>>
    %213 = vector.broadcast %212 : f32 to vector<8x128xf32>
    %214 = arith.addf %211, %213 : vector<8x128xf32>
    %cst_81 = arith.constant 0.000000e+00 : f32
    %215 = vector.broadcast %cst_81 : f32 to vector<8x128xf32>
    %216 = arith.maximumf %214, %215 : vector<8x128xf32>
    %c5 = arith.constant 5 : index
    %c0_82 = arith.constant 0 : index
    %217 = memref.load %arg3[%c5, %c0_82] : memref<16x5xf32, #tpu.memory_space<smem>>
    %218 = vector.broadcast %217 : f32 to vector<8x128xf32>
    %219 = arith.mulf %0, %218 : vector<8x128xf32>
    %c5_83 = arith.constant 5 : index
    %c0_84 = arith.constant 0 : index
    %220 = memref.load %arg3[%c5_83, %c0_84] : memref<16x5xf32, #tpu.memory_space<smem>>
    %221 = vector.broadcast %220 : f32 to vector<8x128xf32>
    %222 = arith.mulf %3, %221 : vector<8x128xf32>
    %c5_85 = arith.constant 5 : index
    %c1_86 = arith.constant 1 : index
    %223 = memref.load %arg3[%c5_85, %c1_86] : memref<16x5xf32, #tpu.memory_space<smem>>
    %224 = vector.broadcast %223 : f32 to vector<8x128xf32>
    %225 = arith.mulf %3, %224 : vector<8x128xf32>
    %226 = arith.addf %219, %225 : vector<8x128xf32>
    %227 = vector.broadcast %223 : f32 to vector<8x128xf32>
    %228 = arith.mulf %1, %227 : vector<8x128xf32>
    %229 = arith.addf %222, %228 : vector<8x128xf32>
    %c5_87 = arith.constant 5 : index
    %c2_88 = arith.constant 2 : index
    %230 = memref.load %arg3[%c5_87, %c2_88] : memref<16x5xf32, #tpu.memory_space<smem>>
    %231 = vector.broadcast %230 : f32 to vector<8x128xf32>
    %232 = arith.mulf %1, %231 : vector<8x128xf32>
    %233 = arith.addf %226, %232 : vector<8x128xf32>
    %234 = vector.broadcast %230 : f32 to vector<8x128xf32>
    %235 = arith.mulf %4, %234 : vector<8x128xf32>
    %236 = arith.addf %229, %235 : vector<8x128xf32>
    %c5_89 = arith.constant 5 : index
    %c3_90 = arith.constant 3 : index
    %237 = memref.load %arg3[%c5_89, %c3_90] : memref<16x5xf32, #tpu.memory_space<smem>>
    %238 = vector.broadcast %237 : f32 to vector<8x128xf32>
    %239 = arith.mulf %4, %238 : vector<8x128xf32>
    %240 = arith.addf %233, %239 : vector<8x128xf32>
    %241 = vector.broadcast %237 : f32 to vector<8x128xf32>
    %242 = arith.mulf %2, %241 : vector<8x128xf32>
    %243 = arith.addf %236, %242 : vector<8x128xf32>
    %c5_91 = arith.constant 5 : index
    %c4_92 = arith.constant 4 : index
    %244 = memref.load %arg3[%c5_91, %c4_92] : memref<16x5xf32, #tpu.memory_space<smem>>
    %245 = vector.broadcast %244 : f32 to vector<8x128xf32>
    %246 = arith.mulf %2, %245 : vector<8x128xf32>
    %247 = arith.addf %240, %246 : vector<8x128xf32>
    %248 = vector.broadcast %244 : f32 to vector<8x128xf32>
    %249 = arith.mulf %5, %248 : vector<8x128xf32>
    %250 = arith.addf %243, %249 : vector<8x128xf32>
    %251 = arith.maximumf %247, %250 : vector<8x128xf32>
    %c5_93 = arith.constant 5 : index
    %252 = memref.load %arg4[%c5_93] : memref<16xf32, #tpu.memory_space<smem>>
    %253 = vector.broadcast %252 : f32 to vector<8x128xf32>
    %254 = arith.addf %251, %253 : vector<8x128xf32>
    %cst_94 = arith.constant 0.000000e+00 : f32
    %255 = vector.broadcast %cst_94 : f32 to vector<8x128xf32>
    %256 = arith.maximumf %254, %255 : vector<8x128xf32>
    %257 = tpu.concatenate %216, %256 in 1 : vector<8x128xf32>, vector<8x128xf32> -> vector<8x256xf32>
    %c512 = arith.constant 512 : index
    %c0_95 = arith.constant 0 : index
    %258 = vector.load %arg5[%c512, %c0_95] : memref<2048x64xbf16, #tpu.memory_space<vmem>>, vector<256x64xbf16>
    %259 = arith.truncf %257 : vector<8x256xf32> to vector<8x256xbf16>
    %cst_96 = arith.constant dense<0.000000e+00> : vector<8x64xf32>
    %260 = tpu.matmul %259, %258, %cst_96 {dimension_numbers = #tpu.dot_dimension_numbers<[1], [0], [0], [1], [0, 0, 1, 1], [], []>} : vector<8x256xbf16>, vector<256x64xbf16>, vector<8x64xf32> -> vector<8x64xf32>
    %261 = arith.addf %176, %260 : vector<8x64xf32>
    %c6 = arith.constant 6 : index
    %c0_97 = arith.constant 0 : index
    %262 = memref.load %arg3[%c6, %c0_97] : memref<16x5xf32, #tpu.memory_space<smem>>
    %263 = vector.broadcast %262 : f32 to vector<8x128xf32>
    %264 = arith.mulf %0, %263 : vector<8x128xf32>
    %c6_98 = arith.constant 6 : index
    %c0_99 = arith.constant 0 : index
    %265 = memref.load %arg3[%c6_98, %c0_99] : memref<16x5xf32, #tpu.memory_space<smem>>
    %266 = vector.broadcast %265 : f32 to vector<8x128xf32>
    %267 = arith.mulf %3, %266 : vector<8x128xf32>
    %c6_100 = arith.constant 6 : index
    %c1_101 = arith.constant 1 : index
    %268 = memref.load %arg3[%c6_100, %c1_101] : memref<16x5xf32, #tpu.memory_space<smem>>
    %269 = vector.broadcast %268 : f32 to vector<8x128xf32>
    %270 = arith.mulf %3, %269 : vector<8x128xf32>
    %271 = arith.addf %264, %270 : vector<8x128xf32>
    %272 = vector.broadcast %268 : f32 to vector<8x128xf32>
    %273 = arith.mulf %1, %272 : vector<8x128xf32>
    %274 = arith.addf %267, %273 : vector<8x128xf32>
    %c6_102 = arith.constant 6 : index
    %c2_103 = arith.constant 2 : index
    %275 = memref.load %arg3[%c6_102, %c2_103] : memref<16x5xf32, #tpu.memory_space<smem>>
    %276 = vector.broadcast %275 : f32 to vector<8x128xf32>
    %277 = arith.mulf %1, %276 : vector<8x128xf32>
    %278 = arith.addf %271, %277 : vector<8x128xf32>
    %279 = vector.broadcast %275 : f32 to vector<8x128xf32>
    %280 = arith.mulf %4, %279 : vector<8x128xf32>
    %281 = arith.addf %274, %280 : vector<8x128xf32>
    %c6_104 = arith.constant 6 : index
    %c3_105 = arith.constant 3 : index
    %282 = memref.load %arg3[%c6_104, %c3_105] : memref<16x5xf32, #tpu.memory_space<smem>>
    %283 = vector.broadcast %282 : f32 to vector<8x128xf32>
    %284 = arith.mulf %4, %283 : vector<8x128xf32>
    %285 = arith.addf %278, %284 : vector<8x128xf32>
    %286 = vector.broadcast %282 : f32 to vector<8x128xf32>
    %287 = arith.mulf %2, %286 : vector<8x128xf32>
    %288 = arith.addf %281, %287 : vector<8x128xf32>
    %c6_106 = arith.constant 6 : index
    %c4_107 = arith.constant 4 : index
    %289 = memref.load %arg3[%c6_106, %c4_107] : memref<16x5xf32, #tpu.memory_space<smem>>
    %290 = vector.broadcast %289 : f32 to vector<8x128xf32>
    %291 = arith.mulf %2, %290 : vector<8x128xf32>
    %292 = arith.addf %285, %291 : vector<8x128xf32>
    %293 = vector.broadcast %289 : f32 to vector<8x128xf32>
    %294 = arith.mulf %5, %293 : vector<8x128xf32>
    %295 = arith.addf %288, %294 : vector<8x128xf32>
    %296 = arith.maximumf %292, %295 : vector<8x128xf32>
    %c6_108 = arith.constant 6 : index
    %297 = memref.load %arg4[%c6_108] : memref<16xf32, #tpu.memory_space<smem>>
    %298 = vector.broadcast %297 : f32 to vector<8x128xf32>
    %299 = arith.addf %296, %298 : vector<8x128xf32>
    %cst_109 = arith.constant 0.000000e+00 : f32
    %300 = vector.broadcast %cst_109 : f32 to vector<8x128xf32>
    %301 = arith.maximumf %299, %300 : vector<8x128xf32>
    %c7 = arith.constant 7 : index
    %c0_110 = arith.constant 0 : index
    %302 = memref.load %arg3[%c7, %c0_110] : memref<16x5xf32, #tpu.memory_space<smem>>
    %303 = vector.broadcast %302 : f32 to vector<8x128xf32>
    %304 = arith.mulf %0, %303 : vector<8x128xf32>
    %c7_111 = arith.constant 7 : index
    %c0_112 = arith.constant 0 : index
    %305 = memref.load %arg3[%c7_111, %c0_112] : memref<16x5xf32, #tpu.memory_space<smem>>
    %306 = vector.broadcast %305 : f32 to vector<8x128xf32>
    %307 = arith.mulf %3, %306 : vector<8x128xf32>
    %c7_113 = arith.constant 7 : index
    %c1_114 = arith.constant 1 : index
    %308 = memref.load %arg3[%c7_113, %c1_114] : memref<16x5xf32, #tpu.memory_space<smem>>
    %309 = vector.broadcast %308 : f32 to vector<8x128xf32>
    %310 = arith.mulf %3, %309 : vector<8x128xf32>
    %311 = arith.addf %304, %310 : vector<8x128xf32>
    %312 = vector.broadcast %308 : f32 to vector<8x128xf32>
    %313 = arith.mulf %1, %312 : vector<8x128xf32>
    %314 = arith.addf %307, %313 : vector<8x128xf32>
    %c7_115 = arith.constant 7 : index
    %c2_116 = arith.constant 2 : index
    %315 = memref.load %arg3[%c7_115, %c2_116] : memref<16x5xf32, #tpu.memory_space<smem>>
    %316 = vector.broadcast %315 : f32 to vector<8x128xf32>
    %317 = arith.mulf %1, %316 : vector<8x128xf32>
    %318 = arith.addf %311, %317 : vector<8x128xf32>
    %319 = vector.broadcast %315 : f32 to vector<8x128xf32>
    %320 = arith.mulf %4, %319 : vector<8x128xf32>
    %321 = arith.addf %314, %320 : vector<8x128xf32>
    %c7_117 = arith.constant 7 : index
    %c3_118 = arith.constant 3 : index
    %322 = memref.load %arg3[%c7_117, %c3_118] : memref<16x5xf32, #tpu.memory_space<smem>>
    %323 = vector.broadcast %322 : f32 to vector<8x128xf32>
    %324 = arith.mulf %4, %323 : vector<8x128xf32>
    %325 = arith.addf %318, %324 : vector<8x128xf32>
    %326 = vector.broadcast %322 : f32 to vector<8x128xf32>
    %327 = arith.mulf %2, %326 : vector<8x128xf32>
    %328 = arith.addf %321, %327 : vector<8x128xf32>
    %c7_119 = arith.constant 7 : index
    %c4_120 = arith.constant 4 : index
    %329 = memref.load %arg3[%c7_119, %c4_120] : memref<16x5xf32, #tpu.memory_space<smem>>
    %330 = vector.broadcast %329 : f32 to vector<8x128xf32>
    %331 = arith.mulf %2, %330 : vector<8x128xf32>
    %332 = arith.addf %325, %331 : vector<8x128xf32>
    %333 = vector.broadcast %329 : f32 to vector<8x128xf32>
    %334 = arith.mulf %5, %333 : vector<8x128xf32>
    %335 = arith.addf %328, %334 : vector<8x128xf32>
    %336 = arith.maximumf %332, %335 : vector<8x128xf32>
    %c7_121 = arith.constant 7 : index
    %337 = memref.load %arg4[%c7_121] : memref<16xf32, #tpu.memory_space<smem>>
    %338 = vector.broadcast %337 : f32 to vector<8x128xf32>
    %339 = arith.addf %336, %338 : vector<8x128xf32>
    %cst_122 = arith.constant 0.000000e+00 : f32
    %340 = vector.broadcast %cst_122 : f32 to vector<8x128xf32>
    %341 = arith.maximumf %339, %340 : vector<8x128xf32>
    %342 = tpu.concatenate %301, %341 in 1 : vector<8x128xf32>, vector<8x128xf32> -> vector<8x256xf32>
    %c768 = arith.constant 768 : index
    %c0_123 = arith.constant 0 : index
    %343 = vector.load %arg5[%c768, %c0_123] : memref<2048x64xbf16, #tpu.memory_space<vmem>>, vector<256x64xbf16>
    %344 = arith.truncf %342 : vector<8x256xf32> to vector<8x256xbf16>
    %cst_124 = arith.constant dense<0.000000e+00> : vector<8x64xf32>
    %345 = tpu.matmul %344, %343, %cst_124 {dimension_numbers = #tpu.dot_dimension_numbers<[1], [0], [0], [1], [0, 0, 1, 1], [], []>} : vector<8x256xbf16>, vector<256x64xbf16>, vector<8x64xf32> -> vector<8x64xf32>
    %346 = arith.addf %261, %345 : vector<8x64xf32>
    %c8 = arith.constant 8 : index
    %c0_125 = arith.constant 0 : index
    %347 = memref.load %arg3[%c8, %c0_125] : memref<16x5xf32, #tpu.memory_space<smem>>
    %348 = vector.broadcast %347 : f32 to vector<8x128xf32>
    %349 = arith.mulf %0, %348 : vector<8x128xf32>
    %c8_126 = arith.constant 8 : index
    %c0_127 = arith.constant 0 : index
    %350 = memref.load %arg3[%c8_126, %c0_127] : memref<16x5xf32, #tpu.memory_space<smem>>
    %351 = vector.broadcast %350 : f32 to vector<8x128xf32>
    %352 = arith.mulf %3, %351 : vector<8x128xf32>
    %c8_128 = arith.constant 8 : index
    %c1_129 = arith.constant 1 : index
    %353 = memref.load %arg3[%c8_128, %c1_129] : memref<16x5xf32, #tpu.memory_space<smem>>
    %354 = vector.broadcast %353 : f32 to vector<8x128xf32>
    %355 = arith.mulf %3, %354 : vector<8x128xf32>
    %356 = arith.addf %349, %355 : vector<8x128xf32>
    %357 = vector.broadcast %353 : f32 to vector<8x128xf32>
    %358 = arith.mulf %1, %357 : vector<8x128xf32>
    %359 = arith.addf %352, %358 : vector<8x128xf32>
    %c8_130 = arith.constant 8 : index
    %c2_131 = arith.constant 2 : index
    %360 = memref.load %arg3[%c8_130, %c2_131] : memref<16x5xf32, #tpu.memory_space<smem>>
    %361 = vector.broadcast %360 : f32 to vector<8x128xf32>
    %362 = arith.mulf %1, %361 : vector<8x128xf32>
    %363 = arith.addf %356, %362 : vector<8x128xf32>
    %364 = vector.broadcast %360 : f32 to vector<8x128xf32>
    %365 = arith.mulf %4, %364 : vector<8x128xf32>
    %366 = arith.addf %359, %365 : vector<8x128xf32>
    %c8_132 = arith.constant 8 : index
    %c3_133 = arith.constant 3 : index
    %367 = memref.load %arg3[%c8_132, %c3_133] : memref<16x5xf32, #tpu.memory_space<smem>>
    %368 = vector.broadcast %367 : f32 to vector<8x128xf32>
    %369 = arith.mulf %4, %368 : vector<8x128xf32>
    %370 = arith.addf %363, %369 : vector<8x128xf32>
    %371 = vector.broadcast %367 : f32 to vector<8x128xf32>
    %372 = arith.mulf %2, %371 : vector<8x128xf32>
    %373 = arith.addf %366, %372 : vector<8x128xf32>
    %c8_134 = arith.constant 8 : index
    %c4_135 = arith.constant 4 : index
    %374 = memref.load %arg3[%c8_134, %c4_135] : memref<16x5xf32, #tpu.memory_space<smem>>
    %375 = vector.broadcast %374 : f32 to vector<8x128xf32>
    %376 = arith.mulf %2, %375 : vector<8x128xf32>
    %377 = arith.addf %370, %376 : vector<8x128xf32>
    %378 = vector.broadcast %374 : f32 to vector<8x128xf32>
    %379 = arith.mulf %5, %378 : vector<8x128xf32>
    %380 = arith.addf %373, %379 : vector<8x128xf32>
    %381 = arith.maximumf %377, %380 : vector<8x128xf32>
    %c8_136 = arith.constant 8 : index
    %382 = memref.load %arg4[%c8_136] : memref<16xf32, #tpu.memory_space<smem>>
    %383 = vector.broadcast %382 : f32 to vector<8x128xf32>
    %384 = arith.addf %381, %383 : vector<8x128xf32>
    %cst_137 = arith.constant 0.000000e+00 : f32
    %385 = vector.broadcast %cst_137 : f32 to vector<8x128xf32>
    %386 = arith.maximumf %384, %385 : vector<8x128xf32>
    %c9 = arith.constant 9 : index
    %c0_138 = arith.constant 0 : index
    %387 = memref.load %arg3[%c9, %c0_138] : memref<16x5xf32, #tpu.memory_space<smem>>
    %388 = vector.broadcast %387 : f32 to vector<8x128xf32>
    %389 = arith.mulf %0, %388 : vector<8x128xf32>
    %c9_139 = arith.constant 9 : index
    %c0_140 = arith.constant 0 : index
    %390 = memref.load %arg3[%c9_139, %c0_140] : memref<16x5xf32, #tpu.memory_space<smem>>
    %391 = vector.broadcast %390 : f32 to vector<8x128xf32>
    %392 = arith.mulf %3, %391 : vector<8x128xf32>
    %c9_141 = arith.constant 9 : index
    %c1_142 = arith.constant 1 : index
    %393 = memref.load %arg3[%c9_141, %c1_142] : memref<16x5xf32, #tpu.memory_space<smem>>
    %394 = vector.broadcast %393 : f32 to vector<8x128xf32>
    %395 = arith.mulf %3, %394 : vector<8x128xf32>
    %396 = arith.addf %389, %395 : vector<8x128xf32>
    %397 = vector.broadcast %393 : f32 to vector<8x128xf32>
    %398 = arith.mulf %1, %397 : vector<8x128xf32>
    %399 = arith.addf %392, %398 : vector<8x128xf32>
    %c9_143 = arith.constant 9 : index
    %c2_144 = arith.constant 2 : index
    %400 = memref.load %arg3[%c9_143, %c2_144] : memref<16x5xf32, #tpu.memory_space<smem>>
    %401 = vector.broadcast %400 : f32 to vector<8x128xf32>
    %402 = arith.mulf %1, %401 : vector<8x128xf32>
    %403 = arith.addf %396, %402 : vector<8x128xf32>
    %404 = vector.broadcast %400 : f32 to vector<8x128xf32>
    %405 = arith.mulf %4, %404 : vector<8x128xf32>
    %406 = arith.addf %399, %405 : vector<8x128xf32>
    %c9_145 = arith.constant 9 : index
    %c3_146 = arith.constant 3 : index
    %407 = memref.load %arg3[%c9_145, %c3_146] : memref<16x5xf32, #tpu.memory_space<smem>>
    %408 = vector.broadcast %407 : f32 to vector<8x128xf32>
    %409 = arith.mulf %4, %408 : vector<8x128xf32>
    %410 = arith.addf %403, %409 : vector<8x128xf32>
    %411 = vector.broadcast %407 : f32 to vector<8x128xf32>
    %412 = arith.mulf %2, %411 : vector<8x128xf32>
    %413 = arith.addf %406, %412 : vector<8x128xf32>
    %c9_147 = arith.constant 9 : index
    %c4_148 = arith.constant 4 : index
    %414 = memref.load %arg3[%c9_147, %c4_148] : memref<16x5xf32, #tpu.memory_space<smem>>
    %415 = vector.broadcast %414 : f32 to vector<8x128xf32>
    %416 = arith.mulf %2, %415 : vector<8x128xf32>
    %417 = arith.addf %410, %416 : vector<8x128xf32>
    %418 = vector.broadcast %414 : f32 to vector<8x128xf32>
    %419 = arith.mulf %5, %418 : vector<8x128xf32>
    %420 = arith.addf %413, %419 : vector<8x128xf32>
    %421 = arith.maximumf %417, %420 : vector<8x128xf32>
    %c9_149 = arith.constant 9 : index
    %422 = memref.load %arg4[%c9_149] : memref<16xf32, #tpu.memory_space<smem>>
    %423 = vector.broadcast %422 : f32 to vector<8x128xf32>
    %424 = arith.addf %421, %423 : vector<8x128xf32>
    %cst_150 = arith.constant 0.000000e+00 : f32
    %425 = vector.broadcast %cst_150 : f32 to vector<8x128xf32>
    %426 = arith.maximumf %424, %425 : vector<8x128xf32>
    %427 = tpu.concatenate %386, %426 in 1 : vector<8x128xf32>, vector<8x128xf32> -> vector<8x256xf32>
    %c1024 = arith.constant 1024 : index
    %c0_151 = arith.constant 0 : index
    %428 = vector.load %arg5[%c1024, %c0_151] : memref<2048x64xbf16, #tpu.memory_space<vmem>>, vector<256x64xbf16>
    %429 = arith.truncf %427 : vector<8x256xf32> to vector<8x256xbf16>
    %cst_152 = arith.constant dense<0.000000e+00> : vector<8x64xf32>
    %430 = tpu.matmul %429, %428, %cst_152 {dimension_numbers = #tpu.dot_dimension_numbers<[1], [0], [0], [1], [0, 0, 1, 1], [], []>} : vector<8x256xbf16>, vector<256x64xbf16>, vector<8x64xf32> -> vector<8x64xf32>
    %431 = arith.addf %346, %430 : vector<8x64xf32>
    %c10 = arith.constant 10 : index
    %c0_153 = arith.constant 0 : index
    %432 = memref.load %arg3[%c10, %c0_153] : memref<16x5xf32, #tpu.memory_space<smem>>
    %433 = vector.broadcast %432 : f32 to vector<8x128xf32>
    %434 = arith.mulf %0, %433 : vector<8x128xf32>
    %c10_154 = arith.constant 10 : index
    %c0_155 = arith.constant 0 : index
    %435 = memref.load %arg3[%c10_154, %c0_155] : memref<16x5xf32, #tpu.memory_space<smem>>
    %436 = vector.broadcast %435 : f32 to vector<8x128xf32>
    %437 = arith.mulf %3, %436 : vector<8x128xf32>
    %c10_156 = arith.constant 10 : index
    %c1_157 = arith.constant 1 : index
    %438 = memref.load %arg3[%c10_156, %c1_157] : memref<16x5xf32, #tpu.memory_space<smem>>
    %439 = vector.broadcast %438 : f32 to vector<8x128xf32>
    %440 = arith.mulf %3, %439 : vector<8x128xf32>
    %441 = arith.addf %434, %440 : vector<8x128xf32>
    %442 = vector.broadcast %438 : f32 to vector<8x128xf32>
    %443 = arith.mulf %1, %442 : vector<8x128xf32>
    %444 = arith.addf %437, %443 : vector<8x128xf32>
    %c10_158 = arith.constant 10 : index
    %c2_159 = arith.constant 2 : index
    %445 = memref.load %arg3[%c10_158, %c2_159] : memref<16x5xf32, #tpu.memory_space<smem>>
    %446 = vector.broadcast %445 : f32 to vector<8x128xf32>
    %447 = arith.mulf %1, %446 : vector<8x128xf32>
    %448 = arith.addf %441, %447 : vector<8x128xf32>
    %449 = vector.broadcast %445 : f32 to vector<8x128xf32>
    %450 = arith.mulf %4, %449 : vector<8x128xf32>
    %451 = arith.addf %444, %450 : vector<8x128xf32>
    %c10_160 = arith.constant 10 : index
    %c3_161 = arith.constant 3 : index
    %452 = memref.load %arg3[%c10_160, %c3_161] : memref<16x5xf32, #tpu.memory_space<smem>>
    %453 = vector.broadcast %452 : f32 to vector<8x128xf32>
    %454 = arith.mulf %4, %453 : vector<8x128xf32>
    %455 = arith.addf %448, %454 : vector<8x128xf32>
    %456 = vector.broadcast %452 : f32 to vector<8x128xf32>
    %457 = arith.mulf %2, %456 : vector<8x128xf32>
    %458 = arith.addf %451, %457 : vector<8x128xf32>
    %c10_162 = arith.constant 10 : index
    %c4_163 = arith.constant 4 : index
    %459 = memref.load %arg3[%c10_162, %c4_163] : memref<16x5xf32, #tpu.memory_space<smem>>
    %460 = vector.broadcast %459 : f32 to vector<8x128xf32>
    %461 = arith.mulf %2, %460 : vector<8x128xf32>
    %462 = arith.addf %455, %461 : vector<8x128xf32>
    %463 = vector.broadcast %459 : f32 to vector<8x128xf32>
    %464 = arith.mulf %5, %463 : vector<8x128xf32>
    %465 = arith.addf %458, %464 : vector<8x128xf32>
    %466 = arith.maximumf %462, %465 : vector<8x128xf32>
    %c10_164 = arith.constant 10 : index
    %467 = memref.load %arg4[%c10_164] : memref<16xf32, #tpu.memory_space<smem>>
    %468 = vector.broadcast %467 : f32 to vector<8x128xf32>
    %469 = arith.addf %466, %468 : vector<8x128xf32>
    %cst_165 = arith.constant 0.000000e+00 : f32
    %470 = vector.broadcast %cst_165 : f32 to vector<8x128xf32>
    %471 = arith.maximumf %469, %470 : vector<8x128xf32>
    %c11 = arith.constant 11 : index
    %c0_166 = arith.constant 0 : index
    %472 = memref.load %arg3[%c11, %c0_166] : memref<16x5xf32, #tpu.memory_space<smem>>
    %473 = vector.broadcast %472 : f32 to vector<8x128xf32>
    %474 = arith.mulf %0, %473 : vector<8x128xf32>
    %c11_167 = arith.constant 11 : index
    %c0_168 = arith.constant 0 : index
    %475 = memref.load %arg3[%c11_167, %c0_168] : memref<16x5xf32, #tpu.memory_space<smem>>
    %476 = vector.broadcast %475 : f32 to vector<8x128xf32>
    %477 = arith.mulf %3, %476 : vector<8x128xf32>
    %c11_169 = arith.constant 11 : index
    %c1_170 = arith.constant 1 : index
    %478 = memref.load %arg3[%c11_169, %c1_170] : memref<16x5xf32, #tpu.memory_space<smem>>
    %479 = vector.broadcast %478 : f32 to vector<8x128xf32>
    %480 = arith.mulf %3, %479 : vector<8x128xf32>
    %481 = arith.addf %474, %480 : vector<8x128xf32>
    %482 = vector.broadcast %478 : f32 to vector<8x128xf32>
    %483 = arith.mulf %1, %482 : vector<8x128xf32>
    %484 = arith.addf %477, %483 : vector<8x128xf32>
    %c11_171 = arith.constant 11 : index
    %c2_172 = arith.constant 2 : index
    %485 = memref.load %arg3[%c11_171, %c2_172] : memref<16x5xf32, #tpu.memory_space<smem>>
    %486 = vector.broadcast %485 : f32 to vector<8x128xf32>
    %487 = arith.mulf %1, %486 : vector<8x128xf32>
    %488 = arith.addf %481, %487 : vector<8x128xf32>
    %489 = vector.broadcast %485 : f32 to vector<8x128xf32>
    %490 = arith.mulf %4, %489 : vector<8x128xf32>
    %491 = arith.addf %484, %490 : vector<8x128xf32>
    %c11_173 = arith.constant 11 : index
    %c3_174 = arith.constant 3 : index
    %492 = memref.load %arg3[%c11_173, %c3_174] : memref<16x5xf32, #tpu.memory_space<smem>>
    %493 = vector.broadcast %492 : f32 to vector<8x128xf32>
    %494 = arith.mulf %4, %493 : vector<8x128xf32>
    %495 = arith.addf %488, %494 : vector<8x128xf32>
    %496 = vector.broadcast %492 : f32 to vector<8x128xf32>
    %497 = arith.mulf %2, %496 : vector<8x128xf32>
    %498 = arith.addf %491, %497 : vector<8x128xf32>
    %c11_175 = arith.constant 11 : index
    %c4_176 = arith.constant 4 : index
    %499 = memref.load %arg3[%c11_175, %c4_176] : memref<16x5xf32, #tpu.memory_space<smem>>
    %500 = vector.broadcast %499 : f32 to vector<8x128xf32>
    %501 = arith.mulf %2, %500 : vector<8x128xf32>
    %502 = arith.addf %495, %501 : vector<8x128xf32>
    %503 = vector.broadcast %499 : f32 to vector<8x128xf32>
    %504 = arith.mulf %5, %503 : vector<8x128xf32>
    %505 = arith.addf %498, %504 : vector<8x128xf32>
    %506 = arith.maximumf %502, %505 : vector<8x128xf32>
    %c11_177 = arith.constant 11 : index
    %507 = memref.load %arg4[%c11_177] : memref<16xf32, #tpu.memory_space<smem>>
    %508 = vector.broadcast %507 : f32 to vector<8x128xf32>
    %509 = arith.addf %506, %508 : vector<8x128xf32>
    %cst_178 = arith.constant 0.000000e+00 : f32
    %510 = vector.broadcast %cst_178 : f32 to vector<8x128xf32>
    %511 = arith.maximumf %509, %510 : vector<8x128xf32>
    %512 = tpu.concatenate %471, %511 in 1 : vector<8x128xf32>, vector<8x128xf32> -> vector<8x256xf32>
    %c1280 = arith.constant 1280 : index
    %c0_179 = arith.constant 0 : index
    %513 = vector.load %arg5[%c1280, %c0_179] : memref<2048x64xbf16, #tpu.memory_space<vmem>>, vector<256x64xbf16>
    %514 = arith.truncf %512 : vector<8x256xf32> to vector<8x256xbf16>
    %cst_180 = arith.constant dense<0.000000e+00> : vector<8x64xf32>
    %515 = tpu.matmul %514, %513, %cst_180 {dimension_numbers = #tpu.dot_dimension_numbers<[1], [0], [0], [1], [0, 0, 1, 1], [], []>} : vector<8x256xbf16>, vector<256x64xbf16>, vector<8x64xf32> -> vector<8x64xf32>
    %516 = arith.addf %431, %515 : vector<8x64xf32>
    %c12 = arith.constant 12 : index
    %c0_181 = arith.constant 0 : index
    %517 = memref.load %arg3[%c12, %c0_181] : memref<16x5xf32, #tpu.memory_space<smem>>
    %518 = vector.broadcast %517 : f32 to vector<8x128xf32>
    %519 = arith.mulf %0, %518 : vector<8x128xf32>
    %c12_182 = arith.constant 12 : index
    %c0_183 = arith.constant 0 : index
    %520 = memref.load %arg3[%c12_182, %c0_183] : memref<16x5xf32, #tpu.memory_space<smem>>
    %521 = vector.broadcast %520 : f32 to vector<8x128xf32>
    %522 = arith.mulf %3, %521 : vector<8x128xf32>
    %c12_184 = arith.constant 12 : index
    %c1_185 = arith.constant 1 : index
    %523 = memref.load %arg3[%c12_184, %c1_185] : memref<16x5xf32, #tpu.memory_space<smem>>
    %524 = vector.broadcast %523 : f32 to vector<8x128xf32>
    %525 = arith.mulf %3, %524 : vector<8x128xf32>
    %526 = arith.addf %519, %525 : vector<8x128xf32>
    %527 = vector.broadcast %523 : f32 to vector<8x128xf32>
    %528 = arith.mulf %1, %527 : vector<8x128xf32>
    %529 = arith.addf %522, %528 : vector<8x128xf32>
    %c12_186 = arith.constant 12 : index
    %c2_187 = arith.constant 2 : index
    %530 = memref.load %arg3[%c12_186, %c2_187] : memref<16x5xf32, #tpu.memory_space<smem>>
    %531 = vector.broadcast %530 : f32 to vector<8x128xf32>
    %532 = arith.mulf %1, %531 : vector<8x128xf32>
    %533 = arith.addf %526, %532 : vector<8x128xf32>
    %534 = vector.broadcast %530 : f32 to vector<8x128xf32>
    %535 = arith.mulf %4, %534 : vector<8x128xf32>
    %536 = arith.addf %529, %535 : vector<8x128xf32>
    %c12_188 = arith.constant 12 : index
    %c3_189 = arith.constant 3 : index
    %537 = memref.load %arg3[%c12_188, %c3_189] : memref<16x5xf32, #tpu.memory_space<smem>>
    %538 = vector.broadcast %537 : f32 to vector<8x128xf32>
    %539 = arith.mulf %4, %538 : vector<8x128xf32>
    %540 = arith.addf %533, %539 : vector<8x128xf32>
    %541 = vector.broadcast %537 : f32 to vector<8x128xf32>
    %542 = arith.mulf %2, %541 : vector<8x128xf32>
    %543 = arith.addf %536, %542 : vector<8x128xf32>
    %c12_190 = arith.constant 12 : index
    %c4_191 = arith.constant 4 : index
    %544 = memref.load %arg3[%c12_190, %c4_191] : memref<16x5xf32, #tpu.memory_space<smem>>
    %545 = vector.broadcast %544 : f32 to vector<8x128xf32>
    %546 = arith.mulf %2, %545 : vector<8x128xf32>
    %547 = arith.addf %540, %546 : vector<8x128xf32>
    %548 = vector.broadcast %544 : f32 to vector<8x128xf32>
    %549 = arith.mulf %5, %548 : vector<8x128xf32>
    %550 = arith.addf %543, %549 : vector<8x128xf32>
    %551 = arith.maximumf %547, %550 : vector<8x128xf32>
    %c12_192 = arith.constant 12 : index
    %552 = memref.load %arg4[%c12_192] : memref<16xf32, #tpu.memory_space<smem>>
    %553 = vector.broadcast %552 : f32 to vector<8x128xf32>
    %554 = arith.addf %551, %553 : vector<8x128xf32>
    %cst_193 = arith.constant 0.000000e+00 : f32
    %555 = vector.broadcast %cst_193 : f32 to vector<8x128xf32>
    %556 = arith.maximumf %554, %555 : vector<8x128xf32>
    %c13 = arith.constant 13 : index
    %c0_194 = arith.constant 0 : index
    %557 = memref.load %arg3[%c13, %c0_194] : memref<16x5xf32, #tpu.memory_space<smem>>
    %558 = vector.broadcast %557 : f32 to vector<8x128xf32>
    %559 = arith.mulf %0, %558 : vector<8x128xf32>
    %c13_195 = arith.constant 13 : index
    %c0_196 = arith.constant 0 : index
    %560 = memref.load %arg3[%c13_195, %c0_196] : memref<16x5xf32, #tpu.memory_space<smem>>
    %561 = vector.broadcast %560 : f32 to vector<8x128xf32>
    %562 = arith.mulf %3, %561 : vector<8x128xf32>
    %c13_197 = arith.constant 13 : index
    %c1_198 = arith.constant 1 : index
    %563 = memref.load %arg3[%c13_197, %c1_198] : memref<16x5xf32, #tpu.memory_space<smem>>
    %564 = vector.broadcast %563 : f32 to vector<8x128xf32>
    %565 = arith.mulf %3, %564 : vector<8x128xf32>
    %566 = arith.addf %559, %565 : vector<8x128xf32>
    %567 = vector.broadcast %563 : f32 to vector<8x128xf32>
    %568 = arith.mulf %1, %567 : vector<8x128xf32>
    %569 = arith.addf %562, %568 : vector<8x128xf32>
    %c13_199 = arith.constant 13 : index
    %c2_200 = arith.constant 2 : index
    %570 = memref.load %arg3[%c13_199, %c2_200] : memref<16x5xf32, #tpu.memory_space<smem>>
    %571 = vector.broadcast %570 : f32 to vector<8x128xf32>
    %572 = arith.mulf %1, %571 : vector<8x128xf32>
    %573 = arith.addf %566, %572 : vector<8x128xf32>
    %574 = vector.broadcast %570 : f32 to vector<8x128xf32>
    %575 = arith.mulf %4, %574 : vector<8x128xf32>
    %576 = arith.addf %569, %575 : vector<8x128xf32>
    %c13_201 = arith.constant 13 : index
    %c3_202 = arith.constant 3 : index
    %577 = memref.load %arg3[%c13_201, %c3_202] : memref<16x5xf32, #tpu.memory_space<smem>>
    %578 = vector.broadcast %577 : f32 to vector<8x128xf32>
    %579 = arith.mulf %4, %578 : vector<8x128xf32>
    %580 = arith.addf %573, %579 : vector<8x128xf32>
    %581 = vector.broadcast %577 : f32 to vector<8x128xf32>
    %582 = arith.mulf %2, %581 : vector<8x128xf32>
    %583 = arith.addf %576, %582 : vector<8x128xf32>
    %c13_203 = arith.constant 13 : index
    %c4_204 = arith.constant 4 : index
    %584 = memref.load %arg3[%c13_203, %c4_204] : memref<16x5xf32, #tpu.memory_space<smem>>
    %585 = vector.broadcast %584 : f32 to vector<8x128xf32>
    %586 = arith.mulf %2, %585 : vector<8x128xf32>
    %587 = arith.addf %580, %586 : vector<8x128xf32>
    %588 = vector.broadcast %584 : f32 to vector<8x128xf32>
    %589 = arith.mulf %5, %588 : vector<8x128xf32>
    %590 = arith.addf %583, %589 : vector<8x128xf32>
    %591 = arith.maximumf %587, %590 : vector<8x128xf32>
    %c13_205 = arith.constant 13 : index
    %592 = memref.load %arg4[%c13_205] : memref<16xf32, #tpu.memory_space<smem>>
    %593 = vector.broadcast %592 : f32 to vector<8x128xf32>
    %594 = arith.addf %591, %593 : vector<8x128xf32>
    %cst_206 = arith.constant 0.000000e+00 : f32
    %595 = vector.broadcast %cst_206 : f32 to vector<8x128xf32>
    %596 = arith.maximumf %594, %595 : vector<8x128xf32>
    %597 = tpu.concatenate %556, %596 in 1 : vector<8x128xf32>, vector<8x128xf32> -> vector<8x256xf32>
    %c1536 = arith.constant 1536 : index
    %c0_207 = arith.constant 0 : index
    %598 = vector.load %arg5[%c1536, %c0_207] : memref<2048x64xbf16, #tpu.memory_space<vmem>>, vector<256x64xbf16>
    %599 = arith.truncf %597 : vector<8x256xf32> to vector<8x256xbf16>
    %cst_208 = arith.constant dense<0.000000e+00> : vector<8x64xf32>
    %600 = tpu.matmul %599, %598, %cst_208 {dimension_numbers = #tpu.dot_dimension_numbers<[1], [0], [0], [1], [0, 0, 1, 1], [], []>} : vector<8x256xbf16>, vector<256x64xbf16>, vector<8x64xf32> -> vector<8x64xf32>
    %601 = arith.addf %516, %600 : vector<8x64xf32>
    %c14 = arith.constant 14 : index
    %c0_209 = arith.constant 0 : index
    %602 = memref.load %arg3[%c14, %c0_209] : memref<16x5xf32, #tpu.memory_space<smem>>
    %603 = vector.broadcast %602 : f32 to vector<8x128xf32>
    %604 = arith.mulf %0, %603 : vector<8x128xf32>
    %c14_210 = arith.constant 14 : index
    %c0_211 = arith.constant 0 : index
    %605 = memref.load %arg3[%c14_210, %c0_211] : memref<16x5xf32, #tpu.memory_space<smem>>
    %606 = vector.broadcast %605 : f32 to vector<8x128xf32>
    %607 = arith.mulf %3, %606 : vector<8x128xf32>
    %c14_212 = arith.constant 14 : index
    %c1_213 = arith.constant 1 : index
    %608 = memref.load %arg3[%c14_212, %c1_213] : memref<16x5xf32, #tpu.memory_space<smem>>
    %609 = vector.broadcast %608 : f32 to vector<8x128xf32>
    %610 = arith.mulf %3, %609 : vector<8x128xf32>
    %611 = arith.addf %604, %610 : vector<8x128xf32>
    %612 = vector.broadcast %608 : f32 to vector<8x128xf32>
    %613 = arith.mulf %1, %612 : vector<8x128xf32>
    %614 = arith.addf %607, %613 : vector<8x128xf32>
    %c14_214 = arith.constant 14 : index
    %c2_215 = arith.constant 2 : index
    %615 = memref.load %arg3[%c14_214, %c2_215] : memref<16x5xf32, #tpu.memory_space<smem>>
    %616 = vector.broadcast %615 : f32 to vector<8x128xf32>
    %617 = arith.mulf %1, %616 : vector<8x128xf32>
    %618 = arith.addf %611, %617 : vector<8x128xf32>
    %619 = vector.broadcast %615 : f32 to vector<8x128xf32>
    %620 = arith.mulf %4, %619 : vector<8x128xf32>
    %621 = arith.addf %614, %620 : vector<8x128xf32>
    %c14_216 = arith.constant 14 : index
    %c3_217 = arith.constant 3 : index
    %622 = memref.load %arg3[%c14_216, %c3_217] : memref<16x5xf32, #tpu.memory_space<smem>>
    %623 = vector.broadcast %622 : f32 to vector<8x128xf32>
    %624 = arith.mulf %4, %623 : vector<8x128xf32>
    %625 = arith.addf %618, %624 : vector<8x128xf32>
    %626 = vector.broadcast %622 : f32 to vector<8x128xf32>
    %627 = arith.mulf %2, %626 : vector<8x128xf32>
    %628 = arith.addf %621, %627 : vector<8x128xf32>
    %c14_218 = arith.constant 14 : index
    %c4_219 = arith.constant 4 : index
    %629 = memref.load %arg3[%c14_218, %c4_219] : memref<16x5xf32, #tpu.memory_space<smem>>
    %630 = vector.broadcast %629 : f32 to vector<8x128xf32>
    %631 = arith.mulf %2, %630 : vector<8x128xf32>
    %632 = arith.addf %625, %631 : vector<8x128xf32>
    %633 = vector.broadcast %629 : f32 to vector<8x128xf32>
    %634 = arith.mulf %5, %633 : vector<8x128xf32>
    %635 = arith.addf %628, %634 : vector<8x128xf32>
    %636 = arith.maximumf %632, %635 : vector<8x128xf32>
    %c14_220 = arith.constant 14 : index
    %637 = memref.load %arg4[%c14_220] : memref<16xf32, #tpu.memory_space<smem>>
    %638 = vector.broadcast %637 : f32 to vector<8x128xf32>
    %639 = arith.addf %636, %638 : vector<8x128xf32>
    %cst_221 = arith.constant 0.000000e+00 : f32
    %640 = vector.broadcast %cst_221 : f32 to vector<8x128xf32>
    %641 = arith.maximumf %639, %640 : vector<8x128xf32>
    %c15 = arith.constant 15 : index
    %c0_222 = arith.constant 0 : index
    %642 = memref.load %arg3[%c15, %c0_222] : memref<16x5xf32, #tpu.memory_space<smem>>
    %643 = vector.broadcast %642 : f32 to vector<8x128xf32>
    %644 = arith.mulf %0, %643 : vector<8x128xf32>
    %c15_223 = arith.constant 15 : index
    %c0_224 = arith.constant 0 : index
    %645 = memref.load %arg3[%c15_223, %c0_224] : memref<16x5xf32, #tpu.memory_space<smem>>
    %646 = vector.broadcast %645 : f32 to vector<8x128xf32>
    %647 = arith.mulf %3, %646 : vector<8x128xf32>
    %c15_225 = arith.constant 15 : index
    %c1_226 = arith.constant 1 : index
    %648 = memref.load %arg3[%c15_225, %c1_226] : memref<16x5xf32, #tpu.memory_space<smem>>
    %649 = vector.broadcast %648 : f32 to vector<8x128xf32>
    %650 = arith.mulf %3, %649 : vector<8x128xf32>
    %651 = arith.addf %644, %650 : vector<8x128xf32>
    %652 = vector.broadcast %648 : f32 to vector<8x128xf32>
    %653 = arith.mulf %1, %652 : vector<8x128xf32>
    %654 = arith.addf %647, %653 : vector<8x128xf32>
    %c15_227 = arith.constant 15 : index
    %c2_228 = arith.constant 2 : index
    %655 = memref.load %arg3[%c15_227, %c2_228] : memref<16x5xf32, #tpu.memory_space<smem>>
    %656 = vector.broadcast %655 : f32 to vector<8x128xf32>
    %657 = arith.mulf %1, %656 : vector<8x128xf32>
    %658 = arith.addf %651, %657 : vector<8x128xf32>
    %659 = vector.broadcast %655 : f32 to vector<8x128xf32>
    %660 = arith.mulf %4, %659 : vector<8x128xf32>
    %661 = arith.addf %654, %660 : vector<8x128xf32>
    %c15_229 = arith.constant 15 : index
    %c3_230 = arith.constant 3 : index
    %662 = memref.load %arg3[%c15_229, %c3_230] : memref<16x5xf32, #tpu.memory_space<smem>>
    %663 = vector.broadcast %662 : f32 to vector<8x128xf32>
    %664 = arith.mulf %4, %663 : vector<8x128xf32>
    %665 = arith.addf %658, %664 : vector<8x128xf32>
    %666 = vector.broadcast %662 : f32 to vector<8x128xf32>
    %667 = arith.mulf %2, %666 : vector<8x128xf32>
    %668 = arith.addf %661, %667 : vector<8x128xf32>
    %c15_231 = arith.constant 15 : index
    %c4_232 = arith.constant 4 : index
    %669 = memref.load %arg3[%c15_231, %c4_232] : memref<16x5xf32, #tpu.memory_space<smem>>
    %670 = vector.broadcast %669 : f32 to vector<8x128xf32>
    %671 = arith.mulf %2, %670 : vector<8x128xf32>
    %672 = arith.addf %665, %671 : vector<8x128xf32>
    %673 = vector.broadcast %669 : f32 to vector<8x128xf32>
    %674 = arith.mulf %5, %673 : vector<8x128xf32>
    %675 = arith.addf %668, %674 : vector<8x128xf32>
    %676 = arith.maximumf %672, %675 : vector<8x128xf32>
    %c15_233 = arith.constant 15 : index
    %677 = memref.load %arg4[%c15_233] : memref<16xf32, #tpu.memory_space<smem>>
    %678 = vector.broadcast %677 : f32 to vector<8x128xf32>
    %679 = arith.addf %676, %678 : vector<8x128xf32>
    %cst_234 = arith.constant 0.000000e+00 : f32
    %680 = vector.broadcast %cst_234 : f32 to vector<8x128xf32>
    %681 = arith.maximumf %679, %680 : vector<8x128xf32>
    %682 = tpu.concatenate %641, %681 in 1 : vector<8x128xf32>, vector<8x128xf32> -> vector<8x256xf32>
    %c1792 = arith.constant 1792 : index
    %c0_235 = arith.constant 0 : index
    %683 = vector.load %arg5[%c1792, %c0_235] : memref<2048x64xbf16, #tpu.memory_space<vmem>>, vector<256x64xbf16>
    %684 = arith.truncf %682 : vector<8x256xf32> to vector<8x256xbf16>
    %cst_236 = arith.constant dense<0.000000e+00> : vector<8x64xf32>
    %685 = tpu.matmul %684, %683, %cst_236 {dimension_numbers = #tpu.dot_dimension_numbers<[1], [0], [0], [1], [0, 0, 1, 1], [], []>} : vector<8x256xbf16>, vector<256x64xbf16>, vector<8x64xf32> -> vector<8x64xf32>
    %686 = arith.addf %601, %685 : vector<8x64xf32>
    %c0_237 = arith.constant 0 : index
    %c0_238 = arith.constant 0 : index
    %687 = vector.load %arg6[%c0_237, %c0_238] : memref<1x64xf32, #tpu.memory_space<vmem>>, vector<1x64xf32>
    %688 = vector.broadcast %687 : vector<1x64xf32> to vector<8x64xf32>
    %689 = arith.addf %686, %688 : vector<8x64xf32>
    %cst_239 = arith.constant 0.000000e+00 : f32
    %690 = vector.broadcast %cst_239 : f32 to vector<8x64xf32>
    %691 = arith.maximumf %689, %690 : vector<8x64xf32>
    %c0_240 = arith.constant 0 : index
    %c0_241 = arith.constant 0 : index
    %692 = vector.load %arg7[%c0_240, %c0_241] : memref<64x5xf32, #tpu.memory_space<vmem>>, vector<64x5xf32>
    %cst_242 = arith.constant dense<0.000000e+00> : vector<8x5xf32>
    %693 = tpu.matmul %691, %692, %cst_242 {dimension_numbers = #tpu.dot_dimension_numbers<[1], [0], [0], [1], [0, 0, 1, 1], [], []>} : vector<8x64xf32>, vector<64x5xf32>, vector<8x5xf32> -> vector<8x5xf32>
    %c0_243 = arith.constant 0 : index
    %c0_244 = arith.constant 0 : index
    %694 = vector.load %arg8[%c0_243, %c0_244] : memref<1x5xf32, #tpu.memory_space<vmem>>, vector<1x5xf32>
    %695 = vector.broadcast %694 : vector<1x5xf32> to vector<8x5xf32>
    %696 = arith.addf %693, %695 : vector<8x5xf32>
    %c0_245 = arith.constant 0 : index
    %c0_246 = arith.constant 0 : index
    %697 = vector.load %arg9[%c0_245, %c0_246] : memref<8x5xf32, #tpu.memory_space<vmem>>, vector<8x5xf32>
    tpu.vector_store %arg9[%c0_245, %c0_246], %696 {strides = array<i32>} : memref<8x5xf32, #tpu.memory_space<vmem>>, vector<8x5xf32>,
    return
  }
  func.func @transform_0(%arg0: i32) -> (i32, i32) {
    %c0_i32 = arith.constant 0 : i32
    %c0_i32_0 = arith.constant 0 : i32
    return %arg0, %c0_i32 : i32, i32
  }
  func.func @transform_1(%arg0: i32) -> (i32, i32) {
    %c0_i32 = arith.constant 0 : i32
    %c0_i32_0 = arith.constant 0 : i32
    return %arg0, %c0_i32 : i32, i32
  }
  func.func @transform_2(%arg0: i32) -> (i32, i32) {
    %c0_i32 = arith.constant 0 : i32
    %c0_i32_0 = arith.constant 0 : i32
    %c0_i32_1 = arith.constant 0 : i32
    return %c0_i32, %c0_i32_0 : i32, i32
  }
  func.func @transform_3(%arg0: i32) -> i32 {
    %c0_i32 = arith.constant 0 : i32
    %c0_i32_0 = arith.constant 0 : i32
    return %c0_i32 : i32
  }
  func.func @transform_4(%arg0: i32) -> (i32, i32) {
    %c0_i32 = arith.constant 0 : i32
    %c0_i32_0 = arith.constant 0 : i32
    %c0_i32_1 = arith.constant 0 : i32
    return %c0_i32, %c0_i32_0 : i32, i32
  }
  func.func @transform_5(%arg0: i32) -> (i32, i32) {
    %c0_i32 = arith.constant 0 : i32
    %c0_i32_0 = arith.constant 0 : i32
    %c0_i32_1 = arith.constant 0 : i32
    return %c0_i32, %c0_i32_0 : i32, i32
  }
  func.func @transform_6(%arg0: i32) -> (i32, i32) {
    %c0_i32 = arith.constant 0 : i32
    %c0_i32_0 = arith.constant 0 : i32
    %c0_i32_1 = arith.constant 0 : i32
    return %c0_i32, %c0_i32_0 : i32, i32
  }
  func.func @transform_7(%arg0: i32) -> (i32, i32) {
    %c0_i32 = arith.constant 0 : i32
    %c0_i32_0 = arith.constant 0 : i32
    %c0_i32_1 = arith.constant 0 : i32
    return %c0_i32, %c0_i32_0 : i32, i32
  }
  func.func @transform_8(%arg0: i32) -> (i32, i32) {
    %c0_i32 = arith.constant 0 : i32
    %c0_i32_0 = arith.constant 0 : i32
    return %arg0, %c0_i32 : i32, i32
  }
}

</mosaic_0001>

<bundles_post_ra>
// kernel: tiny_ecg_cnn_forward.1
= control target key start
LH: loop header
LB: loop body
LE: loop exit
PB: predicated region body
PF: predicated region fallthrough
CT: control target
= control target key end

     0   :  { %13 = vsyncpa [#allocation4], 0  ;;  %s5315_s0 = inlined_call_operand.vmem [shape: f32[8,130], index: 0, kind: input, shape index: {}]   ;;  %s5316_s1 = inlined_call_operand.vmem [shape: f32[8,130], index: 1, kind: input, shape index: {}]   ;;  %s5317_s2 = inlined_call_operand.vmem [shape: f32[16,5], index: 2, kind: input, shape index: {}]   ;;  %s5318_s3 = inlined_call_operand.vmem [shape: f32[16], index: 3, kind: input, shape index: {}]   ;;  %s5319_s4 = inlined_call_operand.vmem [shape: bf16[2048,64], index: 4, kind: input, shape index: {}]   ;;  %s5320_s5 = inlined_call_operand.vmem [shape: f32[1,64], index: 5, kind: input, shape index: {}]   ;;  %s5321_s6 = inlined_call_operand.vmem [shape: f32[64,5], index: 6, kind: input, shape index: {}]   ;;  %s5322_s7 = inlined_call_operand.vmem [shape: f32[1,5], index: 7, kind: input, shape index: {}]   ;;  %s5323_s8 = inlined_call_operand.hbm [shape: f32[8,5], index: 8, kind: output, shape index: {}]  }
   0x1   :  { %14 = vsyncpa [#allocation6], 0 }
   0x2   :  { %15 = vsyncpa [#allocation3], 0  ;;  %s24_s29 = sshll.u32 %s5317_s2, 4  ;;  %s36_s10 = sshll.u32 %s5318_s3, 4  ;;  %s25_s29 = int_to_ptr.vmem [resolvable:$true] %s24_s29  ;;  %s37_s10 = int_to_ptr.vmem [resolvable:$true] %s36_s10 }
   0x3   :  { %s3721_s11 = smov [#allocation2]   ;;  %s3722_s12 = smov 128  }
   0x4   :  { %s3723_s13 = smov 8   ;;  %s3724_s14 = smov [#allocation5]  }
   0x5   :  { %30 = dma.vmem_to_smem %s25_s29, 256, %s3721_s11, [#allocation4], %s3722_s12, %s3722_s12, %s3723_s13  }
   0x6   :  { %39 = dma.vmem_to_smem %s37_s10, 16, %s3724_s14, [#allocation6]  }
   0x7   :  { %3715 = dma.done.wait [#allocation4], 256  }
   0x8   :  { %3716 = vsyncadd [#allocation4], 4294967040 }
   0x9   :  { %3717 = dma.done.wait [#allocation6], 16  }
   0xa   :  { %3718 = vsyncadd [#allocation6], 4294967280 }
   0xb   :  { %56 = sfence }
   0xc   :  { %s2916_s15 = sld [smem:[#allocation2 + $0x2]]  ;;  %v3782_v0 = vld [vmem:[%s5315_s0] sm:$0xff]  ;;  %s3725_s19 = smov 127   ;;  %v3801_v7 = vld [vmem:[%s5315_s0 + $0x8] sm:$0xff]  ;;  %v3529_v56 = vld [vmem:[%s5319_s4 + $0x38] sm:$0xff]  ;;  %vm77_vm0 = vcmask 1039360  }
   0xd   :  { %s2915_s16 = sld [smem:[#allocation2 + $0x1]]  ;;  %v3787_v2 = vld [vmem:[%s5316_s1] sm:$0xff]  ;;  %v3806_v8 = vld [vmem:[%s5316_s1 + $0x8] sm:$0xff]  ;;  %s3726_s26 = smov 126   ;;  %733 = vmatpush.bf16.msra.mxu2 %v3529_v56  ;;  %v3528_v58 = vld [vmem:[%s5319_s4 + $0x30] sm:$0xff]  ;;  %vm126_vm1 = vcmask 1031168  }
   0xe   :  { %s2917_s22 = sld [smem:[#allocation2 + $0x3]]  ;;  %v3527_v62 = vld [vmem:[%s5319_s4 + $0x28] sm:$0xff]  ;;  %vm2871_vm2 = vcmask 523264   ;;  %vm2895_vm3 = vcmask 39936  }
   0xf   :  { %s2918_s25 = sld [smem:[#allocation2 + $0x4]] }
  0x10   :  { %s2920_s27 = sld [smem:[#allocation2 + $0x81]] }
  0x11   :  { %s2921_s28 = sld [smem:[#allocation2 + $0x82]]  ;;  %734 = vmatpush.bf16.msra.mxu2 %v3528_v58 }
  0x12   :  { %v82_v1 = vstv %s2916_s15  ;;  %s2922_s29 = sld [smem:[#allocation2 + $0x83]] }
  0x13   :  { %v83_v3 = vmul.f32 %v82_v1, %v3782_v0  ;;  %v3790_v4 = vstv %s2915_s16  ;;  %v94_v5 = vmul.f32 %v82_v1, %v3787_v2  ;;  %v84_v9 = vmul.f32 %v82_v1, %v3801_v7  ;;  %s2923_s30 = sld [smem:[#allocation2 + $0x84]] }
  0x14   :  { %v69_v6 = vmul.f32 %v3790_v4, %v3782_v0  ;;  %v95_v10 = vmul.f32 %v82_v1, %v3806_v8  ;;  %v70_v11 = vmul.f32 %v3790_v4, %v3801_v7  ;;  %v106_v12 = vstv %s2917_s22  ;;  %s2926_s9 = sld [smem:[#allocation2 + $0x101]] }
  0x15   :  { %87 = vrot.lane.b32.xlu1 %v83_v3, %s3725_s19  ;;  %98 = vrot.lane.b32.xlu2 %v94_v5, %s3725_s19  ;;  %v108_v13 = vmul.f32 %v106_v12, %v3806_v8  ;;  %v118_v14 = vmul.f32 %v106_v12, %v3782_v0  ;;  %v107_v15 = vmul.f32 %v106_v12, %v3787_v2  ;;  %v131_v16 = vstv %s2918_s25  ;;  %s2927_s10 = sld [smem:[#allocation2 + $0x102]]  ;;  %v3526_v3 = vld [vmem:[%s5319_s4 + $0x20] sm:$0xff] }
  0x16   :  { %73 = vrot.lane.b32.xlu0 %v69_v6, %s3725_s19  ;;  %v132_v17 = vmul.f32 %v131_v16, %v3782_v0  ;;  %v133_v18 = vmul.f32 %v131_v16, %v3801_v7  ;;  %v119_v19 = vmul.f32 %v106_v12, %v3801_v7  ;;  %v3827_v20 = vstv %s2920_s27  ;;  %s2928_s11 = sld [smem:[#allocation2 + $0x103]]  ;;  %735 = vmatpush.bf16.msra.mxu2 %v3527_v62 }
  0x17   :  { %v144_v21 = vmul.f32 %v131_v16, %v3806_v8  ;;  %v167_v22 = vmul.f32 %v3827_v20, %v3782_v0  ;;  %v143_v23 = vmul.f32 %v131_v16, %v3787_v2  ;;  %v179_v24 = vstv %s2921_s28  ;;  %s2929_s12 = sld [smem:[#allocation2 + $0x104]] }
  0x18   :  { %v180_v25 = vmul.f32 %v179_v24, %v3782_v0  ;;  %v181_v26 = vmul.f32 %v179_v24, %v3801_v7  ;;  %v168_v27 = vmul.f32 %v3827_v20, %v3801_v7  ;;  %v203_v28 = vstv %s2922_s29  ;;  %s2932_s15 = sld [smem:[#allocation2 + $0x181]] }
  0x19   :  { %v192_v29 = vmul.f32 %v179_v24, %v3806_v8  ;;  %v204_v30 = vmul.f32 %v203_v28, %v3787_v2  ;;  %v191_v31 = vmul.f32 %v179_v24, %v3787_v2  ;;  %v215_v32 = vmul.f32 %v203_v28, %v3782_v0  ;;  %s2933_s17 = sld [smem:[#allocation2 + $0x182]]  ;;  %v3522_v24 = vld [vmem:[%s5319_s4] sm:$0xff] }
  0x1a   :  { %v216_v33 = vmul.f32 %v203_v28, %v3801_v7  ;;  %v205_v34 = vmul.f32 %v203_v28, %v3806_v8  ;;  %v227_v35 = vstv %s2923_s30  ;;  %v3861_v39 = vstv %s2926_s9  ;;  %736 = vmatpush.bf16.msra.mxu2 %v3526_v3  ;;  %s2934_s24 = sld [smem:[#allocation2 + $0x183]] }
  0x1b   :  { %v229_v36 = vmul.f32 %v227_v35, %v3801_v7  ;;  %v239_v37 = vmul.f32 %v227_v35, %v3787_v2  ;;  %v228_v38 = vmul.f32 %v227_v35, %v3782_v0  ;;  %v297_v40 = vmul.f32 %v3861_v39, %v3782_v0  ;;  %s2935_s30 = sld [smem:[#allocation2 + $0x184]] }
  0x1c   :  { %v298_v41 = vmul.f32 %v3861_v39, %v3801_v7  ;;  %v240_v42 = vmul.f32 %v227_v35, %v3806_v8  ;;  %v309_v43 = vstv %s2927_s10  ;;  %v333_v47 = vstv %s2928_s11  ;;  %s61_s11 = sld [smem:[#allocation2]] }
  0x1d   :  { %89 = vrot.lane.b32.xlu1 %v84_v9, %s3725_s19  ;;  %100 = vrot.lane.b32.xlu2 %v95_v10, %s3725_s19  ;;  %v311_v44 = vmul.f32 %v309_v43, %v3801_v7  ;;  %v321_v45 = vmul.f32 %v309_v43, %v3787_v2  ;;  %v310_v46 = vmul.f32 %v309_v43, %v3782_v0  ;;  %v357_v52 = vstv %s2929_s12  ;;  %s3066_s12 = sld [smem:[#allocation2 + $0x201]] }
  0x1e   :  { %75 = vrot.lane.b32.xlu0 %v70_v11, %s3725_s19  ;;  %v334_v48 = vmul.f32 %v333_v47, %v3787_v2  ;;  %v335_v49 = vmul.f32 %v333_v47, %v3806_v8  ;;  %v322_v50 = vmul.f32 %v309_v43, %v3806_v8  ;;  %v346_v53 = vmul.f32 %v333_v47, %v3801_v7  ;;  %v3525_v11 = vld [vmem:[%s5319_s4 + $0x18] sm:$0xff]  ;;  %s3982_s18 = sld [smem:[#allocation5]] }
  0x1f   :  { %v358_v54 = vmul.f32 %v357_v52, %v3782_v0  ;;  %v345_v55 = vmul.f32 %v333_v47, %v3782_v0  ;;  %v369_v59 = vmul.f32 %v357_v52, %v3787_v2  ;;  %v370_v60 = vmul.f32 %v357_v52, %v3806_v8  ;;  %737 = vmatpush.bf16.msra.mxu2 %v3525_v11  ;;  %s3068_s22 = sld [smem:[#allocation2 + $0x203]] }
  0x20   :  { %v359_v61 = vmul.f32 %v357_v52, %v3801_v7  ;;  %v3908_v63 = vstv %s2932_s15  ;;  %v405_v5 = vstv %s2933_s17  ;;  %s3067_s15 = sld [smem:[#allocation2 + $0x202]] }
  0x21   :  { %v394_v6 = vmul.f32 %v3908_v63, %v3801_v7  ;;  %v406_v9 = vmul.f32 %v405_v5, %v3782_v0  ;;  %v393_v10 = vmul.f32 %v3908_v63, %v3782_v0  ;;  %v417_v16 = vmul.f32 %v405_v5, %v3787_v2  ;;  %s3072_s14 = sld [smem:[#allocation2 + $0x281]] }
  0x22   :  { %s3073_s3 = sld [smem:[#allocation2 + $0x282]] }
  0x23   :  { %v3972_v47 = vstv %s3066_s12  ;;  %s4081_s23 = sld [smem:[#allocation5 + $0x1]] }
  0x24   :  { %s3075_s10 = sld [smem:[#allocation2 + $0x284]] }
  0x25   :  { %113 = vrot.lane.b32.xlu1 %v108_v13, %s3725_s19  ;;  %122 = vrot.lane.b32.xlu2 %v118_v14, %s3726_s26  ;;  %v3524_v14 = vld [vmem:[%s5319_s4 + $0x10] sm:$0xff]  ;;  %s3143_s2 = sld [smem:[#allocation2 + $0x302]] }
  0x26   :  { %111 = vrot.lane.b32.xlu0 %v107_v15, %s3725_s19  ;;  %738 = vmatpush.bf16.msra.mxu2 %v3524_v14  ;;  %v768_v14 = vmul.f32 %v3972_v47, %v3801_v7  ;;  %s3148_s12 = sld [smem:[#allocation2 + $0x381]] }
  0x27   :  { %s3294_s21 = sld [smem:[#allocation2 + $0x501]] }
  0x28   :  { %s3300_s27 = sld [smem:[#allocation2 + $0x581]] }
  0x29   :  { %s3301_s16 = sld [smem:[#allocation2 + $0x582]] }
  0x2a   :  { %s3296_s25 = sld [smem:[#allocation2 + $0x503]] }
  0x2b   :  { %s4433_s29 = sld [smem:[#allocation5 + $0x5]] }
  0x2c   :  { %s3225_s20 = sld [smem:[#allocation2 + $0x482]] }
  0x2d   :  { %136 = vrot.lane.b32.xlu1 %v132_v17, %s3726_s26  ;;  %138 = vrot.lane.b32.xlu2 %v133_v18, %s3726_s26  ;;  %v418_v17 = vmul.f32 %v405_v5, %v3806_v8  ;;  %v407_v18 = vmul.f32 %v405_v5, %v3801_v7  ;;  %s3452_s28 = sld [smem:[#allocation2 + $0x781]] }
  0x2e   :  { %124 = vrot.lane.b32.xlu0 %v119_v19, %s3726_s26  ;;  %v3523_v19 = vld [vmem:[%s5319_s4 + $0x8] sm:$0xff]  ;;  %s3373_s9 = sld [smem:[#allocation2 + $0x604]] }
  0x2f   :  { %739 = vmatpush.bf16.msra.mxu2 %v3523_v19  ;;  %s3450_s17 = sld [smem:[#allocation5 + $0xe]] }
  0x33   :  { %740 = vmatpush.bf16.msra.mxu2 %v3522_v24 }
  0x35   :  { %149 = vrot.lane.b32.xlu1 %v144_v21, %s3726_s26  ;;  %171 = vrot.lane.b32.xlu2 %v167_v22, %s3725_s19  ;;  %v429_v21 = vstv %s2934_s24  ;;  %s3074_s24 = sld [smem:[#allocation2 + $0x283]] }
  0x36   :  { %147 = vrot.lane.b32.xlu0 %v143_v23, %s3726_s26  ;;  %v430_v28 = vmul.f32 %v429_v21, %v3787_v2  ;;  %v442_v35 = vmul.f32 %v429_v21, %v3801_v7 }
  0x3d   :  { %184 = vrot.lane.b32.xlu1 %v180_v25, %s3725_s19  ;;  %186 = vrot.lane.b32.xlu2 %v181_v26, %s3725_s19  ;;  %v431_v26 = vmul.f32 %v429_v21, %v3806_v8 }
  0x3e   :  { %173 = vrot.lane.b32.xlu0 %v168_v27, %s3725_s19  ;;  %v441_v27 = vmul.f32 %v429_v21, %v3782_v0 }
  0x45   :  { %197 = vrot.lane.b32.xlu1 %v192_v29, %s3725_s19  ;;  %208 = vrot.lane.b32.xlu2 %v204_v30, %s3725_s19  ;;  %v453_v29 = vstv %s2935_s30  ;;  %s3069_s30 = sld [smem:[#allocation2 + $0x204]] }
  0x46   :  { %195 = vrot.lane.b32.xlu0 %v191_v31, %s3725_s19  ;;  %v465_v52 = vmul.f32 %v453_v29, %v3787_v2 }
  0x4d   :  { %219 = vrot.lane.b32.xlu1 %v215_v32, %s3726_s26  ;;  %221 = vrot.lane.b32.xlu2 %v216_v33, %s3726_s26  ;;  %v454_v33 = vmul.f32 %v453_v29, %v3782_v0 }
  0x4e   :  { %210 = vrot.lane.b32.xlu0 %v205_v34, %s3725_s19  ;;  %v455_v34 = vmul.f32 %v453_v29, %v3801_v7 }
  0x55   :  { %234 = vrot.lane.b32.xlu1 %v229_v36, %s3726_s26  ;;  %243 = vrot.lane.b32.xlu2 %v239_v37, %s3726_s26  ;;  %v3537_v36 = vld [vmem:[%s5319_s4 + $0x78] sm:$0xff]  ;;  %v62_v37 = vstv %s61_s11  ;;  %s2919_s11 = sld [smem:[#allocation2 + $0x80]] }
  0x56   :  { %232 = vrot.lane.b32.xlu0 %v228_v38, %s3726_s26  ;;  %746 = vmatpush.bf16.msra.mxu3 %v3537_v36  ;;  %v67_v38 = vmul.f32 %v3790_v4, %v3787_v2  ;;  %v466_v4 = vmul.f32 %v453_v29, %v3806_v8 }
  0x5d   :  { %301 = vrot.lane.b32.xlu1 %v297_v40, %s3725_s19  ;;  %303 = vrot.lane.b32.xlu2 %v298_v41, %s3725_s19  ;;  %v63_v40 = vmul.f32 %v62_v37, %v3782_v0  ;;  %v64_v41 = vmul.f32 %v62_v37, %v3787_v2 }
  0x5e   :  { %245 = vrot.lane.b32.xlu0 %v240_v42, %s3726_s26 }
  0x65   :  { %316 = vrot.lane.b32.xlu1 %v311_v44, %s3725_s19  ;;  %325 = vrot.lane.b32.xlu2 %v321_v45, %s3725_s19  ;;  %v3536_v45 = vld [vmem:[%s5319_s4 + $0x70] sm:$0xff] }
  0x66   :  { %314 = vrot.lane.b32.xlu0 %v310_v46, %s3725_s19  ;;  %747 = vmatpush.bf16.msra.mxu3 %v3536_v45 }
  0x6d   :  { %338 = vrot.lane.b32.xlu1 %v334_v48, %s3725_s19  ;;  %340 = vrot.lane.b32.xlu2 %v335_v49, %s3725_s19  ;;  %v767_v48 = vmul.f32 %v3972_v47, %v3782_v0  ;;  %v68_v49 = vadd.f32 %v67_v38, %v63_v40 }
  0x6e   :  { %327 = vrot.lane.b32.xlu0 %v322_v50, %s3725_s19 }
  0x6f   :  { %v3883_v51 = vpop.permute.xlu2 %98 }
  0x75   :  { %351 = vrot.lane.b32.xlu1 %v346_v53, %s3726_s26  ;;  %362 = vrot.lane.b32.xlu2 %v358_v54, %s3726_s26  ;;  %v3535_v53 = vld [vmem:[%s5319_s4 + $0x68] sm:$0xff] }
  0x76   :  { %349 = vrot.lane.b32.xlu0 %v345_v55, %s3726_s26  ;;  %748 = vmatpush.bf16.msra.mxu3 %v3535_v53  ;;  %v160_v53 = vstv %s2919_s11  ;;  %s2925_s11 = sld [smem:[#allocation2 + $0x100]] }
  0x77   :  { %v3894_v57 = vpop.permute.xlu2 %100 }
  0x78   :  { %v102_v55 = vsel %vm77_vm0, %v3883_v51, %v3894_v57 }
  0x7d   :  { %373 = vrot.lane.b32.xlu1 %v369_v59, %s3726_s26  ;;  %375 = vrot.lane.b32.xlu2 %v370_v60, %s3726_s26 }
  0x7e   :  { %364 = vrot.lane.b32.xlu0 %v359_v61, %s3726_s26  ;;  %v779_v61 = vstv %s3067_s15  ;;  %s3149_s15 = sld [smem:[#allocation2 + $0x382]] }
  0x7f   :  { %v3910_v1 = vpop.permute.xlu2 %122  ;;  %v781_v11 = vmul.f32 %v779_v61, %v3801_v7 }
  0x85   :  { %399 = vrot.lane.b32.xlu1 %v394_v6, %s3725_s19  ;;  %410 = vrot.lane.b32.xlu2 %v406_v9, %s3725_s19 }
  0x86   :  { %397 = vrot.lane.b32.xlu0 %v393_v10, %s3725_s19  ;;  %v780_v10 = vmul.f32 %v779_v61, %v3782_v0 }
  0x87   :  { %v88_v12 = vpop.permute.xlu1 %87  ;;  %v3926_v13 = vpop.permute.xlu2 %138 }
  0x88   :  { %v74_v15 = vpop.permute.xlu0 %73 }
  0x8d   :  { %421 = vrot.lane.b32.xlu1 %v417_v16, %s3725_s19  ;;  %423 = vrot.lane.b32.xlu2 %v418_v17, %s3725_s19  ;;  %v156_v16 = vstv %s3982_s18  ;;  %s4150_s18 = sld [smem:[#allocation5 + $0x2]] }
  0x8e   :  { %412 = vrot.lane.b32.xlu0 %v407_v18, %s3725_s19 }
  0x8f   :  { %v90_v22 = vpop.permute.xlu1 %89  ;;  %v3940_v23 = vpop.permute.xlu2 %171 }
  0x90   :  { %v76_v25 = vpop.permute.xlu0 %75  ;;  %v91_v54 = vsel %vm77_vm0, %v88_v12, %v90_v22  ;;  %v3532_v22 = vld [vmem:[%s5319_s4 + $0x50] sm:$0xff] }
  0x91   :  { %v78_v42 = vsel %vm77_vm0, %v74_v15, %v76_v25  ;;  %v93_v59 = vadd.f32 %v91_v54, %v68_v49  ;;  %v3533_v15 = vld [vmem:[%s5319_s4 + $0x58] sm:$0xff]  ;;  %v161_v54 = vmul.f32 %v160_v53, %v3782_v0 }
  0x92   :  { %v80_v50 = vadd.f32 %v78_v42, %v64_v41  ;;  %v3545_v41 = vld [vmem:[%s5319_s4 + $0xb8] sm:$0xff]  ;;  %v827_v42 = vstv %s3069_s30  ;;  %s3145_s30 = sld [smem:[#allocation2 + $0x304]] }
  0x93   :  { %611 = vmatpush.bf16.msra.mxu0 %v3545_v41  ;;  %v839_v49 = vmul.f32 %v827_v42, %v3787_v2 }
  0x94   :  { %v104_v60 = vadd.f32 %v102_v55, %v80_v50  ;;  %v828_v50 = vmul.f32 %v827_v42, %v3782_v0  ;;  %v165_v55 = vmul.f32 %v3827_v20, %v3787_v2 }
  0x95   :  { %436 = vrot.lane.b32.xlu1 %v431_v26, %s3725_s19  ;;  %445 = vrot.lane.b32.xlu2 %v441_v27, %s3726_s26  ;;  %v803_v26 = vstv %s3068_s22  ;;  %v792_v27 = vmul.f32 %v779_v61, %v3806_v8  ;;  %s3150_s22 = sld [smem:[#allocation2 + $0x383]] }
  0x96   :  { %434 = vrot.lane.b32.xlu0 %v430_v28, %s3725_s19  ;;  %v804_v28 = vmul.f32 %v803_v26, %v3787_v2  ;;  %v815_v37 = vmul.f32 %v803_v26, %v3782_v0  ;;  %v816_v38 = vmul.f32 %v803_v26, %v3801_v7  ;;  %v805_v40 = vmul.f32 %v803_v26, %v3806_v8 }
  0x97   :  { %v114_v30 = vpop.permute.xlu1 %113  ;;  %v3951_v31 = vpop.permute.xlu2 %186 }
  0x98   :  { %v112_v32 = vpop.permute.xlu0 %111 }
  0x99   :  { %v115_v56 = vsel %vm77_vm0, %v112_v32, %v114_v30  ;;  %v791_v30 = vmul.f32 %v779_v61, %v3787_v2  ;;  %v3531_v32 = vld [vmem:[%s5319_s4 + $0x48] sm:$0xff]  ;;  %v162_v61 = vmul.f32 %v160_v53, %v3787_v2 }
  0x9a   :  { %v117_v3 = vadd.f32 %v115_v56, %v93_v59  ;;  %v4059_v56 = vstv %s3072_s14  ;;  %s3142_s14 = sld [smem:[#allocation2 + $0x301]] }
  0x9b   :  { %v863_v20 = vmul.f32 %v4059_v56, %v3782_v0 }
  0x9d   :  { %458 = vrot.lane.b32.xlu1 %v454_v33, %s3726_s26  ;;  %460 = vrot.lane.b32.xlu2 %v455_v34, %s3726_s26 }
  0x9e   :  { %447 = vrot.lane.b32.xlu0 %v442_v35, %s3726_s26  ;;  %v3530_v35 = vld [vmem:[%s5319_s4 + $0x40] sm:$0xff] }
  0x9f   :  { %v137_v43 = vpop.permute.xlu1 %136  ;;  %v3967_v44 = vpop.permute.xlu2 %208 }
  0xa0   :  { %v125_v46 = vpop.permute.xlu0 %124  ;;  %v140_v62 = vsel %vm126_vm1, %v137_v43, %v3926_v13 }
  0xa1   :  { %v127_v58 = vsel %vm126_vm1, %v3910_v1, %v125_v46  ;;  %v3534_v1 = vld [vmem:[%s5319_s4 + $0x60] sm:$0xff]  ;;  %v142_v12 = vadd.f32 %v140_v62, %v117_v3  ;;  %v3544_v46 = vld [vmem:[%s5319_s4 + $0xb0] sm:$0xff]  ;;  %v166_v3 = vadd.f32 %v165_v55, %v161_v54  ;;  %v3553_v55 = vld [vmem:[%s5319_s4 + $0xf8] sm:$0xff] }
  0xa2   :  { %v129_v5 = vadd.f32 %v127_v58, %v104_v60  ;;  %749 = vmatpush.bf16.msra.mxu3 %v3534_v1  ;;  %612 = vmatpush.bf16.msra.mxu0 %v3544_v46  ;;  %v3542_v60 = vld [vmem:[%s5319_s4 + $0xa0] sm:$0xff]  ;;  %v864_v1 = vmul.f32 %v4059_v56, %v3801_v7 }
  0xa3   :  { %624 = vmatpush.bf16.msra.mxu1 %v3553_v55 }
  0xa5   :  { %471 = vrot.lane.b32.xlu1 %v466_v4, %s3726_s26  ;;  %771 = vrot.lane.b32.xlu2 %v767_v48, %s3725_s19  ;;  %v829_v48 = vmul.f32 %v827_v42, %v3801_v7 }
  0xa6   :  { %469 = vrot.lane.b32.xlu0 %v465_v52, %s3726_s26  ;;  %750 = vmatpush.bf16.msra.mxu3 %v3533_v15  ;;  %v3543_v52 = vld [vmem:[%s5319_s4 + $0xa8] sm:$0xff] }
  0xa7   :  { %v150_v51 = vpop.permute.xlu1 %149  ;;  %v3995_v57 = vpop.permute.xlu2 %221  ;;  %613 = vmatpush.bf16.msra.mxu0 %v3543_v52 }
  0xa8   :  { %v148_v6 = vpop.permute.xlu0 %147 }
  0xa9   :  { %v151_v9 = vsel %vm126_vm1, %v148_v6, %v150_v51  ;;  %v3541_v6 = vld [vmem:[%s5319_s4 + $0x98] sm:$0xff] }
  0xaa   :  { %v153_v13 = vadd.f32 %v151_v9, %v129_v5  ;;  %751 = vmatpush.bf16.msra.mxu3 %v3532_v22  ;;  %v840_v5 = vmul.f32 %v827_v42, %v3806_v8 }
  0xab   :  { %614 = vmatpush.bf16.msra.mxu0 %v3542_v60 }
  0xac   :  { %v154_v17 = vmax.f32 %v142_v12, %v153_v13 }
  0xad   :  { %784 = vrot.lane.b32.xlu1 %v780_v10, %s3725_s19  ;;  %786 = vrot.lane.b32.xlu2 %v781_v11, %s3725_s19 }
  0xae   :  { %773 = vrot.lane.b32.xlu0 %v768_v14, %s3725_s19  ;;  %v157_v18 = vadd.f32 %v156_v16, %v154_v17  ;;  %752 = vmatpush.bf16.msra.mxu3 %v3531_v32 }
  0xaf   :  { %v4012_v19 = vpop.permute.xlu1 %184  ;;  %v4014_v21 = vpop.permute.xlu2 %243  ;;  %615 = vmatpush.bf16.msra.mxu0 %v3541_v6 }
  0xb0   :  { %v174_v24 = vpop.permute.xlu0 %173  ;;  %v158_v25 = vmax.f32 %v157_v18, 0.0  ;;  %v188_v9 = vsel %vm77_vm0, %v4012_v19, %v3951_v31  ;;  %v875_v31 = vstv %s3073_s3  ;;  %s3065_s3 = sld [smem:[#allocation2 + $0x200]] }
  0xb1   :  { %v175_v51 = vsel %vm77_vm0, %v3940_v23, %v174_v24  ;;  %v190_v13 = vadd.f32 %v188_v9, %v166_v3  ;;  %v877_v24 = vmul.f32 %v875_v31, %v3801_v7  ;;  %v888_v46 = vmul.f32 %v875_v31, %v3806_v8 }
  0xb2   :  { %v287_v29 = vpack.c.bf16 %v158_v25, %v158_v25  ;;  %753 = vmatpush.bf16.msra.mxu3 %v3530_v35  ;;  %v177_v10 = vadd.f32 %v175_v51, %v162_v61  ;;  %v887_v25 = vmul.f32 %v875_v31, %v3787_v2  ;;  %v295_v61 = vmul.f32 %v3861_v39, %v3787_v2 }
  0xb4   :  { %741 = vmatmul.bf16.vlgmr.msra.gmra.mxu2 %v287_v29  ;;  %v3539_v29 = vld [vmem:[%s5319_s4 + $0x88] sm:$0xff] }
  0xb5   :  { %797 = vrot.lane.b32.xlu1 %v792_v27, %s3725_s19  ;;  %808 = vrot.lane.b32.xlu2 %v804_v28, %s3725_s19  ;;  %v876_v28 = vmul.f32 %v875_v31, %v3782_v0 }
  0xb6   :  { %795 = vrot.lane.b32.xlu0 %v791_v30, %s3725_s19  ;;  %v252_v30 = vstv %s4081_s23  ;;  %s4607_s23 = sld [smem:[#allocation2 + $0x500]] }
  0xb7   :  { %v198_v33 = vpop.permute.xlu1 %197  ;;  %v4028_v34 = vpop.permute.xlu2 %303 }
  0xb8   :  { %v196_v36 = vpop.permute.xlu0 %195 }
  0xb9   :  { %v199_v23 = vsel %vm77_vm0, %v196_v36, %v198_v33  ;;  %v899_v33 = vstv %s3074_s24  ;;  %s3144_s24 = sld [smem:[#allocation2 + $0x303]] }
  0xba   :  { %v201_v14 = vadd.f32 %v199_v23, %v177_v10  ;;  %v900_v41 = vmul.f32 %v899_v33, %v3787_v2  ;;  %v901_v42 = vmul.f32 %v899_v33, %v3806_v8  ;;  %v912_v52 = vmul.f32 %v899_v33, %v3801_v7 }
  0xbb   :  { %v911_v54 = vmul.f32 %v899_v33, %v3782_v0 }
  0xbd   :  { %819 = vrot.lane.b32.xlu1 %v815_v37, %s3726_s26  ;;  %821 = vrot.lane.b32.xlu2 %v816_v38, %s3726_s26  ;;  %v3538_v37 = vld [vmem:[%s5319_s4 + $0x80] sm:$0xff] }
  0xbe   :  { %810 = vrot.lane.b32.xlu0 %v805_v40, %s3725_s19 }
  0xbf   :  { %v220_v43 = vpop.permute.xlu1 %219  ;;  %v4042_v45 = vpop.permute.xlu2 %325 }
  0xc0   :  { %v211_v4 = vpop.permute.xlu0 %210  ;;  %v223_v11 = vsel %vm126_vm1, %v220_v43, %v3995_v57 }
  0xc1   :  { %v212_v12 = vsel %vm77_vm0, %v3967_v44, %v211_v4  ;;  %v3540_v44 = vld [vmem:[%s5319_s4 + $0x90] sm:$0xff]  ;;  %v225_v57 = vadd.f32 %v223_v11, %v201_v14  ;;  %v3551_v11 = vld [vmem:[%s5319_s4 + $0xe8] sm:$0xff] }
  0xc2   :  { %v214_v18 = vadd.f32 %v212_v12, %v190_v13  ;;  %616 = vmatpush.bf16.msra.mxu0 %v3540_v44 }
  0xc5   :  { %834 = vrot.lane.b32.xlu1 %v829_v48, %s3726_s26  ;;  %843 = vrot.lane.b32.xlu2 %v839_v49, %s3726_s26 }
  0xc6   :  { %832 = vrot.lane.b32.xlu0 %v828_v50, %s3726_s26  ;;  %617 = vmatpush.bf16.msra.mxu0 %v3539_v29  ;;  %v923_v50 = vstv %s3075_s10  ;;  %s3151_s10 = sld [smem:[#allocation2 + $0x384]] }
  0xc7   :  { %v235_v58 = vpop.permute.xlu1 %234  ;;  %v4061_v59 = vpop.permute.xlu2 %340  ;;  %v924_v53 = vmul.f32 %v923_v50, %v3782_v0  ;;  %v935_v6 = vmul.f32 %v923_v50, %v3787_v2  ;;  %v936_v39 = vmul.f32 %v923_v50, %v3806_v8  ;;  %v925_v10 = vmul.f32 %v923_v50, %v3801_v7 }
  0xc8   :  { %v233_v62 = vpop.permute.xlu0 %232 }
  0xc9   :  { %v236_v15 = vsel %vm126_vm1, %v233_v62, %v235_v58  ;;  %v290_v58 = vstv %s2925_s11  ;;  %s2931_s11 = sld [smem:[#allocation2 + $0x180]] }
  0xca   :  { %v238_v26 = vadd.f32 %v236_v15, %v214_v18  ;;  %618 = vmatpush.bf16.msra.mxu0 %v3538_v37  ;;  %v291_v60 = vmul.f32 %v290_v58, %v3782_v0  ;;  %v292_v62 = vmul.f32 %v290_v58, %v3787_v2  ;;  %v4158_v15 = vstv %s3142_s14  ;;  %v3548_v37 = vld [vmem:[%s5319_s4 + $0xd0] sm:$0xff] }
  0xcc   :  { %v296_v9 = vadd.f32 %v295_v61, %v291_v60  ;;  %v1176_v61 = vstv %s3145_s30  ;;  %s3295_s30 = sld [smem:[#allocation2 + $0x502]] }
  0xcd   :  { %867 = vrot.lane.b32.xlu1 %v863_v20, %s3725_s19  ;;  %869 = vrot.lane.b32.xlu2 %v864_v1, %s3725_s19  ;;  %v3552_v1 = vld [vmem:[%s5319_s4 + $0xf0] sm:$0xff] }
  0xce   :  { %845 = vrot.lane.b32.xlu0 %v840_v5, %s3726_s26  ;;  %625 = vmatpush.bf16.msra.mxu1 %v3552_v1 }
  0xcf   :  { %v302_v16 = vpop.permute.xlu1 %301  ;;  %v4091_v17 = vpop.permute.xlu2 %362 }
  0xd0   :  { %v246_v19 = vpop.permute.xlu0 %245  ;;  %v305_v3 = vsel %vm77_vm0, %v302_v16, %v4028_v34 }
  0xd1   :  { %v247_v22 = vsel %vm126_vm1, %v4014_v21, %v246_v19  ;;  %v307_v12 = vadd.f32 %v305_v3, %v292_v62  ;;  %v1177_v3 = vmul.f32 %v1176_v61, %v3782_v0 }
  0xd2   :  { %v249_v27 = vadd.f32 %v247_v22, %v225_v57  ;;  %626 = vmatpush.bf16.msra.mxu1 %v3551_v11 }
  0xd4   :  { %v250_v32 = vmax.f32 %v238_v26, %v249_v27  ;;  %v1117_v27 = vmul.f32 %v4158_v15, %v3801_v7 }
  0xd5   :  { %882 = vrot.lane.b32.xlu1 %v877_v24, %s3725_s19  ;;  %891 = vrot.lane.b32.xlu2 %v887_v25, %s3725_s19  ;;  %v1128_v24 = vstv %s3143_s2  ;;  %s3219_s2 = sld [smem:[#allocation2 + $0x402]] }
  0xd6   :  { %880 = vrot.lane.b32.xlu0 %v876_v28, %s3725_s19  ;;  %v253_v21 = vadd.f32 %v252_v30, %v250_v32  ;;  %v1129_v28 = vmul.f32 %v1128_v24, %v3782_v0  ;;  %v1116_v30 = vmul.f32 %v4158_v15, %v3782_v0  ;;  %v3549_v32 = vld [vmem:[%s5319_s4 + $0xd8] sm:$0xff] }
  0xd7   :  { %v317_v35 = vpop.permute.xlu1 %316  ;;  %v4108_v36 = vpop.permute.xlu2 %375 }
  0xd8   :  { %v315_v38 = vpop.permute.xlu0 %314  ;;  %v254_v40 = vmax.f32 %v253_v21, 0.0  ;;  %v382_v21 = vstv %s4150_s18  ;;  %s4240_s18 = sld [smem:[#allocation5 + $0x3]] }
  0xd9   :  { %v318_v34 = vsel %vm77_vm0, %v315_v38, %v317_v35 }
  0xda   :  { %v288_v43 = vpack.c.bf16 %v254_v40, %v254_v40 }
  0xdc   :  { %754 = vmatmul.bf16.vlgmr.msra.gmra.mxu3 %v288_v43 }
  0xdd   :  { %904 = vrot.lane.b32.xlu1 %v900_v41, %s3725_s19  ;;  %906 = vrot.lane.b32.xlu2 %v901_v42, %s3725_s19  ;;  %v1140_v41 = vmul.f32 %v1128_v24, %v3787_v2  ;;  %v1141_v42 = vmul.f32 %v1128_v24, %v3806_v8 }
  0xde   :  { %893 = vrot.lane.b32.xlu0 %v888_v46, %s3725_s19  ;;  %v1130_v46 = vmul.f32 %v1128_v24, %v3801_v7 }
  0xdf   :  { %v339_v4 = vpop.permute.xlu1 %338  ;;  %v4119_v48 = vpop.permute.xlu2 %410 }
  0xe0   :  { %v328_v49 = vpop.permute.xlu0 %327  ;;  %v342_v14 = vsel %vm77_vm0, %v339_v4, %v4061_v59  ;;  %v3550_v59 = vld [vmem:[%s5319_s4 + $0xe0] sm:$0xff]  ;;  %v3547_v4 = vld [vmem:[%s5319_s4 + $0xc8] sm:$0xff] }
  0xe1   :  { %v329_v23 = vsel %vm77_vm0, %v4042_v45, %v328_v49  ;;  %v320_v45 = vadd.f32 %v318_v34, %v296_v9  ;;  %627 = vmatpush.bf16.msra.mxu1 %v3550_v59  ;;  %v1152_v49 = vstv %s3144_s24  ;;  %v386_v9 = vstv %s2931_s11  ;;  %v3560_v34 = vld [vmem:[%s5319_s4 + $0x130] sm:$0xff]  ;;  %s4358_s11 = sld [smem:[#allocation5 + $0x4]] }
  0xe2   :  { %v331_v31 = vadd.f32 %v329_v23, %v307_v12  ;;  %v1154_v55 = vmul.f32 %v1152_v49, %v3806_v8  ;;  %v1164_v58 = vmul.f32 %v1152_v49, %v3782_v0  ;;  %v1153_v60 = vmul.f32 %v1152_v49, %v3787_v2  ;;  %s3227_s24 = sld [smem:[#allocation2 + $0x484]] }
  0xe3   :  { %v344_v18 = vadd.f32 %v342_v14, %v320_v45  ;;  %v387_v23 = vmul.f32 %v386_v9, %v3782_v0  ;;  %v1188_v59 = vmul.f32 %v1176_v61, %v3787_v2 }
  0xe5   :  { %917 = vrot.lane.b32.xlu1 %v912_v52, %s3726_s26  ;;  %928 = vrot.lane.b32.xlu2 %v924_v53, %s3726_s26  ;;  %v3546_v53 = vld [vmem:[%s5319_s4 + $0xc0] sm:$0xff] }
  0xe6   :  { %915 = vrot.lane.b32.xlu0 %v911_v54, %s3726_s26  ;;  %628 = vmatpush.bf16.msra.mxu1 %v3549_v32 }
  0xe7   :  { %v352_v51 = vpop.permute.xlu1 %351  ;;  %v4134_v20 = vpop.permute.xlu2 %423 }
  0xe8   :  { %v350_v5 = vpop.permute.xlu0 %349 }
  0xe9   :  { %v353_v13 = vsel %vm126_vm1, %v350_v5, %v352_v51  ;;  %v1178_v5 = vmul.f32 %v1176_v61, %v3801_v7 }
  0xea   :  { %v355_v16 = vadd.f32 %v353_v13, %v331_v31  ;;  %629 = vmatpush.bf16.msra.mxu1 %v3548_v37  ;;  %v388_v13 = vmul.f32 %v386_v9, %v3787_v2  ;;  %v4226_v31 = vstv %s3148_s12  ;;  %s3302_s12 = sld [smem:[#allocation2 + $0x583]] }
  0xed   :  { %939 = vrot.lane.b32.xlu1 %v935_v6, %s3726_s26  ;;  %941 = vrot.lane.b32.xlu2 %v936_v39, %s3726_s26  ;;  %v1165_v6 = vmul.f32 %v1152_v49, %v3801_v7  ;;  %v3561_v39 = vld [vmem:[%s5319_s4 + $0x138] sm:$0xff] }
  0xee   :  { %930 = vrot.lane.b32.xlu0 %v925_v10, %s3726_s26  ;;  %630 = vmatpush.bf16.msra.mxu1 %v3547_v4  ;;  %v391_v10 = vmul.f32 %v3908_v63, %v3787_v2  ;;  %v1212_v63 = vmul.f32 %v4226_v31, %v3782_v0 }
  0xef   :  { %v374_v44 = vpop.permute.xlu1 %373  ;;  %v4160_v57 = vpop.permute.xlu2 %445  ;;  %1081 = vmatpush.bf16.msrb.mxu0 %v3561_v39  ;;  %v4302_v39 = vld [vmem:[%s5315_s0 + $0x8] sm:$0xff] }
  0xf0   :  { %v377_v19 = vsel %vm126_vm1, %v374_v44, %v4108_v36  ;;  %v365_v22 = vpop.permute.xlu0 %364  ;;  %v392_v44 = vadd.f32 %v391_v10, %v387_v23  ;;  %v4308_v23 = vld [vmem:[%s5316_s1 + $0x8] sm:$0xff] }
  0xf1   :  { %v379_v25 = vadd.f32 %v377_v19, %v355_v16  ;;  %v366_v26 = vsel %vm126_vm1, %v4091_v17, %v365_v22  ;;  %v1189_v16 = vmul.f32 %v1176_v61, %v3806_v8  ;;  %v3555_v61 = vld [vmem:[%s5319_s4 + $0x108] sm:$0xff] }
  0xf2   :  { %v368_v29 = vadd.f32 %v366_v26, %v344_v18  ;;  %631 = vmatpush.bf16.msra.mxu1 %v3546_v53  ;;  %v3559_v18 = vld [vmem:[%s5319_s4 + $0x128] sm:$0xff] }
  0xf3   :  { %1082 = vmatpush.bf16.msrb.mxu0 %v3560_v34  ;;  %v1272_v34 = vstv %s3151_s10  ;;  %s5041_s10 = sld [smem:[#allocation2 + $0x700]] }
  0xf4   :  { %v380_v33 = vmax.f32 %v368_v29, %v379_v25 }
  0xf5   :  { %1122 = vrot.lane.b32.xlu1 %v1117_v27, %s3725_s19  ;;  %1133 = vrot.lane.b32.xlu2 %v1129_v28, %s3725_s19 }
  0xf6   :  { %1120 = vrot.lane.b32.xlu0 %v1116_v30, %s3725_s19  ;;  %v383_v17 = vadd.f32 %v382_v21, %v380_v33 }
  0xf7   :  { %v400_v35 = vpop.permute.xlu1 %399  ;;  %v4181_v36 = vpop.permute.xlu2 %460  ;;  %1083 = vmatpush.bf16.msrb.mxu0 %v3559_v18  ;;  %v3567_v18 = vld [vmem:[%s5319_s4 + $0x168] sm:$0xff] }
  0xf8   :  { %v398_v38 = vpop.permute.xlu0 %397  ;;  %v384_v40 = vmax.f32 %v383_v17, 0.0 }
  0xf9   :  { %v401_v45 = vsel %vm77_vm0, %v398_v38, %v400_v35  ;;  %v1213_v38 = vmul.f32 %v4226_v31, %v3801_v7 }
  0xfa   :  { %v513_v43 = vpack.c.bf16 %v384_v40, %v384_v40  ;;  %v403_v24 = vadd.f32 %v401_v45, %v388_v13  ;;  %v3557_v40 = vld [vmem:[%s5319_s4 + $0x118] sm:$0xff]  ;;  %v3568_v45 = vld [vmem:[%s5319_s4 + $0x170] sm:$0xff] }
  0xfc   :  { %619 = vmatmul.bf16.vlgmr.msra.gmra.mxu0 %v513_v43 }
  0xfd   :  { %1144 = vrot.lane.b32.xlu1 %v1140_v41, %s3725_s19  ;;  %1146 = vrot.lane.b32.xlu2 %v1141_v42, %s3725_s19  ;;  %v478_v41 = vstv %s4240_s18  ;;  %s3218_s18 = sld [smem:[#allocation2 + $0x401]] }
  0xfe   :  { %1135 = vrot.lane.b32.xlu0 %v1130_v46, %s3725_s19 }
  0xff   :  { %v422_v50 = vpop.permute.xlu1 %421  ;;  %v4195_v52 = vpop.permute.xlu2 %771 }
 0x100   :  { %v413_v54 = vpop.permute.xlu0 %412  ;;  %v425_v19 = vsel %vm77_vm0, %v422_v50, %v4134_v20  ;;  %v1224_v20 = vstv %s3149_s15  ;;  %v1248_v50 = vstv %s3150_s22  ;;  %s3224_s22 = sld [smem:[#allocation2 + $0x481]] }
 0x101   :  { %v414_v22 = vsel %vm77_vm0, %v4119_v48, %v413_v54  ;;  %v427_v2 = vadd.f32 %v425_v19, %v403_v24  ;;  %v1225_v17 = vmul.f32 %v1224_v20, %v3782_v0  ;;  %v1226_v35 = vmul.f32 %v1224_v20, %v3801_v7  ;;  %v3556_v7 = vld [vmem:[%s5319_s4 + $0x110] sm:$0xff]  ;;  %v4278_v54 = vld [vmem:[%s5316_s1] sm:$0xff] }
 0x102   :  { %v416_v27 = vadd.f32 %v414_v22, %v392_v44  ;;  %v1237_v53 = vmul.f32 %v1224_v20, %v3806_v8  ;;  %v1261_v9 = vmul.f32 %v4302_v39, %v1248_v50  ;;  %v1250_v10 = vmul.f32 %v4308_v23, %v1248_v50 }
 0x103   :  { %v1284_v44 = vmul.f32 %v4278_v54, %v1272_v34  ;;  %v760_v19 = vstv %s3065_s3  ;;  %v765_v24 = vmul.f32 %v4278_v54, %v3972_v47  ;;  %s3071_s3 = sld [smem:[#allocation2 + $0x280]] }
 0x105   :  { %1159 = vrot.lane.b32.xlu1 %v1154_v55, %s3725_s19  ;;  %1168 = vrot.lane.b32.xlu2 %v1164_v58, %s3726_s26  ;;  %v1249_v55 = vmul.f32 %v4278_v54, %v1248_v50 }
 0x106   :  { %1157 = vrot.lane.b32.xlu0 %v1153_v60, %s3725_s19  ;;  %v1236_v60 = vmul.f32 %v4278_v54, %v1224_v20  ;;  %v762_v20 = vmul.f32 %v4278_v54, %v760_v19 }
 0x107   :  { %v437_v62 = vpop.permute.xlu1 %436  ;;  %v4206_v51 = vpop.permute.xlu2 %786 }
 0x108   :  { %v435_v1 = vpop.permute.xlu0 %434 }
 0x109   :  { %v438_v25 = vsel %vm77_vm0, %v435_v1, %v437_v62  ;;  %v3554_v1 = vld [vmem:[%s5319_s4 + $0x100] sm:$0xff] }
 0x10a   :  { %v440_v30 = vadd.f32 %v438_v25, %v416_v27  ;;  %v4334_v25 = vstv %s3294_s21  ;;  %v3566_v27 = vld [vmem:[%s5319_s4 + $0x160] sm:$0xff]  ;;  %s4597_s21 = sld [smem:[#allocation5 + $0x7]] }
 0x10d   :  { %1181 = vrot.lane.b32.xlu1 %v1177_v3, %s3726_s26  ;;  %1183 = vrot.lane.b32.xlu2 %v1178_v5, %s3726_s26  ;;  %v4296_v5 = vld [vmem:[%s5315_s0] sm:$0xff] }
 0x10e   :  { %1170 = vrot.lane.b32.xlu0 %v1165_v6, %s3726_s26  ;;  %v1260_v6 = vmul.f32 %v4296_v5, %v1248_v50  ;;  %v761_v22 = vmul.f32 %v4296_v5, %v760_v19 }
 0x10f   :  { %v459_v11 = vpop.permute.xlu1 %458  ;;  %v4220_v12 = vpop.permute.xlu2 %808 }
 0x110   :  { %v448_v14 = vpop.permute.xlu0 %447  ;;  %v462_v48 = vsel %vm126_vm1, %v459_v11, %v4181_v36  ;;  %v3569_v11 = vld [vmem:[%s5319_s4 + $0x178] sm:$0xff] }
 0x111   :  { %v449_v26 = vsel %vm126_vm1, %v4160_v57, %v448_v14  ;;  %v3558_v57 = vld [vmem:[%s5319_s4 + $0x120] sm:$0xff]  ;;  %v464_v37 = vadd.f32 %v462_v48, %v440_v30  ;;  %1094 = vmatpush.bf16.msrb.mxu1 %v3569_v11  ;;  %v1815_v30 = vmul.f32 %v4302_v39, %v4334_v25 }
 0x112   :  { %v451_v32 = vadd.f32 %v449_v26, %v427_v2  ;;  %1084 = vmatpush.bf16.msrb.mxu0 %v3558_v57  ;;  %v1814_v57 = vmul.f32 %v4296_v5, %v4334_v25 }
 0x115   :  { %1194 = vrot.lane.b32.xlu1 %v1189_v16, %s3726_s26  ;;  %1216 = vrot.lane.b32.xlu2 %v1212_v63, %s3725_s19  ;;  %v1274_v63 = vmul.f32 %v4302_v39, %v1272_v34 }
 0x116   :  { %1192 = vrot.lane.b32.xlu0 %v1188_v59, %s3726_s26  ;;  %1085 = vmatpush.bf16.msrb.mxu0 %v3557_v40  ;;  %v1273_v59 = vmul.f32 %v4296_v5, %v1272_v34 }
 0x117   :  { %v472_v28 = vpop.permute.xlu1 %471  ;;  %v4250_v29 = vpop.permute.xlu2 %821  ;;  %1095 = vmatpush.bf16.msrb.mxu1 %v3568_v45 }
 0x118   :  { %v470_v21 = vpop.permute.xlu0 %469 }
 0x119   :  { %v473_v33 = vsel %vm126_vm1, %v470_v21, %v472_v28  ;;  %v1285_v21 = vmul.f32 %v4308_v23, %v1272_v34 }
 0x11a   :  { %v475_v36 = vadd.f32 %v473_v33, %v451_v32  ;;  %1086 = vmatpush.bf16.msrb.mxu0 %v3556_v7  ;;  %v766_v32 = vadd.f32 %v765_v24, %v761_v22  ;;  %v3565_v33 = vld [vmem:[%s5319_s4 + $0x158] sm:$0xff] }
 0x11b   :  { %1096 = vmatpush.bf16.msrb.mxu1 %v3567_v18 }
 0x11c   :  { %v476_v42 = vmax.f32 %v464_v37, %v475_v36 }
 0x11d   :  { %1229 = vrot.lane.b32.xlu1 %v1225_v17, %s3725_s19  ;;  %1231 = vrot.lane.b32.xlu2 %v1226_v35, %s3725_s19 }
 0x11e   :  { %1218 = vrot.lane.b32.xlu0 %v1213_v38, %s3725_s19  ;;  %v479_v0 = vadd.f32 %v478_v41, %v476_v42  ;;  %1087 = vmatpush.bf16.msrb.mxu0 %v3555_v61 }
 0x11f   :  { %v4267_v43 = vpop.permute.xlu1 %784  ;;  %v4269_v46 = vpop.permute.xlu2 %843  ;;  %1097 = vmatpush.bf16.msrb.mxu1 %v3566_v27  ;;  %v3577_v27 = vld [vmem:[%s5319_s4 + $0x1b8] sm:$0xff] }
 0x120   :  { %v774_v4 = vpop.permute.xlu0 %773  ;;  %v480_v49 = vmax.f32 %v479_v0, 0.0  ;;  %v788_v17 = vsel %vm77_vm0, %v4267_v43, %v4206_v51  ;;  %v4367_v51 = vstv %s3300_s27  ;;  %1430 = vmatpush.bf16.msrb.mxu2 %v3577_v27  ;;  %v1946_v27 = vstv %s3302_s12  ;;  %s3303_s12 = sld [smem:[#allocation2 + $0x584]] }
 0x121   :  { %v775_v47 = vsel %vm77_vm0, %v4195_v52, %v774_v4  ;;  %v790_v38 = vadd.f32 %v788_v17, %v766_v32  ;;  %v1826_v4 = vstv %s3295_s30  ;;  %v1910_v61 = vmul.f32 %v4296_v5, %v4367_v51  ;;  %s3446_s27 = sld [smem:[#allocation2 + $0x701]] }
 0x122   :  { %v514_v58 = vpack.c.bf16 %v480_v49, %v480_v49  ;;  %1088 = vmatpush.bf16.msrb.mxu0 %v3554_v1  ;;  %v777_v35 = vadd.f32 %v775_v47, %v762_v20  ;;  %v3563_v1 = vld [vmem:[%s5319_s4 + $0x148] sm:$0xff]  ;;  %v1839_v45 = vmul.f32 %v4308_v23, %v1826_v4  ;;  %v856_v20 = vstv %s3071_s3  ;;  %s3220_s3 = sld [smem:[#allocation2 + $0x403]] }
 0x123   :  { %1098 = vmatpush.bf16.msrb.mxu1 %v3565_v33  ;;  %v861_v47 = vmul.f32 %v4278_v54, %v4059_v56  ;;  %s3453_s30 = sld [smem:[#allocation2 + $0x782]] }
 0x124   :  { %632 = vmatmul.bf16.vlgmr.msra.gmra.mxu1 %v514_v58 }
 0x125   :  { %1242 = vrot.lane.b32.xlu1 %v1237_v53, %s3725_s19  ;;  %1253 = vrot.lane.b32.xlu2 %v1249_v55, %s3725_s19  ;;  %v1911_v53 = vmul.f32 %v4302_v39, %v4367_v51  ;;  %v1827_v55 = vmul.f32 %v4296_v5, %v1826_v4 }
 0x126   :  { %1240 = vrot.lane.b32.xlu0 %v1236_v60, %s3725_s19 }
 0x127   :  { %v798_v8 = vpop.permute.xlu1 %797  ;;  %v4288_v62 = vpop.permute.xlu2 %869 }
 0x128   :  { %v796_v3 = vpop.permute.xlu0 %795 }
 0x129   :  { %v799_v52 = vsel %vm77_vm0, %v796_v3, %v798_v8  ;;  %v852_v8 = vstv %s4358_s11  ;;  %s3379_s11 = sld [smem:[#allocation2 + $0x684]] }
 0x12a   :  { %v801_v40 = vadd.f32 %v799_v52, %v777_v35 }
 0x12d   :  { %1264 = vrot.lane.b32.xlu1 %v1260_v6, %s3726_s26  ;;  %1266 = vrot.lane.b32.xlu2 %v1261_v9, %s3726_s26  ;;  %v3562_v9 = vld [vmem:[%s5319_s4 + $0x140] sm:$0xff] }
 0x12e   :  { %1255 = vrot.lane.b32.xlu0 %v1250_v10, %s3725_s19 }
 0x12f   :  { %v820_v13 = vpop.permute.xlu1 %819  ;;  %v4317_v14 = vpop.permute.xlu2 %891 }
 0x130   :  { %v811_v16 = vpop.permute.xlu0 %810  ;;  %v823_v37 = vsel %vm126_vm1, %v820_v13, %v4250_v29  ;;  %v1838_v13 = vmul.f32 %v4278_v54, %v1826_v4 }
 0x131   :  { %v812_v36 = vsel %vm77_vm0, %v4220_v12, %v811_v16  ;;  %v3564_v12 = vld [vmem:[%s5319_s4 + $0x150] sm:$0xff]  ;;  %v825_v29 = vadd.f32 %v823_v37, %v801_v40 }
 0x132   :  { %v814_v43 = vadd.f32 %v812_v36, %v790_v38  ;;  %1099 = vmatpush.bf16.msrb.mxu1 %v3564_v12 }
 0x135   :  { %1279 = vrot.lane.b32.xlu1 %v1274_v63, %s3726_s26  ;;  %1288 = vrot.lane.b32.xlu2 %v1284_v44, %s3726_s26  ;;  %v1828_v63 = vmul.f32 %v4302_v39, %v1826_v4  ;;  %v1922_v44 = vstv %s3301_s16 }
 0x136   :  { %1277 = vrot.lane.b32.xlu0 %v1273_v59, %s3726_s26  ;;  %1100 = vmatpush.bf16.msrb.mxu1 %v3563_v1  ;;  %v1924_v22 = vmul.f32 %v4302_v39, %v1922_v44  ;;  %v1934_v24 = vmul.f32 %v4278_v54, %v1922_v44  ;;  %v1935_v38 = vmul.f32 %v4308_v23, %v1922_v44 }
 0x137   :  { %v4336_v26 = vpop.f32.mrf.mxu2  ;;  %v835_v2 = vpop.permute.xlu1 %834 }
 0x138   :  { %v833_v48 = vpop.permute.xlu0 %832  ;;  %v4342_v28 = vpop.permute.xlu2 %906 }
 0x139   :  { %v836_v41 = vsel %vm126_vm1, %v833_v48, %v835_v2  ;;  %v1923_v2 = vmul.f32 %v4296_v5, %v1922_v44  ;;  %v857_v48 = vmul.f32 %v4296_v5, %v856_v20 }
 0x13a   :  { %v838_v58 = vadd.f32 %v836_v41, %v814_v43  ;;  %1101 = vmatpush.bf16.msrb.mxu1 %v3562_v9  ;;  %v3573_v9 = vld [vmem:[%s5319_s4 + $0x198] sm:$0xff] }
 0x13b   :  { %v862_v37 = vadd.f32 %v861_v47, %v857_v48  ;;  %v3570_v48 = vld [vmem:[%s5319_s4 + $0x180] sm:$0xff] }
 0x13d   :  { %1818 = vrot.lane.b32.xlu1 %v1814_v57, %s3725_s19  ;;  %1820 = vrot.lane.b32.xlu2 %v1815_v30, %s3725_s19  ;;  %v4412_v57 = vstv %s3218_s18  ;;  %v858_v30 = vmul.f32 %v4278_v54, %v856_v20  ;;  %s3141_s18 = sld [smem:[#allocation2 + $0x300]] }
 0x13e   :  { %1290 = vrot.lane.b32.xlu0 %v1285_v21, %s3726_s26  ;;  %v3576_v21 = vld [vmem:[%s5319_s4 + $0x1b0] sm:$0xff]  ;;  %v1465_v56 = vmul.f32 %v4296_v5, %v4412_v57  ;;  %v1466_v35 = vmul.f32 %v4302_v39, %v4412_v57 }
 0x13f   :  { %v744_v42 = vpop.f32.mrf.mxu2  ;;  %v868_v0 = vpop.permute.xlu1 %867  ;;  %1431 = vmatpush.bf16.msrb.mxu2 %v3576_v21  ;;  %v1958_v21 = vmul.f32 %v4296_v5, %v1946_v27 }
 0x140   :  { %v846_v7 = vpop.permute.xlu0 %845  ;;  %v4373_v49 = vpop.permute.xlu2 %928  ;;  %v871_v33 = vsel %vm77_vm0, %v868_v0, %v4288_v62  ;;  %v3575_v62 = vld [vmem:[%s5319_s4 + $0x1a8] sm:$0xff] }
 0x141   :  { %v847_v50 = vsel %vm126_vm1, %v4269_v46, %v846_v7  ;;  %v873_v40 = vadd.f32 %v871_v33, %v858_v30  ;;  %v1947_v33 = vmul.f32 %v4278_v54, %v1946_v27 }
 0x142   :  { %v849_v60 = vadd.f32 %v847_v50, %v825_v29  ;;  %v4441_v29 = vstv %s3224_s22  ;;  %s3221_s22 = sld [smem:[#allocation2 + $0x404]] }
 0x143   :  { %1432 = vmatpush.bf16.msrb.mxu2 %v3575_v62  ;;  %v1562_v1 = vmul.f32 %v4302_v39, %v4441_v29 }
 0x144   :  { %v850_v3 = vmax.f32 %v838_v58, %v849_v60  ;;  %v1850_v58 = vstv %s3296_s25  ;;  %s4520_s25 = sld [smem:[#allocation5 + $0x6]] }
 0x145   :  { %1916 = vrot.lane.b32.xlu1 %v1911_v53, %s3725_s19  ;;  %1831 = vrot.lane.b32.xlu2 %v1827_v55, %s3725_s19 }
 0x146   :  { %1914 = vrot.lane.b32.xlu0 %v1910_v61, %s3725_s19  ;;  %v853_v46 = vadd.f32 %v852_v8, %v850_v3  ;;  %v1851_v3 = vmul.f32 %v4278_v54, %v1850_v58 }
 0x147   :  { %v883_v6 = vpop.permute.xlu1 %882 }
 0x148   :  { %v881_v10 = vpop.permute.xlu0 %880  ;;  %v854_v11 = vmax.f32 %v853_v46, 0.0  ;;  %v942_v34 = vpop.permute.xlu2 %941 }
 0x149   :  { %v884_v41 = vsel %vm77_vm0, %v881_v10, %v883_v6  ;;  %v1561_v6 = vmul.f32 %v4296_v5, %v4441_v29  ;;  %v948_v10 = vstv %s4433_s29  ;;  %s3297_s29 = sld [smem:[#allocation2 + $0x504]] }
 0x14a   :  { %v983_v16 = vpack.c.bf16 %v854_v11, %v854_v11 }
 0x14c   :  { %1089 = vmatmul.bf16.vlgmr.msrb.gmra.mxu0 %v983_v16 }
 0x14d   :  { %1842 = vrot.lane.b32.xlu1 %v1838_v13, %s3725_s19  ;;  %1844 = vrot.lane.b32.xlu2 %v1839_v45, %s3725_s19  ;;  %v3572_v45 = vld [vmem:[%s5319_s4 + $0x190] sm:$0xff] }
 0x14e   :  { %1833 = vrot.lane.b32.xlu0 %v1828_v63, %s3725_s19 }
 0x14f   :  { %v905_v59 = vpop.permute.xlu1 %904 }
 0x150   :  { %v894_v18 = vpop.permute.xlu0 %893  ;;  %v4398_v19 = vpop.permute.xlu2 %1133  ;;  %v908_v0 = vsel %vm77_vm0, %v905_v59, %v4342_v28  ;;  %v3574_v28 = vld [vmem:[%s5319_s4 + $0x1a0] sm:$0xff]  ;;  %v1862_v59 = vmul.f32 %v4296_v5, %v1850_v58 }
 0x151   :  { %v895_v36 = vsel %vm77_vm0, %v4317_v14, %v894_v18  ;;  %v886_v14 = vadd.f32 %v884_v41, %v862_v37  ;;  %1433 = vmatpush.bf16.msrb.mxu2 %v3574_v28  ;;  %v1863_v18 = vmul.f32 %v4302_v39, %v1850_v58  ;;  %v3585_v41 = vld [vmem:[%s5319_s4 + $0x1f8] sm:$0xff] }
 0x152   :  { %v897_v12 = vadd.f32 %v895_v36, %v873_v40  ;;  %v1959_v40 = vmul.f32 %v4302_v39, %v1946_v27  ;;  %1443 = vmatpush.bf16.msrb.mxu3 %v3585_v41 }
 0x153   :  { %v910_v50 = vadd.f32 %v908_v0, %v886_v14 }
 0x155   :  { %1929 = vrot.lane.b32.xlu1 %v1924_v22, %s3725_s19  ;;  %1938 = vrot.lane.b32.xlu2 %v1934_v24, %s3725_s19  ;;  %v1852_v24 = vmul.f32 %v4308_v23, %v1850_v58 }
 0x156   :  { %1927 = vrot.lane.b32.xlu0 %v1923_v2, %s3725_s19  ;;  %1434 = vmatpush.bf16.msrb.mxu2 %v3573_v9  ;;  %v3571_v2 = vld [vmem:[%s5319_s4 + $0x188] sm:$0xff] }
 0x157   :  { %v918_v32 = vpop.permute.xlu1 %917 }
 0x158   :  { %v916_v17 = vpop.permute.xlu0 %915  ;;  %v4420_v52 = vpop.permute.xlu2 %1146 }
 0x159   :  { %v919_v42 = vsel %vm126_vm1, %v916_v17, %v918_v32  ;;  %v1948_v32 = vmul.f32 %v4308_v23, %v1946_v27  ;;  %v1477_v17 = vstv %s3219_s2  ;;  %v3581_v27 = vld [vmem:[%s5319_s4 + $0x1d8] sm:$0xff]  ;;  %s3370_s2 = sld [smem:[#allocation2 + $0x601]] }
 0x15a   :  { %v921_v43 = vadd.f32 %v919_v42, %v897_v12  ;;  %1435 = vmatpush.bf16.msrb.mxu2 %v3572_v45  ;;  %v1479_v62 = vmul.f32 %v4302_v39, %v1477_v17  ;;  %v1109_v42 = vstv %s3141_s18  ;;  %v1114_v12 = vmul.f32 %v4278_v54, %v4158_v15  ;;  %s3147_s18 = sld [smem:[#allocation2 + $0x380]] }
 0x15b   :  { %v1110_v0 = vmul.f32 %v4296_v5, %v1109_v42 }
 0x15d   :  { %1469 = vrot.lane.b32.xlu1 %v1465_v56, %s3725_s19  ;;  %1471 = vrot.lane.b32.xlu2 %v1466_v35, %s3725_s19 }
 0x15e   :  { %1940 = vrot.lane.b32.xlu0 %v1935_v38, %s3725_s19  ;;  %1436 = vmatpush.bf16.msrb.mxu2 %v3571_v2  ;;  %v1478_v38 = vmul.f32 %v4296_v5, %v1477_v17 }
 0x15f   :  { %v4443_v7 = vpop.f32.mrf.mxu3  ;;  %v940_v4 = vpop.permute.xlu1 %939 }
 0x160   :  { %v943_v53 = vsel %vm126_vm1, %v940_v4, %v942_v34  ;;  %v931_v55 = vpop.permute.xlu0 %930  ;;  %v4449_v60 = vpop.permute.xlu2 %1168  ;;  %v1111_v4 = vmul.f32 %v4278_v54, %v1109_v42  ;;  %v3579_v42 = vld [vmem:[%s5319_s4 + $0x1c8] sm:$0xff] }
 0x161   :  { %v945_v61 = vadd.f32 %v943_v53, %v921_v43  ;;  %v932_v8 = vsel %vm126_vm1, %v4373_v49, %v931_v55  ;;  %v3584_v43 = vld [vmem:[%s5319_s4 + $0x1f0] sm:$0xff] }
 0x162   :  { %v934_v46 = vadd.f32 %v932_v8, %v910_v50  ;;  %1437 = vmatpush.bf16.msrb.mxu2 %v3570_v48  ;;  %v1573_v50 = vstv %s3225_s20  ;;  %1444 = vmatpush.bf16.msrb.mxu3 %v3584_v43  ;;  %v1115_v8 = vadd.f32 %v1114_v12, %v1110_v0  ;;  %v1970_v0 = vstv %s3303_s12  ;;  %s3226_s20 = sld [smem:[#allocation2 + $0x483]] }
 0x163   :  { %v1574_v15 = vmul.f32 %v4296_v5, %v1573_v50  ;;  %s5054_s12 = sld [smem:[#allocation2 + $0x780]] }
 0x164   :  { %v946_v11 = vmax.f32 %v934_v46, %v945_v61  ;;  %v1490_v61 = vmul.f32 %v4308_v23, %v1477_v17 }
 0x165   :  { %1567 = vrot.lane.b32.xlu1 %v1562_v1, %s3725_s19  ;;  %1855 = vrot.lane.b32.xlu2 %v1851_v3, %s3725_s19  ;;  %v1489_v1 = vmul.f32 %v4278_v54, %v1477_v17 }
 0x166   :  { %1565 = vrot.lane.b32.xlu0 %v1561_v6, %s3725_s19  ;;  %v949_v49 = vadd.f32 %v948_v10, %v946_v11  ;;  %v3583_v6 = vld [vmem:[%s5319_s4 + $0x1e8] sm:$0xff] }
 0x167   :  { %v757_v34 = vpop.f32.mrf.mxu3  ;;  %v1123_v13 = vpop.permute.xlu1 %1122  ;;  %1445 = vmatpush.bf16.msrb.mxu3 %v3583_v6 }
 0x168   :  { %v1121_v16 = vpop.permute.xlu0 %1120  ;;  %v950_v63 = vmax.f32 %v949_v49, 0.0  ;;  %v4468_v44 = vpop.permute.xlu2 %1183 }
 0x169   :  { %v1124_v55 = vsel %vm77_vm0, %v1121_v16, %v1123_v13  ;;  %v3582_v13 = vld [vmem:[%s5319_s4 + $0x1e0] sm:$0xff] }
 0x16a   :  { %v984_v22 = vpack.c.bf16 %v950_v63, %v950_v63  ;;  %v1126_v9 = vadd.f32 %v1124_v55, %v1111_v4 }
 0x16b   :  { %1446 = vmatpush.bf16.msrb.mxu3 %v3582_v13 }
 0x16c   :  { %1102 = vmatmul.bf16.vlgmr.msrb.gmra.mxu1 %v984_v22  ;;  %v1586_v22 = vmul.f32 %v4308_v23, %v1573_v50 }
 0x16d   :  { %1866 = vrot.lane.b32.xlu1 %v1862_v59, %s3726_s26  ;;  %1868 = vrot.lane.b32.xlu2 %v1863_v18, %s3726_s26  ;;  %v1585_v18 = vmul.f32 %v4278_v54, %v1573_v50 }
 0x16e   :  { %1857 = vrot.lane.b32.xlu0 %v1852_v24, %s3725_s19 }
 0x16f   :  { %v1145_v20 = vpop.permute.xlu1 %1144  ;;  %1447 = vmatpush.bf16.msrb.mxu3 %v3581_v27 }
 0x170   :  { %v1136_v47 = vpop.permute.xlu0 %1135  ;;  %v4482_v30 = vpop.permute.xlu2 %1216  ;;  %v1148_v3 = vsel %vm77_vm0, %v1145_v20, %v4420_v52  ;;  %v1201_v20 = vstv %s4520_s25  ;;  %s4635_s25 = sld [smem:[#allocation2 + $0x580]] }
 0x171   :  { %v1137_v46 = vsel %vm77_vm0, %v4398_v19, %v1136_v47  ;;  %v1150_v52 = vadd.f32 %v1148_v3, %v1126_v9  ;;  %v1983_v3 = vmul.f32 %v4308_v23, %v1970_v0  ;;  %v1982_v9 = vmul.f32 %v4278_v54, %v1970_v0 }
 0x172   :  { %v1139_v49 = vadd.f32 %v1137_v46, %v1115_v8 }
 0x175   :  { %1953 = vrot.lane.b32.xlu1 %v1948_v32, %s3725_s19  ;;  %1962 = vrot.lane.b32.xlu2 %v1958_v21, %s3726_s26  ;;  %v1874_v32 = vstv %s3297_s29  ;;  %s3447_s29 = sld [smem:[#allocation2 + $0x702]] }
 0x176   :  { %1951 = vrot.lane.b32.xlu0 %v1947_v33, %s3725_s19  ;;  %v3580_v33 = vld [vmem:[%s5319_s4 + $0x1d0] sm:$0xff]  ;;  %v1875_v41 = vmul.f32 %v4296_v5, %v1874_v32  ;;  %v1887_v55 = vmul.f32 %v4308_v23, %v1874_v32 }
 0x177   :  { %v1160_v56 = vpop.permute.xlu1 %1159  ;;  %1448 = vmatpush.bf16.msrb.mxu3 %v3580_v33 }
 0x178   :  { %v1158_v35 = vpop.permute.xlu0 %1157  ;;  %v4490_v37 = vpop.permute.xlu2 %1231 }
 0x179   :  { %v4492_v36 = vpop.f32.mrf.mxu0  ;;  %v1161_v10 = vsel %vm77_vm0, %v1158_v35, %v1160_v56 }
 0x17b   :  { %1449 = vmatpush.bf16.msrb.mxu3 %v3579_v42 }
 0x17d   :  { %1482 = vrot.lane.b32.xlu1 %v1478_v38, %s3725_s19  ;;  %1484 = vrot.lane.b32.xlu2 %v1479_v62, %s3725_s19  ;;  %v1876_v38 = vmul.f32 %v4302_v39, %v1874_v32  ;;  %v1886_v62 = vmul.f32 %v4278_v54, %v1874_v32 }
 0x17e   :  { %1964 = vrot.lane.b32.xlu0 %v1959_v40, %s3726_s26 }
 0x17f   :  { %v1182_v14 = vpop.permute.xlu1 %1181 }
 0x180   :  { %v1171_v28 = vpop.permute.xlu0 %1170  ;;  %v4510_v53 = vpop.permute.xlu2 %1253  ;;  %v1185_v19 = vsel %vm126_vm1, %v1182_v14, %v4468_v44  ;;  %v1575_v44 = vmul.f32 %v4302_v39, %v1573_v50  ;;  %v3578_v14 = vld [vmem:[%s5319_s4 + $0x1c0] sm:$0xff]  ;;  %v1972_v50 = vmul.f32 %v4302_v39, %v1970_v0 }
 0x181   :  { %v622_v58 = vpop.f32.mrf.mxu0  ;;  %v1172_v11 = vsel %vm126_vm1, %v4449_v60, %v1171_v28  ;;  %v1163_v60 = vadd.f32 %v1161_v10, %v1139_v49  ;;  %v1971_v28 = vmul.f32 %v4296_v5, %v1970_v0  ;;  %1450 = vmatpush.bf16.msrb.mxu3 %v3578_v14  ;;  %v1205_v10 = vstv %s3147_s18  ;;  %s3454_s18 = sld [smem:[#allocation2 + $0x783]] }
 0x182   :  { %v1174_v45 = vadd.f32 %v1172_v11, %v1150_v52  ;;  %v1206_v52 = vmul.f32 %v4296_v5, %v1205_v10  ;;  %v1210_v49 = vmul.f32 %v4278_v54, %v4226_v31  ;;  %v1807_v14 = vstv %s4607_s23 }
 0x183   :  { %v1187_v24 = vadd.f32 %v1185_v19, %v1163_v60 }
 0x184   :  { %v1211_v31 = vadd.f32 %v1210_v49, %v1206_v52 }
 0x185   :  { %1495 = vrot.lane.b32.xlu1 %v1490_v61, %s3725_s19  ;;  %1578 = vrot.lane.b32.xlu2 %v1574_v15, %s3725_s19  ;;  %v1501_v15 = vstv %s3220_s3 }
 0x186   :  { %1493 = vrot.lane.b32.xlu0 %v1489_v1, %s3725_s19  ;;  %v1502_v46 = vmul.f32 %v4278_v54, %v1501_v15 }
 0x187   :  { %v1195_v34 = vpop.permute.xlu1 %1194 }
 0x188   :  { %v1193_v16 = vpop.permute.xlu0 %1192  ;;  %v4536_v63 = vpop.permute.xlu2 %1266 }
 0x189   :  { %v1196_v59 = vsel %vm126_vm1, %v1193_v16, %v1195_v34  ;;  %v1207_v34 = vmul.f32 %v4278_v54, %v1205_v10  ;;  %v1513_v16 = vmul.f32 %v4296_v5, %v1501_v15  ;;  %v1621_v10 = vstv %s3227_s24  ;;  %s4967_s24 = sld [smem:[#allocation2 + $0x480]] }
 0x18a   :  { %v1198_v2 = vadd.f32 %v1196_v59, %v1174_v45  ;;  %v1514_v59 = vmul.f32 %v4302_v39, %v1501_v15 }
 0x18c   :  { %v1199_v48 = vmax.f32 %v1187_v24, %v1198_v2 }
 0x18d   :  { %1589 = vrot.lane.b32.xlu1 %v1585_v18, %s3725_s19  ;;  %1591 = vrot.lane.b32.xlu2 %v1586_v22, %s3725_s19  ;;  %v1503_v18 = vmul.f32 %v4308_v23, %v1501_v15 }
 0x18e   :  { %1580 = vrot.lane.b32.xlu0 %v1575_v44, %s3725_s19  ;;  %v1202_v47 = vadd.f32 %v1201_v20, %v1199_v48 }
 0x18f   :  { %v1230_v21 = vpop.permute.xlu1 %1229 }
 0x190   :  { %v1219_v17 = vpop.permute.xlu0 %1218  ;;  %v1203_v56 = vmax.f32 %v1202_v47, 0.0  ;;  %v4552_v35 = vpop.permute.xlu2 %1288 }
 0x191   :  { %v1220_v60 = vsel %vm77_vm0, %v4482_v30, %v1219_v17 }
 0x192   :  { %v1332_v40 = vpack.c.bf16 %v1203_v56, %v1203_v56  ;;  %v1222_v24 = vadd.f32 %v1220_v60, %v1207_v34  ;;  %v1622_v34 = vmul.f32 %v4296_v5, %v1621_v10 }
 0x194   :  { %1438 = vmatmul.bf16.vlgmr.msrb.gmra.mxu2 %v1332_v40 }
 0x195   :  { %1881 = vrot.lane.b32.xlu1 %v1876_v38, %s3726_s26  ;;  %1890 = vrot.lane.b32.xlu2 %v1886_v62, %s3726_s26 }
 0x196   :  { %1879 = vrot.lane.b32.xlu0 %v1875_v41, %s3726_s26  ;;  %v1297_v41 = vstv %s4597_s21  ;;  %s3376_s21 = sld [smem:[#allocation2 + $0x681]] }
 0x197   :  { %v1243_v12 = vpop.permute.xlu1 %1242 }
 0x198   :  { %v1241_v43 = vpop.permute.xlu0 %1240  ;;  %v1821_v4 = vpop.permute.xlu2 %1820 }
 0x199   :  { %v1244_v22 = vsel %vm77_vm0, %v1241_v43, %v1243_v12  ;;  %v1525_v12 = vstv %s3221_s22 }
 0x19a   :  { %v1246_v27 = vadd.f32 %v1244_v22, %v1222_v24  ;;  %v4666_v24 = vstv %s3446_s27  ;;  %s3372_s27 = sld [smem:[#allocation2 + $0x603]] }
 0x19d   :  { %1975 = vrot.lane.b32.xlu1 %v1971_v28, %s3726_s26  ;;  %1977 = vrot.lane.b32.xlu2 %v1972_v50, %s3726_s26 }
 0x19e   :  { %1892 = vrot.lane.b32.xlu0 %v1887_v55, %s3726_s26  ;;  %v1526_v55 = vmul.f32 %v4296_v5, %v1525_v12 }
 0x19f   :  { %v1265_v58 = vpop.permute.xlu1 %1264 }
 0x1a0   :  { %v1256_v61 = vpop.permute.xlu0 %1255  ;;  %v4572_v8 = vpop.permute.xlu2 %1831  ;;  %v1268_v2 = vsel %vm126_vm1, %v1265_v58, %v4536_v63  ;;  %v1527_v58 = vmul.f32 %v4302_v39, %v1525_v12 }
 0x1a1   :  { %v633_v1 = vpop.f32.mrf.mxu1  ;;  %v1257_v30 = vsel %vm77_vm0, %v4510_v53, %v1256_v61  ;;  %v1270_v47 = vadd.f32 %v1268_v2, %v1246_v27 }
 0x1a2   :  { %v634_v6 = vadd.f32 %v633_v1, %v4492_v36  ;;  %v1809_v1 = vmul.f32 %v4278_v54, %v1807_v14 }
 0x1a4   :  { %v743_v11 = vadd.f32 %v4336_v26, %v634_v6 }
 0x1a5   :  { %1988 = vrot.lane.b32.xlu1 %v1983_v3, %s3726_s26  ;;  %1506 = vrot.lane.b32.xlu2 %v1502_v46, %s3725_s19 }
 0x1a6   :  { %1986 = vrot.lane.b32.xlu0 %v1982_v9, %s3726_s26  ;;  %v4586_v19 = vadd.f32 %v4443_v7, %v743_v11  ;;  %v1233_v7 = vsel %vm77_vm0, %v1230_v21, %v4490_v37  ;;  %v1597_v37 = vstv %s3226_s20  ;;  %s3217_s20 = sld [smem:[#allocation2 + $0x400]] }
 0x1a7   :  { %v1280_v36 = vpop.permute.xlu1 %1279  ;;  %v1235_v44 = vadd.f32 %v1233_v7, %v1211_v31  ;;  %v1599_v17 = vmul.f32 %v4308_v23, %v1597_v37  ;;  %v1609_v56 = vmul.f32 %v4296_v5, %v1597_v37  ;;  %v1598_v40 = vmul.f32 %v4278_v54, %v1597_v37 }
 0x1a8   :  { %v1278_v13 = vpop.permute.xlu0 %1277  ;;  %v1845_v26 = vpop.permute.xlu2 %1844  ;;  %v1610_v15 = vmul.f32 %v4302_v39, %v1597_v37  ;;  %v1633_v31 = vmul.f32 %v4278_v54, %v1621_v10  ;;  %v1623_v7 = vmul.f32 %v4302_v39, %v1621_v10  ;;  %v4671_v37 = vstv %s3452_s28  ;;  %s4899_s28 = sld [smem:[#allocation5 + $0xb]] }
 0x1a9   :  { %v635_v45 = vpop.f32.mrf.mxu1  ;;  %v1281_v20 = vsel %vm126_vm1, %v1278_v13, %v1280_v36  ;;  %v1259_v32 = vadd.f32 %v1257_v30, %v1235_v44  ;;  %v1538_v36 = vmul.f32 %v4308_v23, %v1525_v12  ;;  %v1537_v13 = vmul.f32 %v4278_v54, %v1525_v12 }
 0x1ab   :  { %v1283_v38 = vadd.f32 %v1281_v20, %v1259_v32  ;;  %v2513_v32 = vmul.f32 %v4302_v39, %v4666_v24 }
 0x1ad   :  { %1517 = vrot.lane.b32.xlu1 %v1513_v16, %s3726_s26  ;;  %1519 = vrot.lane.b32.xlu2 %v1514_v59, %s3726_s26 }
 0x1ae   :  { %1508 = vrot.lane.b32.xlu0 %v1503_v18, %s3725_s19  ;;  %v1634_v18 = vmul.f32 %v4308_v23, %v1621_v10 }
 0x1af   :  { %v1819_v48 = vpop.permute.xlu1 %1818 }
 0x1b0   :  { %v1822_v53 = vsel %vm77_vm0, %v1819_v48, %v1821_v4  ;;  %v1291_v63 = vpop.permute.xlu0 %1290  ;;  %v4610_v21 = vpop.permute.xlu2 %1938 }
 0x1b1   :  { %v1292_v33 = vsel %vm126_vm1, %v4552_v35, %v1291_v63  ;;  %v1824_v3 = vadd.f32 %v1822_v53, %v1809_v1  ;;  %v2608_v53 = vmul.f32 %v4296_v5, %v4671_v37 }
 0x1b2   :  { %v1294_v62 = vadd.f32 %v1292_v33, %v1270_v47  ;;  %v2512_v33 = vmul.f32 %v4296_v5, %v4666_v24 }
 0x1b4   :  { %v1295_v42 = vmax.f32 %v1283_v38, %v1294_v62 }
 0x1b5   :  { %1604 = vrot.lane.b32.xlu1 %v1599_v17, %s3725_s19  ;;  %1613 = vrot.lane.b32.xlu2 %v1609_v56, %s3726_s26  ;;  %v2524_v17 = vstv %s3447_s29  ;;  %s3448_s29 = sld [smem:[#allocation2 + $0x703]] }
 0x1b6   :  { %1602 = vrot.lane.b32.xlu0 %v1598_v40, %s3725_s19  ;;  %v1298_v0 = vadd.f32 %v1297_v41, %v1295_v42  ;;  %v2525_v40 = vmul.f32 %v4296_v5, %v2524_v17  ;;  %v2526_v41 = vmul.f32 %v4302_v39, %v2524_v17  ;;  %v2609_v42 = vmul.f32 %v4302_v39, %v4671_v37 }
 0x1b7   :  { %v1917_v35 = vpop.permute.xlu1 %1916 }
 0x1b8   :  { %v1915_v43 = vpop.permute.xlu0 %1914  ;;  %v1299_v4 = vmax.f32 %v1298_v0, 0.0  ;;  %v1472_v28 = vpop.permute.xlu2 %1471  ;;  %v3609_v0 = vld [vmem:[%s5319_s4 + $0x2b8] sm:$0xff] }
 0x1b9   :  { %v1918_v50 = vsel %vm77_vm0, %v1915_v43, %v1917_v35  ;;  %2128 = vmatpush.bf16.msra.mxu2 %v3609_v0  ;;  %v3608_v35 = vld [vmem:[%s5319_s4 + $0x2b0] sm:$0xff] }
 0x1ba   :  { %v1333_v61 = vpack.c.bf16 %v1299_v4, %v1299_v4  ;;  %v2620_v4 = vstv %s3453_s30  ;;  %s5016_s30 = sld [smem:[#allocation5 + $0x9]] }
 0x1bc   :  { %1451 = vmatmul.bf16.vlgmr.msrb.gmra.mxu3 %v1333_v61  ;;  %v3607_v61 = vld [vmem:[%s5319_s4 + $0x2a8] sm:$0xff] }
 0x1bd   :  { %1530 = vrot.lane.b32.xlu1 %v1526_v55, %s3726_s26  ;;  %1532 = vrot.lane.b32.xlu2 %v1527_v58, %s3726_s26  ;;  %v2621_v55 = vmul.f32 %v4296_v5, %v2620_v4  ;;  %v2536_v58 = vmul.f32 %v4278_v54, %v2524_v17 }
 0x1be   :  { %1615 = vrot.lane.b32.xlu0 %v1610_v15, %s3726_s26  ;;  %2129 = vmatpush.bf16.msra.mxu2 %v3608_v35  ;;  %v3617_v15 = vld [vmem:[%s5319_s4 + $0x2f8] sm:$0xff] }
 0x1bf   :  { %v1843_v46 = vpop.permute.xlu1 %1842  ;;  %2141 = vmatpush.bf16.msra.mxu3 %v3617_v15  ;;  %v4821_v15 = vld [vmem:[%s5315_s0 + $0x8] sm:$0xff] }
 0x1c0   :  { %v1846_v6 = vsel %vm77_vm0, %v1843_v46, %v1845_v26  ;;  %v1834_v9 = vpop.permute.xlu0 %1833  ;;  %v4633_v11 = vpop.permute.xlu2 %1855  ;;  %v3616_v46 = vld [vmem:[%s5319_s4 + $0x2f0] sm:$0xff] }
 0x1c1   :  { %v4637_v52 = vadd.f32 %v1846_v6, %v1824_v3  ;;  %v4641_v49 = vsel %vm77_vm0, %v4572_v8, %v1834_v9  ;;  %v1903_v8 = vstv %s4635_s25  ;;  %v3606_v3 = vld [vmem:[%s5319_s4 + $0x2a0] sm:$0xff]  ;;  %s5132_s25 = sld [smem:[#allocation2 + $0x600]] }
 0x1c2   :  { %v1905_v22 = vmul.f32 %v4278_v54, %v1903_v8  ;;  %2130 = vmatpush.bf16.msra.mxu2 %v3607_v61 }
 0x1c3   :  { %2142 = vmatpush.bf16.msra.mxu3 %v3616_v46 }
 0x1c4   :  { %v1920_v30 = vadd.f32 %v1918_v50, %v1905_v22  ;;  %v2537_v50 = vmul.f32 %v4308_v23, %v2524_v17  ;;  %v3613_v17 = vld [vmem:[%s5319_s4 + $0x2d8] sm:$0xff] }
 0x1c5   :  { %1543 = vrot.lane.b32.xlu1 %v1538_v36, %s3726_s26  ;;  %1626 = vrot.lane.b32.xlu2 %v1622_v34, %s3726_s26  ;;  %v2632_v36 = vmul.f32 %v4278_v54, %v2620_v4  ;;  %v2633_v34 = vmul.f32 %v4308_v23, %v2620_v4  ;;  %v4750_v54 = vstv %s3370_s2 }
 0x1c6   :  { %1541 = vrot.lane.b32.xlu0 %v1537_v13, %s3726_s26  ;;  %2131 = vmatpush.bf16.msra.mxu2 %v3606_v3 }
 0x1c7   :  { %v1930_v26 = vpop.permute.xlu1 %1929 }
 0x1c8   :  { %v1928_v60 = vpop.permute.xlu0 %1927  ;;  %v4649_v45 = vpop.permute.xlu2 %1868 }
 0x1c9   :  { %v4653_v16 = vsel %vm77_vm0, %v1928_v60, %v1930_v26  ;;  %v4655_v59 = vpop.f32.mrf.mxu0  ;;  %v2622_v26 = vmul.f32 %v4302_v39, %v2620_v4  ;;  %v3605_v60 = vld [vmem:[%s5319_s4 + $0x298] sm:$0xff] }
 0x1ca   :  { %2132 = vmatpush.bf16.msra.mxu2 %v3605_v60 }
 0x1cd   :  { %1637 = vrot.lane.b32.xlu1 %v1633_v31, %s3726_s26  ;;  %1639 = vrot.lane.b32.xlu2 %v1634_v18, %s3726_s26  ;;  %v3615_v31 = vld [vmem:[%s5319_s4 + $0x2e8] sm:$0xff] }
 0x1ce   :  { %1628 = vrot.lane.b32.xlu0 %v1623_v7, %s3726_s26  ;;  %2143 = vmatpush.bf16.msra.mxu3 %v3615_v31  ;;  %v3604_v7 = vld [vmem:[%s5319_s4 + $0x290] sm:$0xff] }
 0x1cf   :  { %v1470_v2 = vpop.permute.xlu1 %1469  ;;  %2133 = vmatpush.bf16.msra.mxu2 %v3604_v7  ;;  %v3592_v31 = vld [vmem:[%s5319_s4 + $0x230] sm:$0xff] }
 0x1d0   :  { %v4669_v44 = vsel %vm77_vm0, %v1470_v2, %v1472_v28  ;;  %v1941_v27 = vpop.permute.xlu0 %1940  ;;  %v4673_v20 = vpop.permute.xlu2 %1962 }
 0x1d1   :  { %v1942_v48 = vsel %vm77_vm0, %v4610_v21, %v1941_v27  ;;  %v1092_v47 = vpop.f32.mrf.mxu0 }
 0x1d2   :  { %v4681_v63 = vadd.f32 %v1942_v48, %v1920_v30  ;;  %v4763_v30 = vstv %s3376_s21  ;;  %v2164_v47 = vmul.f32 %v4302_v39, %v4750_v54  ;;  %s3455_s21 = sld [smem:[#allocation2 + $0x784]] }
 0x1d3   :  { %v2260_v4 = vmul.f32 %v4302_v39, %v4763_v30  ;;  %v3610_v39 = vld [vmem:[%s5319_s4 + $0x2c0] sm:$0xff] }
 0x1d5   :  { %2518 = vrot.lane.b32.xlu1 %v2513_v32, %s3725_s19  ;;  %2612 = vrot.lane.b32.xlu2 %v2608_v53, %s3725_s19  ;;  %v2259_v32 = vmul.f32 %v4296_v5, %v4763_v30  ;;  %v2163_v53 = vmul.f32 %v4296_v5, %v4750_v54  ;;  %v3602_v5 = vld [vmem:[%s5319_s4 + $0x280] sm:$0xff] }
 0x1d6   :  { %2516 = vrot.lane.b32.xlu0 %v2512_v33, %s3725_s19  ;;  %v3603_v33 = vld [vmem:[%s5319_s4 + $0x288] sm:$0xff] }
 0x1d7   :  { %v1568_v21 = vpop.permute.xlu1 %1567  ;;  %2134 = vmatpush.bf16.msra.mxu2 %v3603_v33 }
 0x1d8   :  { %v1566_v56 = vpop.permute.xlu0 %1565  ;;  %v1485_v38 = vpop.permute.xlu2 %1484 }
 0x1d9   :  { %v4689_v62 = vsel %vm77_vm0, %v1566_v56, %v1568_v21  ;;  %v2548_v21 = vstv %s3448_s29  ;;  %s3378_s29 = sld [smem:[#allocation2 + $0x683]] }
 0x1da   :  { %v2550_v35 = vmul.f32 %v4308_v23, %v2548_v21  ;;  %v2561_v3 = vmul.f32 %v4821_v15, %v2548_v21 }
 0x1db   :  { %2135 = vmatpush.bf16.msra.mxu2 %v3602_v5 }
 0x1dd   :  { %2529 = vrot.lane.b32.xlu1 %v2525_v40, %s3725_s19  ;;  %2531 = vrot.lane.b32.xlu2 %v2526_v41, %s3725_s19 }
 0x1de   :  { %2614 = vrot.lane.b32.xlu0 %v2609_v42, %s3725_s19  ;;  %v4797_v42 = vld [vmem:[%s5316_s1] sm:$0xff] }
 0x1df   :  { %v4701_v12 = vpop.permute.xlu1 %1866  ;;  %v2549_v0 = vmul.f32 %v4797_v42, %v2548_v21 }
 0x1e0   :  { %v4706_v43 = vpop.permute.xlu0 %1857  ;;  %v4708_v28 = vpop.permute.xlu2 %1578  ;;  %v1870_v33 = vsel %vm126_vm1, %v4701_v12, %v4649_v45  ;;  %v3590_v12 = vld [vmem:[%s5319_s4 + $0x220] sm:$0xff] }
 0x1e5   :  { %2542 = vrot.lane.b32.xlu1 %v2537_v50, %s3725_s19  ;;  %2625 = vrot.lane.b32.xlu2 %v2621_v55, %s3725_s19  ;;  %v3611_v50 = vld [vmem:[%s5319_s4 + $0x2c8] sm:$0xff] }
 0x1e6   :  { %2540 = vrot.lane.b32.xlu0 %v2536_v58, %s3725_s19  ;;  %v2644_v58 = vstv %s3454_s18  ;;  %s4861_s18 = sld [smem:[#allocation5 + $0xa]] }
 0x1e7   :  { %v4722_v1 = vpop.permute.xlu1 %1953  ;;  %v2645_v46 = vmul.f32 %v4797_v42, %v2644_v58 }
 0x1e8   :  { %v4730_v6 = vpop.permute.xlu0 %1951  ;;  %v4732_v9 = vpop.permute.xlu2 %1591 }
 0x1e9   :  { %v1103_v10 = vpop.f32.mrf.mxu1 }
 0x1ea   :  { %v1104_v13 = vadd.f32 %v1103_v10, %v4655_v59  ;;  %v4828_v10 = vld [vmem:[%s5315_s0] sm:$0xff]  ;;  %s3371_s0 = sld [smem:[#allocation2 + $0x602]] }
 0x1eb   :  { %v1904_v5 = vmul.f32 %v4828_v10, %v1903_v8 }
 0x1ec   :  { %v4745_v18 = vadd.f32 %v1104_v13, %v4586_v19  ;;  %v3614_v19 = vld [vmem:[%s5319_s4 + $0x2e0] sm:$0xff]  ;;  %v1808_v13 = vmul.f32 %v4828_v10, %v1807_v14  ;;  %v2657_v14 = vmul.f32 %v4821_v15, %v2644_v58 }
 0x1ed   :  { %2636 = vrot.lane.b32.xlu1 %v2632_v36, %s3725_s19  ;;  %2638 = vrot.lane.b32.xlu2 %v2633_v34, %s3725_s19  ;;  %v2560_v36 = vmul.f32 %v4828_v10, %v2548_v21  ;;  %v3593_v34 = vld [vmem:[%s5319_s4 + $0x238] sm:$0xff] }
 0x1ee   :  { %2627 = vrot.lane.b32.xlu0 %v2622_v26, %s3725_s19  ;;  %2144 = vmatpush.bf16.msra.mxu3 %v3614_v19  ;;  %v1812_v26 = vmul.f32 %v4797_v42, %v4334_v25  ;;  %v2656_v19 = vmul.f32 %v4828_v10, %v2644_v58  ;;  %v4852_v25 = vld [vmem:[%s5316_s1 + $0x8] sm:$0xff]  ;;  %s4878_s1 = sld [smem:[#allocation2 + $0x682]] }
 0x1ef   :  { %v1483_v59 = vpop.permute.xlu1 %1482  ;;  %1779 = vmatpush.bf16.msra.mxu0 %v3593_v34  ;;  %v1899_v34 = vstv %s4861_s18 }
 0x1f0   :  { %v4759_v22 = vsel %vm77_vm0, %v1483_v59, %v1485_v38  ;;  %v4761_v2 = vpop.permute.xlu0 %1964  ;;  %v4765_v27 = vpop.permute.xlu2 %1890  ;;  %v3612_v38 = vld [vmem:[%s5319_s4 + $0x2d0] sm:$0xff] }
 0x1f1   :  { %v1105_v48 = vpop.f32.mrf.mxu1 }
 0x1f2   :  { %2145 = vmatpush.bf16.msra.mxu3 %v3613_v17  ;;  %v1813_v48 = vadd.f32 %v1812_v26, %v1808_v13  ;;  %v1859_v17 = vsel %vm77_vm0, %v4633_v11, %v4706_v43  ;;  %v1955_v26 = vsel %vm77_vm0, %v4730_v6, %v4722_v1 }
 0x1f3   :  { %1780 = vmatpush.bf16.msra.mxu0 %v3592_v31 }
 0x1f4   :  { %v1837_v21 = vadd.f32 %v4641_v49, %v1813_v48  ;;  %v3600_v49 = vld [vmem:[%s5319_s4 + $0x270] sm:$0xff] }
 0x1f5   :  { %2169 = vrot.lane.b32.xlu1 %v2164_v47, %s3725_s19  ;;  %2263 = vrot.lane.b32.xlu2 %v2259_v32, %s3725_s19  ;;  %v2646_v47 = vmul.f32 %v4852_v25, %v2644_v58  ;;  %v3591_v32 = vld [vmem:[%s5319_s4 + $0x228] sm:$0xff] }
 0x1f6   :  { %2167 = vrot.lane.b32.xlu0 %v2163_v53, %s3725_s19  ;;  %2146 = vmatpush.bf16.msra.mxu3 %v3612_v38  ;;  %v3601_v53 = vld [vmem:[%s5319_s4 + $0x278] sm:$0xff]  ;;  %v1908_v38 = vmul.f32 %v4797_v42, %v4367_v51  ;;  %v1872_v51 = vadd.f32 %v1870_v33, %v4637_v52  ;;  %v1861_v8 = vadd.f32 %v1859_v17, %v1837_v21 }
 0x1f7   :  { %v4782_v56 = vpop.permute.xlu1 %1495  ;;  %1792 = vmatpush.bf16.msra.mxu1 %v3601_v53  ;;  %1781 = vmatpush.bf16.msra.mxu0 %v3591_v32  ;;  %v3589_v52 = vld [vmem:[%s5319_s4 + $0x218] sm:$0xff] }
 0x1f8   :  { %v4790_v40 = vpop.permute.xlu0 %1493  ;;  %v4792_v41 = vpop.permute.xlu2 %1977  ;;  %v1909_v58 = vadd.f32 %v1908_v38, %v1904_v5 }
 0x1fa   :  { %2147 = vmatpush.bf16.msra.mxu3 %v3611_v50  ;;  %v1933_v31 = vadd.f32 %v4653_v16, %v1909_v58  ;;  %v3598_v16 = vld [vmem:[%s5319_s4 + $0x260] sm:$0xff] }
 0x1fb   :  { %1793 = vmatpush.bf16.msra.mxu1 %v3600_v49  ;;  %1782 = vmatpush.bf16.msra.mxu0 %v3590_v12  ;;  %v3597_v12 = vld [vmem:[%s5319_s4 + $0x258] sm:$0xff] }
 0x1fc   :  { %v1957_v6 = vadd.f32 %v1955_v26, %v1933_v31  ;;  %v3594_v26 = vld [vmem:[%s5319_s4 + $0x240] sm:$0xff] }
 0x1fd   :  { %2553 = vrot.lane.b32.xlu1 %v2549_v0, %s3725_s19  ;;  %2555 = vrot.lane.b32.xlu2 %v2550_v35, %s3725_s19  ;;  %v2175_v0 = vstv %s3371_s0  ;;  %s3449_s0 = sld [smem:[#allocation2 + $0x704]] }
 0x1fe   :  { %2265 = vrot.lane.b32.xlu0 %v2260_v4, %s3725_s19  ;;  %2148 = vmatpush.bf16.msra.mxu3 %v3610_v39  ;;  %v2177_v50 = vmul.f32 %v4821_v15, %v2175_v0  ;;  %v2187_v39 = vmul.f32 %v4797_v42, %v2175_v0 }
 0x1ff   :  { %v4809_v55 = vpop.permute.xlu1 %1589  ;;  %1783 = vmatpush.bf16.msra.mxu0 %v3589_v52 }
 0x200   :  { %v4814_v23 = vpop.permute.xlu0 %1580  ;;  %v4816_v61 = vpop.permute.xlu2 %1506 }
 0x203   :  { %v2572_v58 = vstv %s3449_s0 }
 0x205   :  { %2566 = vrot.lane.b32.xlu1 %v2561_v3, %s3726_s26  ;;  %2649 = vrot.lane.b32.xlu2 %v2645_v46, %s3725_s19 }
 0x206   :  { %2564 = vrot.lane.b32.xlu0 %v2560_v36, %s3726_s26  ;;  %v2176_v36 = vmul.f32 %v4828_v10, %v2175_v0 }
 0x207   :  { %v1882_v60 = vpop.permute.xlu1 %1881 }
 0x208   :  { %v1880_v59 = vpop.permute.xlu0 %1879  ;;  %v4845_v7 = vpop.permute.xlu2 %1519 }
 0x209   :  { %v1883_v11 = vsel %vm126_vm1, %v1880_v59, %v1882_v60  ;;  %v1966_v60 = vsel %vm126_vm1, %v4673_v20, %v4761_v2  ;;  %v3588_v20 = vld [vmem:[%s5319_s4 + $0x210] sm:$0xff] }
 0x20a   :  { %v1885_v3 = vadd.f32 %v1883_v11, %v1861_v8  ;;  %v1968_v2 = vadd.f32 %v1966_v60, %v4681_v63  ;;  %v2188_v11 = vmul.f32 %v4852_v25, %v2175_v0  ;;  %1784 = vmatpush.bf16.msra.mxu0 %v3588_v20  ;;  %v3587_v63 = vld [vmem:[%s5319_s4 + $0x208] sm:$0xff] }
 0x20d   :  { %2660 = vrot.lane.b32.xlu1 %v2656_v19, %s3726_s26  ;;  %2662 = vrot.lane.b32.xlu2 %v2657_v14, %s3726_s26  ;;  %v2271_v19 = vstv %s4878_s1  ;;  %s3727_s1 = smov [#allocation7]  }
 0x20e   :  { %2651 = vrot.lane.b32.xlu0 %v2646_v47, %s3725_s19  ;;  %v2272_v33 = vmul.f32 %v4828_v10, %v2271_v19  ;;  %v2273_v17 = vmul.f32 %v4821_v15, %v2271_v19  ;;  %1785 = vmatpush.bf16.msra.mxu0 %v3587_v63  ;;  %v1559_v63 = vmul.f32 %v4797_v42, %v4441_v29 }
 0x20f   :  { %v1976_v45 = vpop.permute.xlu1 %1975 }
 0x210   :  { %v1893_v43 = vpop.permute.xlu0 %1892  ;;  %v4888_v35 = vpop.permute.xlu2 %1613  ;;  %v1979_v14 = vsel %vm126_vm1, %v1976_v45, %v4792_v41  ;;  %v1995_v45 = vstv %s4899_s28  ;;  %s4985_s28 = sld [smem:[#allocation5 + $0x8]] }
 0x211   :  { %v1894_v4 = vsel %vm126_vm1, %v4765_v27, %v1893_v43  ;;  %v3599_v27 = vld [vmem:[%s5319_s4 + $0x268] sm:$0xff]  ;;  %v1981_v21 = vadd.f32 %v1979_v14, %v1957_v6  ;;  %v3586_v43 = vld [vmem:[%s5319_s4 + $0x200] sm:$0xff]  ;;  %v2574_v14 = vmul.f32 %v4821_v15, %v2572_v58  ;;  %v2668_v6 = vstv %s3455_s21 }
 0x212   :  { %v1896_v46 = vadd.f32 %v1894_v4, %v1872_v51  ;;  %1794 = vmatpush.bf16.msra.mxu1 %v3599_v27  ;;  %v3596_v4 = vld [vmem:[%s5319_s4 + $0x250] sm:$0xff]  ;;  %1786 = vmatpush.bf16.msra.mxu0 %v3586_v43  ;;  %v3595_v27 = vld [vmem:[%s5319_s4 + $0x248] sm:$0xff] }
 0x214   :  { %v1897_v13 = vmax.f32 %v1885_v3, %v1896_v46  ;;  %v2284_v46 = vmul.f32 %v4852_v25, %v2271_v19 }
 0x215   :  { %2182 = vrot.lane.b32.xlu1 %v2177_v50, %s3725_s19  ;;  %2191 = vrot.lane.b32.xlu2 %v2187_v39, %s3725_s19 }
 0x216   :  { %v1900_v59 = vadd.f32 %v1899_v34, %v1897_v13  ;;  %2180 = vrot.lane.b32.xlu0 %v2176_v36, %s3725_s19  ;;  %1795 = vmatpush.bf16.msra.mxu1 %v3598_v16  ;;  %v2573_v36 = vmul.f32 %v4828_v10, %v2572_v58  ;;  %v2283_v34 = vmul.f32 %v4797_v42, %v2271_v19 }
 0x217   :  { %v4917_v48 = vpop.f32.mrf.mxu2  ;;  %v1989_v1 = vpop.permute.xlu1 %1988  ;;  %v2585_v19 = vmul.f32 %v4852_v25, %v2572_v58  ;;  %v1463_v16 = vmul.f32 %v4797_v42, %v4412_v57  ;;  %v1497_v57 = vsel %vm77_vm0, %v4790_v40, %v4782_v56 }
 0x218   :  { %v1901_v47 = vmax.f32 %v1900_v59, 0.0  ;;  %v1987_v32 = vpop.permute.xlu0 %1986  ;;  %v4926_v41 = vpop.permute.xlu2 %1532  ;;  %v2584_v59 = vmul.f32 %v4797_v42, %v2572_v58 }
 0x219   :  { %v1990_v53 = vsel %vm126_vm1, %v1987_v32, %v1989_v1  ;;  %v1458_v1 = vstv %s3217_s20  ;;  %s2902_s20 = sshll.u32 %s3727_s1, 4  ;;  %s2903_s20 = int_to_ptr.vmem [resolvable:$true] %s2902_s20 }
 0x21a   :  { %v1992_v5 = vadd.f32 %v1990_v53, %v1968_v2  ;;  %v2030_v38 = vpack.c.bf16 %v1901_v47, %v1901_v47  ;;  %1796 = vmatpush.bf16.msra.mxu1 %v3597_v12  ;;  %v1459_v20 = vmul.f32 %v4828_v10, %v1458_v1  ;;  %v1460_v47 = vmul.f32 %v4797_v42, %v1458_v1 }
 0x21c   :  { %v1993_v49 = vmax.f32 %v1981_v21, %v1992_v5  ;;  %2136 = vmatmul.bf16.vlgmr.msra.gmra.mxu2 %v2030_v38  ;;  %v1464_v21 = vadd.f32 %v1463_v16, %v1459_v20  ;;  %v2669_v5 = vmul.f32 %v4828_v10, %v2668_v6  ;;  %v1554_v38 = vstv %s4967_s24  ;;  %s2904_s24 = sshll.u32 %s5323_s8, 4  ;;  %s2905_s24 = int_to_ptr.hbm [resolvable:$true] %s2904_s24 }
 0x21d   :  { %2276 = vrot.lane.b32.xlu1 %v2272_v33, %s3725_s19  ;;  %2278 = vrot.lane.b32.xlu2 %v2273_v17, %s3725_s19  ;;  %v2670_v33 = vmul.f32 %v4821_v15, %v2668_v6  ;;  %v2680_v17 = vmul.f32 %v4797_v42, %v2668_v6  ;;  %v2295_v16 = vstv %s3378_s29 }
 0x21e   :  { %v1996_v51 = vadd.f32 %v1995_v45, %v1993_v49  ;;  %2193 = vrot.lane.b32.xlu0 %v2188_v11, %s3725_s19  ;;  %1797 = vmatpush.bf16.msra.mxu1 %v3596_v4  ;;  %v1475_v11 = vadd.f32 %v4669_v44, %v1460_v47  ;;  %v1555_v45 = vmul.f32 %v4828_v10, %v1554_v38  ;;  %v2199_v44 = vstv %s3372_s27  ;;  %s3375_s27 = sld [smem:[#allocation2 + $0x680]] }
 0x21f   :  { %v1441_v0 = vpop.f32.mrf.mxu2  ;;  %v1518_v8 = vpop.permute.xlu1 %1517  ;;  %v1488_v56 = vadd.f32 %v4759_v22, %v1464_v21  ;;  %v1593_v22 = vsel %vm77_vm0, %v4809_v55, %v4732_v9  ;;  %v2201_v58 = vmul.f32 %v4852_v25, %v2199_v44 }
 0x220   :  { %v1997_v50 = vmax.f32 %v1996_v51, 0.0  ;;  %v1509_v39 = vpop.permute.xlu0 %1508  ;;  %v4948_v3 = vpop.permute.xlu2 %1626  ;;  %v1521_v12 = vsel %vm126_vm1, %v1518_v8, %v4845_v7  ;;  %v1499_v40 = vadd.f32 %v1497_v57, %v1475_v11  ;;  %v1556_v51 = vmul.f32 %v4797_v42, %v1554_v38 }
 0x221   :  { %v1510_v49 = vsel %vm77_vm0, %v4816_v61, %v1509_v39  ;;  %v1560_v7 = vadd.f32 %v1559_v63, %v1555_v45  ;;  %v2200_v39 = vmul.f32 %v4797_v42, %v2199_v44 }
 0x222   :  { %v2031_v52 = vpack.c.bf16 %v1997_v50, %v1997_v50  ;;  %1798 = vmatpush.bf16.msra.mxu1 %v3595_v27  ;;  %v1523_v8 = vadd.f32 %v1521_v12, %v1499_v40  ;;  %v1512_v61 = vadd.f32 %v1510_v49, %v1488_v56  ;;  %v1550_v27 = vstv %s4985_s28  ;;  %s3374_s28 = sld [smem:[#allocation5 + $0xc]] }
 0x223   :  { %v2307_v49 = vmul.f32 %v4828_v10, %v2295_v16  ;;  %v2308_v56 = vmul.f32 %v4821_v15, %v2295_v16 }
 0x224   :  { %2149 = vmatmul.bf16.vlgmr.msra.gmra.mxu3 %v2031_v52  ;;  %v2681_v52 = vmul.f32 %v4852_v25, %v2668_v6 }
 0x225   :  { %2289 = vrot.lane.b32.xlu1 %v2284_v46, %s3725_s19  ;;  %2577 = vrot.lane.b32.xlu2 %v2573_v36, %s3726_s26 }
 0x226   :  { %2287 = vrot.lane.b32.xlu0 %v2283_v34, %s3725_s19  ;;  %1799 = vmatpush.bf16.msra.mxu1 %v3594_v26  ;;  %v1571_v34 = vadd.f32 %v4689_v62, %v1556_v51  ;;  %v2223_v51 = vstv %s3373_s9 }
 0x227   :  { %v1605_v13 = vpop.permute.xlu1 %1604 }
 0x228   :  { %v1603_v60 = vpop.permute.xlu0 %1602  ;;  %v4962_v31 = vpop.permute.xlu2 %1639 }
 0x229   :  { %v1606_v9 = vsel %vm77_vm0, %v1603_v60, %v1605_v13 }
 0x22d   :  { %2588 = vrot.lane.b32.xlu1 %v2584_v59, %s3726_s26  ;;  %2590 = vrot.lane.b32.xlu2 %v2585_v19, %s3726_s26  ;;  %v1595_v59 = vadd.f32 %v1593_v22, %v1571_v34 }
 0x22e   :  { %2579 = vrot.lane.b32.xlu0 %v2574_v14, %s3726_s26 }
 0x22f   :  { %v1531_v2 = vpop.permute.xlu1 %1530 }
 0x230   :  { %v1616_v32 = vpop.permute.xlu0 %1615  ;;  %v4976_v53 = vpop.permute.xlu2 %2612  ;;  %v1534_v29 = vsel %vm126_vm1, %v1531_v2, %v4926_v41  ;;  %v1582_v41 = vsel %vm77_vm0, %v4708_v28, %v4814_v23 }
 0x231   :  { %v1536_v46 = vadd.f32 %v1534_v29, %v1512_v61  ;;  %v1617_v55 = vsel %vm126_vm1, %v4888_v35, %v1616_v32  ;;  %v1584_v19 = vadd.f32 %v1582_v41, %v1560_v7  ;;  %v2212_v32 = vmul.f32 %v4821_v15, %v2199_v44 }
 0x232   :  { %v1619_v62 = vadd.f32 %v1617_v55, %v1595_v59  ;;  %v2236_v55 = vmul.f32 %v4852_v25, %v2223_v51 }
 0x233   :  { %v1608_v23 = vadd.f32 %v1606_v9, %v1584_v19 }
 0x235   :  { %2675 = vrot.lane.b32.xlu1 %v2670_v33, %s3726_s26  ;;  %2684 = vrot.lane.b32.xlu2 %v2680_v17, %s3726_s26  ;;  %v2296_v33 = vmul.f32 %v4797_v42, %v2295_v16 }
 0x236   :  { %2673 = vrot.lane.b32.xlu0 %v2669_v5, %s3726_s26  ;;  %v2211_v5 = vmul.f32 %v4828_v10, %v2199_v44  ;;  %v2297_v44 = vmul.f32 %v4852_v25, %v2295_v16 }
 0x237   :  { %v1544_v0 = vpop.permute.xlu1 %1543 }
 0x238   :  { %v1542_v43 = vpop.permute.xlu0 %1541  ;;  %v5002_v4 = vpop.permute.xlu2 %2531 }
 0x239   :  { %v1545_v50 = vsel %vm126_vm1, %v1542_v43, %v1544_v0  ;;  %v2225_v43 = vmul.f32 %v4821_v15, %v2223_v51 }
 0x23a   :  { %v1547_v36 = vadd.f32 %v1545_v50, %v1523_v8  ;;  %v2505_v8 = vstv %s5041_s10  ;;  %v2235_v50 = vmul.f32 %v4797_v42, %v2223_v51 }
 0x23c   :  { %v1548_v26 = vmax.f32 %v1536_v46, %v1547_v36  ;;  %v2601_v46 = vstv %s5054_s12  ;;  %s3456_s12 = sld [smem:[#allocation5 + $0xf]] }
 0x23d   :  { %2204 = vrot.lane.b32.xlu1 %v2200_v39, %s3725_s19  ;;  %2206 = vrot.lane.b32.xlu2 %v2201_v58, %s3725_s19  ;;  %v2224_v39 = vmul.f32 %v4828_v10, %v2223_v51  ;;  %v2319_v58 = vstv %s3379_s11  ;;  %v3646_v51 = vld [vmem:[%s5319_s4 + $0x3e0] sm:$0xff] }
 0x23e   :  { %v1551_v28 = vadd.f32 %v1550_v27, %v1548_v26  ;;  %2686 = vrot.lane.b32.xlu0 %v2681_v52, %s3726_s26  ;;  %v2320_v34 = vmul.f32 %v4828_v10, %v2319_v58  ;;  %v2321_v27 = vmul.f32 %v4821_v15, %v2319_v58  ;;  %v2603_v26 = vmul.f32 %v4797_v42, %v2601_v46 }
 0x23f   :  { %v1452_v14 = vpop.f32.mrf.mxu3  ;;  %v1638_v1 = vpop.permute.xlu1 %1637 }
 0x240   :  { %v1552_v20 = vmax.f32 %v1551_v28, 0.0  ;;  %v1453_v13 = vadd.f32 %v1452_v14, %v4917_v48  ;;  %v1641_v35 = vsel %vm126_vm1, %v1638_v1, %v4962_v31  ;;  %v1629_v60 = vpop.permute.xlu0 %1628  ;;  %v5027_v6 = vpop.permute.xlu2 %2625  ;;  %v1646_v31 = vstv %s5016_s30 }
 0x241   :  { %v1643_v2 = vadd.f32 %v1641_v35, %v1619_v62  ;;  %v1630_v47 = vsel %vm126_vm1, %v4948_v3, %v1629_v60  ;;  %v2332_v1 = vmul.f32 %v4852_v25, %v2319_v58 }
 0x242   :  { %v5034_v17 = vadd.f32 %v1453_v13, %v4745_v18  ;;  %v1632_v21 = vadd.f32 %v1630_v47, %v1608_v23  ;;  %v1681_v48 = vpack.c.bf16 %v1552_v20, %v1552_v20  ;;  %v2331_v20 = vmul.f32 %v4797_v42, %v2319_v58  ;;  %v3640_v47 = vld [vmem:[%s5319_s4 + $0x3b0] sm:$0xff] }
 0x244   :  { %v1644_v38 = vmax.f32 %v1632_v21, %v1643_v2  ;;  %1787 = vmatmul.bf16.vlgmr.msra.gmra.mxu0 %v1681_v48  ;;  %v3641_v2 = vld [vmem:[%s5319_s4 + $0x3b8] sm:$0xff]  ;;  %v3639_v21 = vld [vmem:[%s5319_s4 + $0x3a8] sm:$0xff] }
 0x245   :  { %2217 = vrot.lane.b32.xlu1 %v2212_v32, %s3726_s26  ;;  %2300 = vrot.lane.b32.xlu2 %v2296_v33, %s3725_s19 }
 0x246   :  { %v1647_v57 = vadd.f32 %v1646_v31, %v1644_v38  ;;  %2215 = vrot.lane.b32.xlu0 %v2211_v5, %s3726_s26  ;;  %2826 = vmatpush.bf16.msrb.mxu2 %v3641_v2  ;;  %v3638_v5 = vld [vmem:[%s5319_s4 + $0x3a0] sm:$0xff]  ;;  %v3624_v2 = vld [vmem:[%s5319_s4 + $0x330] sm:$0xff] }
 0x247   :  { %v1454_v3 = vpop.f32.mrf.mxu3  ;;  %v2519_v11 = vpop.permute.xlu1 %2518 }
 0x248   :  { %v1648_v45 = vmax.f32 %v1647_v57, 0.0  ;;  %v2517_v18 = vpop.permute.xlu0 %2516  ;;  %v2639_v63 = vpop.permute.xlu2 %2638  ;;  %v3637_v57 = vld [vmem:[%s5319_s4 + $0x398] sm:$0xff] }
 0x249   :  { %v2520_v12 = vsel %vm77_vm0, %v2517_v18, %v2519_v11  ;;  %v3649_v3 = vld [vmem:[%s5319_s4 + $0x3f8] sm:$0xff]  ;;  %v3648_v18 = vld [vmem:[%s5319_s4 + $0x3f0] sm:$0xff] }
 0x24a   :  { %v1682_v40 = vpack.c.bf16 %v1648_v45, %v1648_v45  ;;  %2827 = vmatpush.bf16.msrb.mxu2 %v3640_v47  ;;  %2839 = vmatpush.bf16.msrb.mxu3 %v3649_v3  ;;  %v3636_v45 = vld [vmem:[%s5319_s4 + $0x390] sm:$0xff]  ;;  %v2606_v3 = vmul.f32 %v4797_v42, %v4671_v37 }
 0x24c   :  { %1800 = vmatmul.bf16.vlgmr.msra.gmra.mxu1 %v1682_v40 }
 0x24d   :  { %2311 = vrot.lane.b32.xlu1 %v2307_v49, %s3726_s26  ;;  %2313 = vrot.lane.b32.xlu2 %v2308_v56, %s3726_s26  ;;  %v3635_v49 = vld [vmem:[%s5319_s4 + $0x388] sm:$0xff] }
 0x24e   :  { %2302 = vrot.lane.b32.xlu0 %v2297_v44, %s3725_s19  ;;  %2828 = vmatpush.bf16.msrb.mxu2 %v3639_v21  ;;  %v3647_v56 = vld [vmem:[%s5319_s4 + $0x3e8] sm:$0xff]  ;;  %v3634_v44 = vld [vmem:[%s5319_s4 + $0x380] sm:$0xff] }
 0x24f   :  { %v2530_v29 = vpop.permute.xlu1 %2529  ;;  %2840 = vmatpush.bf16.msrb.mxu3 %v3648_v18 }
 0x250   :  { %v5052_v0 = vsel %vm77_vm0, %v2530_v29, %v5002_v4  ;;  %v2615_v7 = vpop.permute.xlu0 %2614  ;;  %v2264_v22 = vpop.permute.xlu2 %2263  ;;  %v2507_v4 = vmul.f32 %v4797_v42, %v2505_v8 }
 0x251   :  { %v2616_v61 = vsel %vm77_vm0, %v4976_v53, %v2615_v7  ;;  %v2156_v7 = vstv %s5132_s25 }
 0x252   :  { %v2522_v53 = vadd.f32 %v2520_v12, %v2507_v4  ;;  %v2618_v19 = vadd.f32 %v2616_v61, %v2603_v26  ;;  %2829 = vmatpush.bf16.msrb.mxu2 %v3638_v5  ;;  %v3644_v4 = vld [vmem:[%s5319_s4 + $0x3d0] sm:$0xff] }
 0x253   :  { %2841 = vmatpush.bf16.msrb.mxu3 %v3647_v56  ;;  %v3632_v56 = vld [vmem:[%s5319_s4 + $0x370] sm:$0xff] }
 0x255   :  { %2230 = vrot.lane.b32.xlu1 %v2225_v43, %s3726_s26  ;;  %2239 = vrot.lane.b32.xlu2 %v2235_v50, %s3726_s26  ;;  %v3645_v43 = vld [vmem:[%s5319_s4 + $0x3d8] sm:$0xff] }
 0x256   :  { %2228 = vrot.lane.b32.xlu0 %v2224_v39, %s3726_s26  ;;  %2830 = vmatpush.bf16.msrb.mxu2 %v3637_v57  ;;  %v2602_v57 = vmul.f32 %v4828_v10, %v2601_v46 }
 0x257   :  { %v2543_v41 = vpop.permute.xlu1 %2542  ;;  %2842 = vmatpush.bf16.msrb.mxu3 %v3646_v51 }
 0x258   :  { %v2541_v36 = vpop.permute.xlu0 %2540  ;;  %v5078_v59 = vpop.permute.xlu2 %2555  ;;  %v2607_v46 = vadd.f32 %v2606_v3, %v2602_v57 }
 0x259   :  { %v2544_v52 = vsel %vm77_vm0, %v2541_v36, %v2543_v41 }
 0x25a   :  { %v5072_v9 = vadd.f32 %v2544_v52, %v2522_v53  ;;  %2831 = vmatpush.bf16.msrb.mxu2 %v3636_v45 }
 0x25b   :  { %2843 = vmatpush.bf16.msrb.mxu3 %v3645_v43 }
 0x25d   :  { %2324 = vrot.lane.b32.xlu1 %v2320_v34, %s3726_s26  ;;  %2326 = vrot.lane.b32.xlu2 %v2321_v27, %s3726_s26  ;;  %v3643_v34 = vld [vmem:[%s5319_s4 + $0x3c8] sm:$0xff]  ;;  %v2506_v27 = vmul.f32 %v4828_v10, %v2505_v8 }
 0x25e   :  { %2241 = vrot.lane.b32.xlu0 %v2236_v55, %s3726_s26  ;;  %2832 = vmatpush.bf16.msrb.mxu2 %v3635_v49  ;;  %v2510_v55 = vmul.f32 %v4797_v42, %v4666_v24  ;;  %v3622_v49 = vld [vmem:[%s5319_s4 + $0x320] sm:$0xff] }
 0x25f   :  { %v2637_v28 = vpop.permute.xlu1 %2636  ;;  %2844 = vmatpush.bf16.msrb.mxu3 %v3644_v4 }
 0x260   :  { %v2640_v23 = vsel %vm77_vm0, %v2637_v28, %v2639_v63  ;;  %v2628_v15 = vpop.permute.xlu0 %2627  ;;  %v5093_v13 = vpop.permute.xlu2 %2649  ;;  %v3642_v28 = vld [vmem:[%s5319_s4 + $0x3c0] sm:$0xff] }
 0x261   :  { %v5084_v62 = vadd.f32 %v2640_v23, %v2618_v19  ;;  %v5088_v14 = vsel %vm77_vm0, %v5027_v6, %v2628_v15  ;;  %v2511_v15 = vadd.f32 %v2510_v55, %v2506_v27  ;;  %v3630_v27 = vld [vmem:[%s5319_s4 + $0x360] sm:$0xff] }
 0x262   :  { %2833 = vmatpush.bf16.msrb.mxu2 %v3634_v44 }
 0x263   :  { %2845 = vmatpush.bf16.msrb.mxu3 %v3643_v34  ;;  %v3620_v34 = vld [vmem:[%s5319_s4 + $0x310] sm:$0xff] }
 0x265   :  { %2337 = vrot.lane.b32.xlu1 %v2332_v1, %s3726_s26  ;;  %v3625_v1 = vld [vmem:[%s5319_s4 + $0x338] sm:$0xff] }
 0x266   :  { %2335 = vrot.lane.b32.xlu0 %v2331_v20, %s3726_s26  ;;  %2477 = vmatpush.bf16.msrb.mxu0 %v3625_v1  ;;  %v2535_v20 = vadd.f32 %v5052_v0, %v2511_v15  ;;  %v3623_v0 = vld [vmem:[%s5319_s4 + $0x328] sm:$0xff]  ;;  %v3629_v1 = vld [vmem:[%s5319_s4 + $0x358] sm:$0xff] }
 0x267   :  { %v2170_v35 = vpop.permute.xlu1 %2169  ;;  %2846 = vmatpush.bf16.msrb.mxu3 %v3642_v28  ;;  %v2693_v28 = vstv %s3456_s12  ;;  %v3619_v15 = vld [vmem:[%s5319_s4 + $0x308] sm:$0xff] }
 0x268   :  { %v2168_v60 = vpop.permute.xlu0 %2167  ;;  %v5102_v25 = vpop.permute.xlu2 %2662 }
 0x269   :  { %v2171_v16 = vsel %vm77_vm0, %v2168_v60, %v2170_v35 }
 0x26a   :  { %2478 = vmatpush.bf16.msrb.mxu0 %v3624_v2 }
 0x26e   :  { %2479 = vmatpush.bf16.msrb.mxu0 %v3623_v0  ;;  %v2157_v0 = vmul.f32 %v4828_v10, %v2156_v7 }
 0x26f   :  { %v5100_v6 = vpop.permute.xlu1 %2553 }
 0x270   :  { %v2266_v32 = vpop.permute.xlu0 %2265  ;;  %v2192_v38 = vpop.permute.xlu2 %2191  ;;  %v2557_v24 = vsel %vm77_vm0, %v5100_v6, %v5078_v59 }
 0x271   :  { %v5108_v33 = vsel %vm77_vm0, %v2264_v22, %v2266_v32  ;;  %v2158_v22 = vmul.f32 %v4797_v42, %v2156_v7  ;;  %v2559_v47 = vadd.f32 %v2557_v24, %v2535_v20  ;;  %v3618_v20 = vld [vmem:[%s5319_s4 + $0x300] sm:$0xff] }
 0x272   :  { %2480 = vmatpush.bf16.msrb.mxu0 %v3622_v49 }
 0x273   :  { %v2173_v58 = vadd.f32 %v2171_v16, %v2158_v22  ;;  %v3621_v22 = vld [vmem:[%s5319_s4 + $0x318] sm:$0xff] }
 0x276   :  { %2481 = vmatpush.bf16.msrb.mxu0 %v3621_v22 }
 0x277   :  { %v2567_v48 = vpop.permute.xlu1 %2566 }
 0x278   :  { %v2565_v31 = vpop.permute.xlu0 %2564  ;;  %v2279_v12 = vpop.permute.xlu2 %2278 }
 0x279   :  { %v2568_v8 = vsel %vm126_vm1, %v2565_v31, %v2567_v48  ;;  %v2597_v31 = vstv %s3450_s17 }
 0x27a   :  { %v2570_v35 = vadd.f32 %v2568_v8, %v5072_v9  ;;  %v3633_v9 = vld [vmem:[%s5319_s4 + $0x378] sm:$0xff]  ;;  %2482 = vmatpush.bf16.msrb.mxu0 %v3620_v34 }
 0x27b   :  { %2490 = vmatpush.bf16.msrb.mxu1 %v3633_v9  ;;  %v2161_v9 = vmul.f32 %v4797_v42, %v4750_v54  ;;  %v2257_v54 = vmul.f32 %v4797_v42, %v4763_v30 }
 0x27e   :  { %2483 = vmatpush.bf16.msrb.mxu0 %v3619_v15 }
 0x27f   :  { %v5122_v11 = vpop.permute.xlu1 %2660  ;;  %2491 = vmatpush.bf16.msrb.mxu1 %v3632_v56  ;;  %v2252_v56 = vstv %s3375_s27 }
 0x280   :  { %v5130_v63 = vpop.permute.xlu0 %2651  ;;  %v2578_v50 = vpop.permute.xlu2 %2577  ;;  %v2254_v22 = vmul.f32 %v4797_v42, %v2252_v56 }
 0x281   :  { %v2653_v4 = vsel %vm77_vm0, %v5093_v13, %v5130_v63 }
 0x282   :  { %2484 = vmatpush.bf16.msrb.mxu0 %v3618_v20 }
 0x287   :  { %v2183_v40 = vpop.permute.xlu1 %2182 }
 0x288   :  { %v2181_v29 = vpop.permute.xlu0 %2180  ;;  %v2591_v19 = vpop.permute.xlu2 %2590 }
 0x289   :  { %v5148_v61 = vsel %vm77_vm0, %v2181_v29, %v2183_v40 }
 0x28f   :  { %v2277_v39 = vpop.permute.xlu1 %2276 }
 0x290   :  { %v5160_v41 = vsel %vm77_vm0, %v2277_v39, %v2279_v12  ;;  %v2194_v53 = vpop.permute.xlu0 %2193  ;;  %v2685_v59 = vpop.permute.xlu2 %2684  ;;  %v2664_v39 = vsel %vm126_vm1, %v5122_v11, %v5102_v25 }
 0x291   :  { %v2195_v36 = vsel %vm77_vm0, %v2192_v38, %v2194_v53  ;;  %v2666_v25 = vadd.f32 %v2664_v39, %v5084_v62 }
 0x292   :  { %v5163_v52 = vadd.f32 %v2195_v36, %v2173_v58  ;;  %v2631_v58 = vadd.f32 %v5088_v14, %v2607_v46 }
 0x294   :  { %v2655_v11 = vadd.f32 %v2653_v4, %v2631_v58 }
 0x297   :  { %v5173_v26 = vpop.permute.xlu1 %2289 }
 0x298   :  { %v5178_v23 = vpop.permute.xlu0 %2287  ;;  %v2207_v43 = vpop.permute.xlu2 %2206 }
 0x299   :  { %v2291_v30 = vsel %vm77_vm0, %v5178_v23, %v5173_v26 }
 0x29f   :  { %v2137_v60 = vpop.f32.mrf.mxu2  ;;  %v2589_v16 = vpop.permute.xlu1 %2588 }
 0x2a0   :  { %v2592_v32 = vsel %vm126_vm1, %v2589_v16, %v2591_v19  ;;  %v2580_v21 = vpop.permute.xlu0 %2579  ;;  %v2301_v62 = vpop.permute.xlu2 %2300 }
 0x2a1   :  { %v2594_v48 = vadd.f32 %v2592_v32, %v2570_v35  ;;  %v2581_v5 = vsel %vm126_vm1, %v2578_v50, %v2580_v21  ;;  %v3631_v50 = vld [vmem:[%s5319_s4 + $0x368] sm:$0xff]  ;;  %v3628_v35 = vld [vmem:[%s5319_s4 + $0x350] sm:$0xff] }
 0x2a2   :  { %v2583_v6 = vadd.f32 %v2581_v5, %v2559_v47  ;;  %2492 = vmatpush.bf16.msrb.mxu1 %v3631_v50  ;;  %v3627_v32 = vld [vmem:[%s5319_s4 + $0x348] sm:$0xff] }
 0x2a4   :  { %v2595_v38 = vmax.f32 %v2583_v6, %v2594_v48  ;;  %v3626_v48 = vld [vmem:[%s5319_s4 + $0x340] sm:$0xff]  ;;  %s3380_s4 = sld [smem:[#allocation5 + $0xd]] }
 0x2a6   :  { %v2598_v45 = vadd.f32 %v2597_v31, %v2595_v38  ;;  %2493 = vmatpush.bf16.msrb.mxu1 %v3630_v27 }
 0x2a7   :  { %v2139_v18 = vpop.f32.mrf.mxu2  ;;  %v2150_v12 = vpop.f32.mrf.mxu3 }
 0x2a8   :  { %v2599_v40 = vmax.f32 %v2598_v45, 0.0  ;;  %v5211_v44 = vadd.f32 %v2150_v12, %v2137_v60  ;;  %v2676_v51 = vpop.permute.xlu1 %2675  ;;  %v2674_v29 = vpop.permute.xlu0 %2673  ;;  %v2162_v45 = vadd.f32 %v2161_v9, %v2157_v0  ;;  %v2859_v0 = vld [vmem:[%s5321_s6] sm:$0xff] }
 0x2a9   :  { %v2677_v53 = vsel %vm126_vm1, %v2674_v29, %v2676_v51  ;;  %v2314_v21 = vpop.permute.xlu2 %2313  ;;  %v2253_v29 = vmul.f32 %v4828_v10, %v2252_v56 }
 0x2aa   :  { %v2728_v37 = vpack.c.bf16 %v2599_v40, %v2599_v40  ;;  %v2679_v14 = vadd.f32 %v2677_v53, %v2655_v11  ;;  %2494 = vmatpush.bf16.msrb.mxu1 %v3629_v1  ;;  %v2186_v7 = vadd.f32 %v5148_v61, %v2162_v45 }
 0x2ab   :  { %v2258_v58 = vadd.f32 %v2257_v54, %v2253_v29 }
 0x2ac   :  { %2834 = vmatmul.bf16.vlgmr.msrb.gmra.mxu2 %v2728_v37 }
 0x2ae   :  { %2495 = vmatpush.bf16.msrb.mxu1 %v3628_v35 }
 0x2af   :  { %v2152_v36 = vpop.f32.mrf.mxu3 }
 0x2b0   :  { %v2205_v55 = vpop.permute.xlu1 %2204  ;;  %v2687_v13 = vpop.permute.xlu0 %2686  ;;  %v2269_v36 = vadd.f32 %v5108_v33, %v2254_v22 }
 0x2b1   :  { %v2688_v63 = vsel %vm126_vm1, %v2685_v59, %v2687_v13  ;;  %v2240_v18 = vpop.permute.xlu2 %2239  ;;  %v2208_v40 = vsel %vm77_vm0, %v2205_v55, %v2207_v43 }
 0x2b2   :  { %v2690_v19 = vadd.f32 %v2688_v63, %v2666_v25  ;;  %2496 = vmatpush.bf16.msrb.mxu1 %v3627_v32  ;;  %v2282_v25 = vadd.f32 %v5160_v41, %v2258_v58  ;;  %v2293_v11 = vadd.f32 %v2291_v30, %v2269_v36 }
 0x2b4   :  { %v2691_v8 = vmax.f32 %v2679_v14, %v2690_v19 }
 0x2b6   :  { %v2694_v24 = vadd.f32 %v2693_v28, %v2691_v8  ;;  %2497 = vmatpush.bf16.msrb.mxu1 %v3626_v48  ;;  %v2344_v8 = vstv %s3380_s4  ;;  %v2862_v48 = vld [vmem:[%s5321_s6 + $0x18] sm:$0xff] }
 0x2b8   :  { %v2695_v60 = vmax.f32 %v2694_v24, 0.0  ;;  %v2218_v16 = vpop.permute.xlu1 %2217  ;;  %v2216_v2 = vpop.permute.xlu0 %2215 }
 0x2b9   :  { %v2219_v51 = vsel %vm126_vm1, %v2216_v2, %v2218_v16  ;;  %v2327_v42 = vpop.permute.xlu2 %2326  ;;  %v2866_v16 = vld [vmem:[%s5321_s6 + $0x38] sm:$0xff]  ;;  %v2865_v2 = vld [vmem:[%s5321_s6 + $0x30] sm:$0xff] }
 0x2ba   :  { %v2729_v47 = vpack.c.bf16 %v2695_v60, %v2695_v60  ;;  %v2221_v50 = vadd.f32 %v2219_v51, %v5163_v52  ;;  %2883 = vmatpush.msra.mxu0 %v2866_v16  ;;  %v3658_v51 = vld [vmem:[%s5322_s7] ss:$0 sm:$0xff] }
 0x2bc   :  { %2847 = vmatmul.bf16.vlgmr.msrb.gmra.mxu3 %v2729_v47  ;;  %v2864_v47 = vld [vmem:[%s5321_s6 + $0x28] sm:$0xff]  ;;  %2884 = vmatpush.msra.mxu0 %v2865_v2 }
 0x2be   :  { %2885 = vmatpush.msra.mxu0 %v2864_v47 }
 0x2c0   :  { %v2312_v5 = vpop.permute.xlu1 %2311  ;;  %v2303_v59 = vpop.permute.xlu0 %2302 }
 0x2c1   :  { %v1788_v6 = vpop.f32.mrf.mxu0  ;;  %v2315_v52 = vsel %vm126_vm1, %v2312_v5, %v2314_v21  ;;  %v2304_v27 = vsel %vm77_vm0, %v2301_v62, %v2303_v59  ;;  %v2863_v21 = vld [vmem:[%s5321_s6 + $0x20] sm:$0xff]  ;;  %v2861_v5 = vld [vmem:[%s5321_s6 + $0x10] sm:$0xff] }
 0x2c2   :  { %v2317_v63 = vadd.f32 %v2315_v52, %v2293_v11  ;;  %v2306_v14 = vadd.f32 %v2304_v27, %v2282_v25  ;;  %2886 = vmatpush.msra.mxu0 %v2863_v21 }
 0x2c4   :  { %2887 = vmatpush.msra.mxu0 %v2862_v48 }
 0x2c6   :  { %2888 = vmatpush.msra.mxu0 %v2861_v5 }
 0x2c8   :  { %v2231_v31 = vpop.permute.xlu1 %2230  ;;  %v2229_v38 = vpop.permute.xlu0 %2228 }
 0x2c9   :  { %v1790_v57 = vpop.f32.mrf.mxu0  ;;  %v1801_v3 = vpop.f32.mrf.mxu1  ;;  %v2232_v37 = vsel %vm126_vm1, %v2229_v38, %v2231_v31 }
 0x2ca   :  { %v1802_v12 = vadd.f32 %v1801_v3, %v1788_v6  ;;  %v2860_v6 = vld [vmem:[%s5321_s6 + $0x8] sm:$0xff] }
 0x2cb   :  { %2889 = vmatpush.msra.mxu0 %v2860_v6 }
 0x2cc   :  { %v1805_v49 = vadd.f32 %v1802_v12, %v5034_v17  ;;  %v2210_v17 = vadd.f32 %v2208_v40, %v2186_v7 }
 0x2cd   :  { %2890 = vmatpush.msra.mxu0 %v2859_v0 }
 0x2ce   :  { %v5266_v46 = vadd.f32 %v5211_v44, %v1805_v49  ;;  %v2234_v10 = vadd.f32 %v2232_v37, %v2210_v17  ;;  %v2248_v44 = vstv %s3374_s28 }
 0x2d0   :  { %v2325_v43 = vpop.permute.xlu1 %2324  ;;  %v2242_v39 = vpop.permute.xlu0 %2241 }
 0x2d1   :  { %v2243_v4 = vsel %vm126_vm1, %v2240_v18, %v2242_v39  ;;  %v1803_v61 = vpop.f32.mrf.mxu1  ;;  %v2328_v13 = vsel %vm126_vm1, %v2325_v43, %v2327_v42  ;;  %v3657_v18 = vld [vmem:[%s5320_s5] ss:$0 sm:$0xff] }
 0x2d2   :  { %v2245_v53 = vadd.f32 %v2243_v4, %v2221_v50  ;;  %v2330_v33 = vadd.f32 %v2328_v13, %v2306_v14 }
 0x2d4   :  { %v2246_v34 = vmax.f32 %v2234_v10, %v2245_v53 }
 0x2d6   :  { %v2249_v55 = vadd.f32 %v2248_v44, %v2246_v34 }
 0x2d8   :  { %v2250_v19 = vmax.f32 %v2249_v55, 0.0  ;;  %v2338_v26 = vpop.permute.xlu1 %2337  ;;  %v2336_v23 = vpop.permute.xlu0 %2335 }
 0x2d9   :  { %v2339_v28 = vsel %vm126_vm1, %v2336_v23, %v2338_v26 }
 0x2da   :  { %v2341_v15 = vadd.f32 %v2339_v28, %v2317_v63  ;;  %v2379_v1 = vpack.c.bf16 %v2250_v19, %v2250_v19 }
 0x2dc   :  { %v2342_v24 = vmax.f32 %v2330_v33, %v2341_v15  ;;  %2485 = vmatmul.bf16.vlgmr.msrb.gmra.mxu0 %v2379_v1 }
 0x2de   :  { %v2345_v62 = vadd.f32 %v2344_v8, %v2342_v24 }
 0x2e0   :  { %v2346_v20 = vmax.f32 %v2345_v62, 0.0 }
 0x2e2   :  { %v2380_v41 = vpack.c.bf16 %v2346_v20, %v2346_v20 }
 0x2e4   :  { %2498 = vmatmul.bf16.vlgmr.msrb.gmra.mxu1 %v2380_v41 }
 0x32f   :  { %v2835_v35 = vpop.f32.mrf.mxu2 }
 0x337   :  { %v2837_v60 = vpop.f32.mrf.mxu2 }
 0x33f   :  { %v2848_v32 = vpop.f32.mrf.mxu3 }
 0x340   :  { %v2849_v3 = vadd.f32 %v2848_v32, %v2835_v35 }
 0x347   :  { %v2850_v59 = vpop.f32.mrf.mxu3 }
 0x359   :  { %v2486_v9 = vpop.f32.mrf.mxu0 }
 0x361   :  { %v2488_v31 = vpop.f32.mrf.mxu0  ;;  %v2499_v38 = vpop.f32.mrf.mxu1 }
 0x362   :  { %v2500_v57 = vadd.f32 %v2499_v38, %v2486_v9 }
 0x364   :  { %v2503_v45 = vadd.f32 %v2500_v57, %v5266_v46 }
 0x366   :  { %v2852_v12 = vadd.f32 %v2849_v3, %v2503_v45 }
 0x368   :  { %v2857_v49 = vadd.f32 %v3657_v18, %v2852_v12 }
 0x369   :  { %v2501_v56 = vpop.f32.mrf.mxu1 }
 0x36a   :  { %v2858_v40 = vmax.f32 %v2857_v49, 0.0 }
 0x36c   :  { %3521 = vmatmul.msk.f32.vlgmr.msra.gmra.mxu0 %vm2871_vm2, %v2858_v40 }
 0x3e9   :  { %v2892_v7 = vpop.f32.mrf.mxu0 }
 0x3ea   :  { %v2893_v29 = vadd.f32 %v3658_v51, %v2892_v7 }
 0x3ec   :  { %2896 = vst.msk [vmem:[#allocation7] sm:$0xff] %vm2895_vm3, %v2893_v29 }
 0x3ed   :  { %2907 = dma.vmem_to_hbm [thread:$0]  %s2903_s20, 128, %s2905_s24, [#allocation3]  }
 0x3ee   :  { %3719 = dma.done.wait [#allocation3], 128  }
 0x3ef   :  { %3720 = vsyncadd [#allocation3], 4294967168 }
 0x3f0   :  { %2912 = vsyncpa [#allocation3], 1 }
 0x3f1   :  { %2913 = vsyncpa [#allocation4], 1 }
 0x3f2   :  { %2914 = vsyncpa [#allocation6], 1 }

</bundles_post_ra>
